<compile_context>
chip_gen: v7x
topology: tpu7x:2x2x1
jax: 0.10.0
libtpu: 0.0.40
codegen_flags: <defaults>
</compile_context>

<pallas_src>
import jax
import jax.numpy as jnp
from jax.experimental import pallas as pl
from jax.experimental.pallas import tpu as pltpu

# ---------------- model configuration (small, forward-consistent) ----------
B = 2            # batch
SEQ_LEN = 64     # configs.seq_len
PRED_LEN = 8     # configs.pred_len
M_CH = 2         # configs.c_out  (number of series "m")
D_MODEL = 64     # configs.d_model
P = 16           # patch length
S = 8            # patch stride
R = 1            # FFN expansion ratio (weights below assume r == 1)
K = 51           # depthwise conv kernel size
NUM_LAYERS = 2
N = SEQ_LEN // S           # tokens per series
C = M_CH * D_MODEL         # flattened (m d) channel count = 128
PAD = (K - 1) // 2
BN_EPS = 1e-5
OUT = PRED_LEN * M_CH      # head output per series = 16
OUT_W = M_CH * OUT         # kernel head output lane width = 32
NB = 2 * N - 1             # depthwise-conv taps that touch non-zero data = 15


# ---------------- small helpers --------------------------------------------
def _fullspec(shape):
    nd = len(shape)
    return pl.BlockSpec(shape, lambda i, _nd=nd: (0,) * _nd)


def _erf_approx(x):
    # Abramowitz & Stegun 7.1.26, |abs err| < 1.5e-7 (float32-level accuracy).
    ax = jnp.abs(x)
    t = 1.0 / (1.0 + 0.3275911 * ax)
    poly = t * (0.254829592 + t * (-0.284496736 + t * (1.421413741 +
           t * (-1.453152027 + t * 1.061405429))))
    y = 1.0 - poly * jnp.exp(-ax * ax)
    return jnp.where(x >= 0.0, y, -y)


def _gelu_exact(x):
    # TODO(synk): F.gelu default is the exact erf form; we use an erf
    # polynomial (~1.5e-7 abs error) since lax.erf lowering is not relied on.
    return 0.5 * x * (1.0 + _erf_approx(x * 0.7071067811865476))


# ---------------- single fused forward kernel --------------------------------
def fused_forward_kernel(p2_ref, we_ref, be_ref,
                         band_ref, dwb_ref, gam_ref, bet_ref,
                         w1_ref, b1_ref, w2_ref, b2_ref,
                         v1_ref, c1_ref, v2_ref, c2_ref,
                         gh_ref, hb_ref, out_ref):
    BN = B * N
    inv_bn = 1.0 / float(BN)

    # ---- patch embedding: one block-diagonal MXU matmul -------------------
    # p2: (B*N, M*P) @ we: (M*P, C)  ->  x: (B*N, C) with c = m*D + d.
    x = jnp.dot(p2_ref[...], we_ref[...],
                preferred_element_type=jnp.float32) + be_ref[...]

    # ---- ModernTCN blocks (static unrolled layer loop) ---------------------
    for l in range(NUM_LAYERS):
        res = x

        # depthwise conv, kernel 51, 'same' zero pad: only the 2N-1 taps that
        # touch real data.  out[n] = sum_s xpad[n+s] * band[s].
        x3 = x.reshape(B, N, C)
        zpad = jnp.zeros((B, N - 1, C), jnp.float32)
        xp = jnp.concatenate([zpad, x3, zpad], axis=1)      # (B, 3N-2, C)
        band = band_ref[l]                                  # (NB, C)
        acc = xp[:, 0:N, :] * band[0:1, :]
        for s in range(1, NB):
            acc = acc + xp[:, s:s + N, :] * band[s:s + 1, :]
        y = acc.reshape(BN, C) + dwb_ref[l]                 # (BN, C)

        # BatchNorm1d (training-mode batch stats), single pass over rows.
        s1 = jnp.sum(y, axis=0, keepdims=True)
        s2 = jnp.sum(y * y, axis=0, keepdims=True)
        mean = s1 * inv_bn
        var = s2 * inv_bn - mean * mean
        y = (y - mean) * jax.lax.rsqrt(var + BN_EPS) * gam_ref[l] + bet_ref[l]

        # ConvFFN1 (groups = M): one block-diagonal (C,C) MXU matmul per stage.
        h = jnp.dot(y, w1_ref[l], preferred_element_type=jnp.float32) + b1_ref[l]
        h = _gelu_exact(h)
        z = jnp.dot(h, w2_ref[l], preferred_element_type=jnp.float32) + b2_ref[l]

        # ConvFFN2 (groups = D), expressed directly in the (m d) layout as a
        # structured (C,C) matmul (diagonal DxD blocks per (m_in, m_out)).
        h2 = jnp.dot(z, v1_ref[l], preferred_element_type=jnp.float32) + c1_ref[l]
        h2 = _gelu_exact(h2)
        r = jnp.dot(h2, v2_ref[l], preferred_element_type=jnp.float32) + c2_ref[l]

        x = res + r

    # ---- fused head Linear: dec[b, m*OUT + o] = sum_n x[b,n,:] @ G[n] -------
    x3 = x.reshape(B, N, C)
    dec = jnp.zeros((B, OUT_W), jnp.float32) + hb_ref[...]
    for n in range(N):
        dec = dec + jnp.dot(x3[:, n, :], gh_ref[n],
                            preferred_element_type=jnp.float32)
    out_ref[...] = dec


def fused_call(p2, packed):
    operands = (p2, packed["we"], packed["be"],
                packed["band"], packed["dwb"], packed["gam"], packed["bet"],
                packed["w1"], packed["b1"], packed["w2"], packed["b2"],
                packed["v1"], packed["c1"], packed["v2"], packed["c2"],
                packed["gh"], packed["hb"])
    return pl.pallas_call(
        fused_forward_kernel,
        out_shape=jax.ShapeDtypeStruct((B, OUT_W), jnp.float32),
        grid=(1,),
        in_specs=[_fullspec(op.shape) for op in operands],
        out_specs=_fullspec((B, OUT_W)),
        compiler_params=pltpu.CompilerParams(
            dimension_semantics=("arbitrary",)),
    )(*operands)


# ---------------- parameter init (PyTorch shapes) ----------------------------
def init_params(key):
    keys = iter(jax.random.split(key, 64))

    def nrm(shape, s=0.1):
        return s * jax.random.normal(next(keys), shape, dtype=jnp.float32)

    params = {
        "emb_w": nrm((D_MODEL, 1, P)),            # Conv1d(1, D, P, stride=S)
        "emb_b": nrm((D_MODEL,), 0.02),
        "head_w": nrm((PRED_LEN * M_CH, D_MODEL * N), 0.05),
        "head_b": nrm((PRED_LEN * M_CH,), 0.02),
        "blocks": [],
    }
    for _ in range(NUM_LAYERS):
        params["blocks"].append(dict(
            dw_w=nrm((C, 1, K)), dw_b=nrm((C,), 0.02),
            bn_g=1.0 + nrm((C,)), bn_b=nrm((C,), 0.02),
            f1w1=nrm((C, D_MODEL, 1)), f1b1=nrm((C,), 0.02),   # groups = M
            f1w2=nrm((C, D_MODEL, 1)), f1b2=nrm((C,), 0.02),
            f2w1=nrm((C, M_CH, 1)), f2b1=nrm((C,), 0.02),      # groups = D
            f2w2=nrm((C, M_CH, 1)), f2b2=nrm((C,), 0.02),
        ))
    return params


# ---------------- weight repacking for the fused kernel ----------------------
def pack_params(params):
    M, D = M_CH, D_MODEL

    # --- embedding: block-diagonal (M*P, C); we[m*P+p, m*D+d] = emb_w[d,0,p]
    we_small = params["emb_w"][:, 0, :].T                     # (P, D)
    we = jnp.zeros((M * P, C), jnp.float32)
    for m in range(M):
        we = we.at[m * P:(m + 1) * P, m * D:(m + 1) * D].set(we_small)
    be = jnp.tile(params["emb_b"], (M,))[None, :]             # (1, C)

    # --- head: G[n, m*D+d, m*OUT+o] = head_w[o, d*N+n]
    hw = params["head_w"]                                     # (OUT, D*N)
    gh = jnp.zeros((N, C, OUT_W), jnp.float32)
    for n in range(N):
        slab = hw[:, n::N].T                                  # (D, OUT)
        for m in range(M):
            gh = gh.at[n, m * D:(m + 1) * D, m * OUT:(m + 1) * OUT].set(slab)
    hb = jnp.tile(params["head_b"], (M,))[None, :]            # (1, OUT_W)

    bands, dwbs, gams, bets = [], [], [], []
    W1s, B1s, W2s, B2s = [], [], [], []
    V1s, C1s, V2s, C2s = [], [], [], []
    for blk in params["blocks"]:
        # depthwise conv taps that touch non-zero data: k in [PAD-(N-1), PAD+N-1]
        dww = blk["dw_w"][:, 0, :]                            # (C, K)
        bands.append(dww[:, PAD - (N - 1):PAD + N].T)         # (NB, C)
        dwbs.append(blk["dw_b"][None, :])
        gams.append(blk["bn_g"][None, :])
        bets.append(blk["bn_b"][None, :])

        # ConvFFN1 (groups=M) -> block-diagonal (C, C), x_row @ W
        f1w1 = blk["f1w1"][:, :, 0]                           # (C, D): [c_out, d_in]
        f1w2 = blk["f1w2"][:, :, 0]
        W1 = jnp.zeros((C, C), jnp.float32)
        W2 = jnp.zeros((C, C), jnp.float32)
        for m in range(M):
            W1 = W1.at[m * D:(m + 1) * D, m * D:(m + 1) * D].set(
                f1w1[m * D:(m + 1) * D, :].T)
            W2 = W2.at[m * D:(m + 1) * D, m * D:(m + 1) * D].set(
                f1w2[m * D:(m + 1) * D, :].T)
        W1s.append(W1); W2s.append(W2)
        B1s.append(blk["f1b1"][None, :]); B2s.append(blk["f1b2"][None, :])

        # ConvFFN2 (groups=D) expressed in the (m d) layout:
        # V[m_in*D+d, m_out*D+d] = f2w[d*M+m_out, m_in]  (diagonal D x D blocks)
        f2w1 = blk["f2w1"][:, :, 0]                           # (C, M): [d*M+m_out, m_in]
        f2w2 = blk["f2w2"][:, :, 0]
        V1 = jnp.zeros((C, C), jnp.float32)
        V2 = jnp.zeros((C, C), jnp.float32)
        for m_in in range(M):
            for m_out in range(M):
                V1 = V1.at[m_in * D:(m_in + 1) * D,
                           m_out * D:(m_out + 1) * D].set(
                    jnp.diag(f2w1[m_out::M, m_in]))
                V2 = V2.at[m_in * D:(m_in + 1) * D,
                           m_out * D:(m_out + 1) * D].set(
                    jnp.diag(f2w2[m_out::M, m_in]))
        V1s.append(V1); V2s.append(V2)
        C1s.append(blk["f2b1"].reshape(D, M).T.reshape(1, C))
        C2s.append(blk["f2b2"].reshape(D, M).T.reshape(1, C))

    return {
        "we": we, "be": be, "gh": gh, "hb": hb,
        "band": jnp.stack(bands), "dwb": jnp.stack(dwbs),
        "gam": jnp.stack(gams), "bet": jnp.stack(bets),
        "w1": jnp.stack(W1s), "b1": jnp.stack(B1s),
        "w2": jnp.stack(W2s), "b2": jnp.stack(B2s),
        "v1": jnp.stack(V1s), "c1": jnp.stack(C1s),
        "v2": jnp.stack(V2s), "c2": jnp.stack(C2s),
    }


# ---------------- full forward ------------------------------------------------
def model_forward(x_enc, x_mark_enc, x_dec, x_mark_dec, packed):
    del x_mark_enc, x_dec, x_mark_dec  # unused by the reference forward

    # ----- RevIN normalization (cheap XLA glue) -----
    means = jnp.mean(x_enc, axis=1, keepdims=True)              # (B, 1, M)
    xc = x_enc - means
    stdev = jnp.sqrt(jnp.mean(xc * xc, axis=1, keepdims=True) + 1e-5)
    xn = xc / stdev

    # ----- im2col patches: replicate-pad tail by P-S, general stride windows
    xm = jnp.transpose(xn, (0, 2, 1))                           # (B, M, L)
    rep = jnp.repeat(xm[:, :, -1:], P - S, axis=2)
    xpad = jnp.concatenate([xm, rep], axis=2)                   # (B, M, L+P-S)
    patches = jnp.stack([xpad[:, :, n * S:n * S + P] for n in range(N)],
                        axis=1)                                 # (B, N, M, P)
    p2 = patches.reshape(B * N, M_CH * P)                       # rows (b,n), cols (m,p)

    # ----- single fused Pallas kernel: embedding + 2 TCN blocks + head -----
    dec2 = fused_call(p2, packed)                               # (B, M*OUT)

    # ----- output layout + RevIN de-normalization -----
    dec = dec2.reshape(B, M_CH, OUT).transpose(0, 2, 1)         # (B, pred*M, M)
    dec = dec * stdev + means
    return dec


model_forward_jit = jax.jit(model_forward)


if __name__ == "__main__":
    key_in = jax.random.PRNGKey(0)
    x_enc = jax.random.normal(key_in, (B, SEQ_LEN, M_CH), dtype=jnp.float32)
    x_mark_enc = jnp.zeros((B, SEQ_LEN, 1), dtype=jnp.float32)   # unused
    x_dec = jnp.zeros((B, PRED_LEN, M_CH), dtype=jnp.float32)    # unused
    x_mark_dec = jnp.zeros((B, PRED_LEN, 1), dtype=jnp.float32)  # unused

    params = init_params(jax.random.PRNGKey(1))
    packed = pack_params(params)   # one-time weight repacking (outside jit)

    out = model_forward_jit(x_enc, x_mark_enc, x_dec, x_mark_dec, packed)
    out = jax.block_until_ready(out)

    assert out.shape == (B, PRED_LEN * M_CH, M_CH), out.shape
    assert bool(jnp.all(jnp.isfinite(out)))
    print("KERNEL_OK")
</pallas_src>

<mosaic_0001>
module attributes {stable_mosaic.version = 11 : i64} {
  func.func @fused_forward_kernel(%arg0: i32, %arg1: memref<16x32xf32, #tpu.memory_space<vmem>>, %arg2: memref<32x128xf32, #tpu.memory_space<vmem>>, %arg3: memref<1x128xf32, #tpu.memory_space<vmem>>, %arg4: memref<2x15x128xf32, #tpu.memory_space<vmem>>, %arg5: memref<2x1x128xf32, #tpu.memory_space<vmem>>, %arg6: memref<2x1x128xf32, #tpu.memory_space<vmem>>, %arg7: memref<2x1x128xf32, #tpu.memory_space<vmem>>, %arg8: memref<2x128x128xf32, #tpu.memory_space<vmem>>, %arg9: memref<2x1x128xf32, #tpu.memory_space<vmem>>, %arg10: memref<2x128x128xf32, #tpu.memory_space<vmem>>, %arg11: memref<2x1x128xf32, #tpu.memory_space<vmem>>, %arg12: memref<2x128x128xf32, #tpu.memory_space<vmem>>, %arg13: memref<2x1x128xf32, #tpu.memory_space<vmem>>, %arg14: memref<2x128x128xf32, #tpu.memory_space<vmem>>, %arg15: memref<2x1x128xf32, #tpu.memory_space<vmem>>, %arg16: memref<8x128x32xf32, #tpu.memory_space<vmem>>, %arg17: memref<1x32xf32, #tpu.memory_space<vmem>>, %arg18: memref<2x32xf32, #tpu.memory_space<vmem>>) attributes {dimension_semantics = [#tpu.dimension_semantics<arbitrary>], iteration_bounds = array<i64: 1>, scalar_prefetch = 0 : i64, scratch_operands = 0 : i64, tpu.core_type = #tpu.core_type<tc>, window_params = [{pipeline_mode = #tpu.pipeline_mode<synchronous>, transform_indices = @transform_0, window_bounds = array<i64: 16, 32>}, {pipeline_mode = #tpu.pipeline_mode<synchronous>, transform_indices = @transform_1, window_bounds = array<i64: 32, 128>}, {pipeline_mode = #tpu.pipeline_mode<synchronous>, transform_indices = @transform_2, window_bounds = array<i64: 1, 128>}, {pipeline_mode = #tpu.pipeline_mode<synchronous>, transform_indices = @transform_3, window_bounds = array<i64: 2, 15, 128>}, {pipeline_mode = #tpu.pipeline_mode<synchronous>, transform_indices = @transform_4, window_bounds = array<i64: 2, 1, 128>}, {pipeline_mode = #tpu.pipeline_mode<synchronous>, transform_indices = @transform_5, window_bounds = array<i64: 2, 1, 128>}, {pipeline_mode = #tpu.pipeline_mode<synchronous>, transform_indices = @transform_6, window_bounds = array<i64: 2, 1, 128>}, {pipeline_mode = #tpu.pipeline_mode<synchronous>, transform_indices = @transform_7, window_bounds = array<i64: 2, 128, 128>}, {pipeline_mode = #tpu.pipeline_mode<synchronous>, transform_indices = @transform_8, window_bounds = array<i64: 2, 1, 128>}, {pipeline_mode = #tpu.pipeline_mode<synchronous>, transform_indices = @transform_9, window_bounds = array<i64: 2, 128, 128>}, {pipeline_mode = #tpu.pipeline_mode<synchronous>, transform_indices = @transform_10, window_bounds = array<i64: 2, 1, 128>}, {pipeline_mode = #tpu.pipeline_mode<synchronous>, transform_indices = @transform_11, window_bounds = array<i64: 2, 128, 128>}, {pipeline_mode = #tpu.pipeline_mode<synchronous>, transform_indices = @transform_12, window_bounds = array<i64: 2, 1, 128>}, {pipeline_mode = #tpu.pipeline_mode<synchronous>, transform_indices = @transform_13, window_bounds = array<i64: 2, 128, 128>}, {pipeline_mode = #tpu.pipeline_mode<synchronous>, transform_indices = @transform_14, window_bounds = array<i64: 2, 1, 128>}, {pipeline_mode = #tpu.pipeline_mode<synchronous>, transform_indices = @transform_15, window_bounds = array<i64: 8, 128, 32>}, {pipeline_mode = #tpu.pipeline_mode<synchronous>, transform_indices = @transform_16, window_bounds = array<i64: 1, 32>}, {pipeline_mode = #tpu.pipeline_mode<synchronous>, transform_indices = @transform_17, window_bounds = array<i64: 2, 32>}]} {
    %c0 = arith.constant 0 : index
    %c0_0 = arith.constant 0 : index
    %0 = vector.load %arg1[%c0, %c0_0] : memref<16x32xf32, #tpu.memory_space<vmem>>, vector<16x32xf32>
    %c0_1 = arith.constant 0 : index
    %c0_2 = arith.constant 0 : index
    %1 = vector.load %arg2[%c0_1, %c0_2] : memref<32x128xf32, #tpu.memory_space<vmem>>, vector<32x128xf32>
    %cst = arith.constant dense<0.000000e+00> : vector<16x128xf32>
    %2 = tpu.matmul %0, %1, %cst {dimension_numbers = #tpu.dot_dimension_numbers<[1], [0], [0], [1], [0, 0, 1, 1], [], []>} : vector<16x32xf32>, vector<32x128xf32>, vector<16x128xf32> -> vector<16x128xf32>
    %c0_3 = arith.constant 0 : index
    %c0_4 = arith.constant 0 : index
    %3 = vector.load %arg3[%c0_3, %c0_4] : memref<1x128xf32, #tpu.memory_space<vmem>>, vector<1x128xf32>
    %4 = vector.broadcast %3 : vector<1x128xf32> to vector<16x128xf32>
    %5 = arith.addf %2, %4 : vector<16x128xf32>
    %6 = vector.shape_cast %5 : vector<16x128xf32> to vector<2x8x128xf32>
    %cst_5 = arith.constant 0.000000e+00 : f32
    %7 = vector.broadcast %cst_5 : f32 to vector<2x7x128xf32>
    %8 = tpu.concatenate %7, %6, %7 in 1 : vector<2x7x128xf32>, vector<2x8x128xf32>, vector<2x7x128xf32> -> vector<2x22x128xf32>
    %c0_6 = arith.constant 0 : index
    %c0_7 = arith.constant 0 : index
    %c0_8 = arith.constant 0 : index
    %9 = vector.load %arg4[%c0_6, %c0_7, %c0_8] : memref<2x15x128xf32, #tpu.memory_space<vmem>>, vector<1x15x128xf32>
    %10 = vector.shape_cast %9 : vector<1x15x128xf32> to vector<15x128xf32>
    %11 = vector.extract_strided_slice %8 {offsets = [0, 0, 0], sizes = [2, 8, 128], strides = [1, 1, 1]} : vector<2x22x128xf32> to vector<2x8x128xf32>
    %12 = vector.extract_strided_slice %10 {offsets = [0, 0], sizes = [1, 128], strides = [1, 1]} : vector<15x128xf32> to vector<1x128xf32>
    %13 = vector.shape_cast %12 : vector<1x128xf32> to vector<1x1x128xf32>
    %14 = vector.broadcast %13 : vector<1x1x128xf32> to vector<2x8x128xf32>
    %15 = arith.mulf %11, %14 : vector<2x8x128xf32>
    %16 = vector.extract_strided_slice %8 {offsets = [0, 1, 0], sizes = [2, 8, 128], strides = [1, 1, 1]} : vector<2x22x128xf32> to vector<2x8x128xf32>
    %17 = vector.extract_strided_slice %10 {offsets = [1, 0], sizes = [1, 128], strides = [1, 1]} : vector<15x128xf32> to vector<1x128xf32>
    %18 = vector.shape_cast %17 : vector<1x128xf32> to vector<1x1x128xf32>
    %19 = vector.broadcast %18 : vector<1x1x128xf32> to vector<2x8x128xf32>
    %20 = arith.mulf %16, %19 : vector<2x8x128xf32>
    %21 = arith.addf %15, %20 : vector<2x8x128xf32>
    %22 = vector.extract_strided_slice %8 {offsets = [0, 2, 0], sizes = [2, 8, 128], strides = [1, 1, 1]} : vector<2x22x128xf32> to vector<2x8x128xf32>
    %23 = vector.extract_strided_slice %10 {offsets = [2, 0], sizes = [1, 128], strides = [1, 1]} : vector<15x128xf32> to vector<1x128xf32>
    %24 = vector.shape_cast %23 : vector<1x128xf32> to vector<1x1x128xf32>
    %25 = vector.broadcast %24 : vector<1x1x128xf32> to vector<2x8x128xf32>
    %26 = arith.mulf %22, %25 : vector<2x8x128xf32>
    %27 = arith.addf %21, %26 : vector<2x8x128xf32>
    %28 = vector.extract_strided_slice %8 {offsets = [0, 3, 0], sizes = [2, 8, 128], strides = [1, 1, 1]} : vector<2x22x128xf32> to vector<2x8x128xf32>
    %29 = vector.extract_strided_slice %10 {offsets = [3, 0], sizes = [1, 128], strides = [1, 1]} : vector<15x128xf32> to vector<1x128xf32>
    %30 = vector.shape_cast %29 : vector<1x128xf32> to vector<1x1x128xf32>
    %31 = vector.broadcast %30 : vector<1x1x128xf32> to vector<2x8x128xf32>
    %32 = arith.mulf %28, %31 : vector<2x8x128xf32>
    %33 = arith.addf %27, %32 : vector<2x8x128xf32>
    %34 = vector.extract_strided_slice %8 {offsets = [0, 4, 0], sizes = [2, 8, 128], strides = [1, 1, 1]} : vector<2x22x128xf32> to vector<2x8x128xf32>
    %35 = vector.extract_strided_slice %10 {offsets = [4, 0], sizes = [1, 128], strides = [1, 1]} : vector<15x128xf32> to vector<1x128xf32>
    %36 = vector.shape_cast %35 : vector<1x128xf32> to vector<1x1x128xf32>
    %37 = vector.broadcast %36 : vector<1x1x128xf32> to vector<2x8x128xf32>
    %38 = arith.mulf %34, %37 : vector<2x8x128xf32>
    %39 = arith.addf %33, %38 : vector<2x8x128xf32>
    %40 = vector.extract_strided_slice %8 {offsets = [0, 5, 0], sizes = [2, 8, 128], strides = [1, 1, 1]} : vector<2x22x128xf32> to vector<2x8x128xf32>
    %41 = vector.extract_strided_slice %10 {offsets = [5, 0], sizes = [1, 128], strides = [1, 1]} : vector<15x128xf32> to vector<1x128xf32>
    %42 = vector.shape_cast %41 : vector<1x128xf32> to vector<1x1x128xf32>
    %43 = vector.broadcast %42 : vector<1x1x128xf32> to vector<2x8x128xf32>
    %44 = arith.mulf %40, %43 : vector<2x8x128xf32>
    %45 = arith.addf %39, %44 : vector<2x8x128xf32>
    %46 = vector.extract_strided_slice %8 {offsets = [0, 6, 0], sizes = [2, 8, 128], strides = [1, 1, 1]} : vector<2x22x128xf32> to vector<2x8x128xf32>
    %47 = vector.extract_strided_slice %10 {offsets = [6, 0], sizes = [1, 128], strides = [1, 1]} : vector<15x128xf32> to vector<1x128xf32>
    %48 = vector.shape_cast %47 : vector<1x128xf32> to vector<1x1x128xf32>
    %49 = vector.broadcast %48 : vector<1x1x128xf32> to vector<2x8x128xf32>
    %50 = arith.mulf %46, %49 : vector<2x8x128xf32>
    %51 = arith.addf %45, %50 : vector<2x8x128xf32>
    %52 = vector.extract_strided_slice %8 {offsets = [0, 7, 0], sizes = [2, 8, 128], strides = [1, 1, 1]} : vector<2x22x128xf32> to vector<2x8x128xf32>
    %53 = vector.extract_strided_slice %10 {offsets = [7, 0], sizes = [1, 128], strides = [1, 1]} : vector<15x128xf32> to vector<1x128xf32>
    %54 = vector.shape_cast %53 : vector<1x128xf32> to vector<1x1x128xf32>
    %55 = vector.broadcast %54 : vector<1x1x128xf32> to vector<2x8x128xf32>
    %56 = arith.mulf %52, %55 : vector<2x8x128xf32>
    %57 = arith.addf %51, %56 : vector<2x8x128xf32>
    %58 = vector.extract_strided_slice %8 {offsets = [0, 8, 0], sizes = [2, 8, 128], strides = [1, 1, 1]} : vector<2x22x128xf32> to vector<2x8x128xf32>
    %59 = vector.extract_strided_slice %10 {offsets = [8, 0], sizes = [1, 128], strides = [1, 1]} : vector<15x128xf32> to vector<1x128xf32>
    %60 = vector.shape_cast %59 : vector<1x128xf32> to vector<1x1x128xf32>
    %61 = vector.broadcast %60 : vector<1x1x128xf32> to vector<2x8x128xf32>
    %62 = arith.mulf %58, %61 : vector<2x8x128xf32>
    %63 = arith.addf %57, %62 : vector<2x8x128xf32>
    %64 = vector.extract_strided_slice %8 {offsets = [0, 9, 0], sizes = [2, 8, 128], strides = [1, 1, 1]} : vector<2x22x128xf32> to vector<2x8x128xf32>
    %65 = vector.extract_strided_slice %10 {offsets = [9, 0], sizes = [1, 128], strides = [1, 1]} : vector<15x128xf32> to vector<1x128xf32>
    %66 = vector.shape_cast %65 : vector<1x128xf32> to vector<1x1x128xf32>
    %67 = vector.broadcast %66 : vector<1x1x128xf32> to vector<2x8x128xf32>
    %68 = arith.mulf %64, %67 : vector<2x8x128xf32>
    %69 = arith.addf %63, %68 : vector<2x8x128xf32>
    %70 = vector.extract_strided_slice %8 {offsets = [0, 10, 0], sizes = [2, 8, 128], strides = [1, 1, 1]} : vector<2x22x128xf32> to vector<2x8x128xf32>
    %71 = vector.extract_strided_slice %10 {offsets = [10, 0], sizes = [1, 128], strides = [1, 1]} : vector<15x128xf32> to vector<1x128xf32>
    %72 = vector.shape_cast %71 : vector<1x128xf32> to vector<1x1x128xf32>
    %73 = vector.broadcast %72 : vector<1x1x128xf32> to vector<2x8x128xf32>
    %74 = arith.mulf %70, %73 : vector<2x8x128xf32>
    %75 = arith.addf %69, %74 : vector<2x8x128xf32>
    %76 = vector.extract_strided_slice %8 {offsets = [0, 11, 0], sizes = [2, 8, 128], strides = [1, 1, 1]} : vector<2x22x128xf32> to vector<2x8x128xf32>
    %77 = vector.extract_strided_slice %10 {offsets = [11, 0], sizes = [1, 128], strides = [1, 1]} : vector<15x128xf32> to vector<1x128xf32>
    %78 = vector.shape_cast %77 : vector<1x128xf32> to vector<1x1x128xf32>
    %79 = vector.broadcast %78 : vector<1x1x128xf32> to vector<2x8x128xf32>
    %80 = arith.mulf %76, %79 : vector<2x8x128xf32>
    %81 = arith.addf %75, %80 : vector<2x8x128xf32>
    %82 = vector.extract_strided_slice %8 {offsets = [0, 12, 0], sizes = [2, 8, 128], strides = [1, 1, 1]} : vector<2x22x128xf32> to vector<2x8x128xf32>
    %83 = vector.extract_strided_slice %10 {offsets = [12, 0], sizes = [1, 128], strides = [1, 1]} : vector<15x128xf32> to vector<1x128xf32>
    %84 = vector.shape_cast %83 : vector<1x128xf32> to vector<1x1x128xf32>
    %85 = vector.broadcast %84 : vector<1x1x128xf32> to vector<2x8x128xf32>
    %86 = arith.mulf %82, %85 : vector<2x8x128xf32>
    %87 = arith.addf %81, %86 : vector<2x8x128xf32>
    %88 = vector.extract_strided_slice %8 {offsets = [0, 13, 0], sizes = [2, 8, 128], strides = [1, 1, 1]} : vector<2x22x128xf32> to vector<2x8x128xf32>
    %89 = vector.extract_strided_slice %10 {offsets = [13, 0], sizes = [1, 128], strides = [1, 1]} : vector<15x128xf32> to vector<1x128xf32>
    %90 = vector.shape_cast %89 : vector<1x128xf32> to vector<1x1x128xf32>
    %91 = vector.broadcast %90 : vector<1x1x128xf32> to vector<2x8x128xf32>
    %92 = arith.mulf %88, %91 : vector<2x8x128xf32>
    %93 = arith.addf %87, %92 : vector<2x8x128xf32>
    %94 = vector.extract_strided_slice %8 {offsets = [0, 14, 0], sizes = [2, 8, 128], strides = [1, 1, 1]} : vector<2x22x128xf32> to vector<2x8x128xf32>
    %95 = vector.extract_strided_slice %10 {offsets = [14, 0], sizes = [1, 128], strides = [1, 1]} : vector<15x128xf32> to vector<1x128xf32>
    %96 = vector.shape_cast %95 : vector<1x128xf32> to vector<1x1x128xf32>
    %97 = vector.broadcast %96 : vector<1x1x128xf32> to vector<2x8x128xf32>
    %98 = arith.mulf %94, %97 : vector<2x8x128xf32>
    %99 = arith.addf %93, %98 : vector<2x8x128xf32>
    %100 = vector.shape_cast %99 : vector<2x8x128xf32> to vector<16x128xf32>
    %c0_9 = arith.constant 0 : index
    %c0_10 = arith.constant 0 : index
    %c0_11 = arith.constant 0 : index
    %101 = vector.load %arg5[%c0_9, %c0_10, %c0_11] : memref<2x1x128xf32, #tpu.memory_space<vmem>>, vector<1x1x128xf32>
    %102 = vector.shape_cast %101 : vector<1x1x128xf32> to vector<1x128xf32>
    %103 = vector.broadcast %102 : vector<1x128xf32> to vector<16x128xf32>
    %104 = arith.addf %100, %103 : vector<16x128xf32>
    %cst_12 = arith.constant dense<0.000000e+00> : vector<128xf32>
    %105 = vector.multi_reduction <add>, %104, %cst_12 [0] : vector<16x128xf32> to vector<128xf32>
    %106 = vector.shape_cast %105 : vector<128xf32> to vector<1x128xf32>
    %107 = arith.mulf %104, %104 : vector<16x128xf32>
    %cst_13 = arith.constant dense<0.000000e+00> : vector<128xf32>
    %108 = vector.multi_reduction <add>, %107, %cst_13 [0] : vector<16x128xf32> to vector<128xf32>
    %109 = vector.shape_cast %108 : vector<128xf32> to vector<1x128xf32>
    %cst_14 = arith.constant 6.250000e-02 : f32
    %110 = vector.broadcast %cst_14 : f32 to vector<1x128xf32>
    %111 = arith.mulf %106, %110 : vector<1x128xf32>
    %cst_15 = arith.constant 6.250000e-02 : f32
    %112 = vector.broadcast %cst_15 : f32 to vector<1x128xf32>
    %113 = arith.mulf %109, %112 : vector<1x128xf32>
    %114 = arith.mulf %111, %111 : vector<1x128xf32>
    %115 = arith.subf %113, %114 : vector<1x128xf32>
    %116 = vector.broadcast %111 : vector<1x128xf32> to vector<16x128xf32>
    %117 = arith.subf %104, %116 : vector<16x128xf32>
    %cst_16 = arith.constant 9.99999974E-6 : f32
    %118 = vector.broadcast %cst_16 : f32 to vector<1x128xf32>
    %119 = arith.addf %115, %118 : vector<1x128xf32>
    %120 = math.rsqrt %119 : vector<1x128xf32>
    %121 = vector.broadcast %120 : vector<1x128xf32> to vector<16x128xf32>
    %122 = arith.mulf %117, %121 : vector<16x128xf32>
    %c0_17 = arith.constant 0 : index
    %c0_18 = arith.constant 0 : index
    %c0_19 = arith.constant 0 : index
    %123 = vector.load %arg6[%c0_17, %c0_18, %c0_19] : memref<2x1x128xf32, #tpu.memory_space<vmem>>, vector<1x1x128xf32>
    %124 = vector.shape_cast %123 : vector<1x1x128xf32> to vector<1x128xf32>
    %125 = vector.broadcast %124 : vector<1x128xf32> to vector<16x128xf32>
    %126 = arith.mulf %122, %125 : vector<16x128xf32>
    %c0_20 = arith.constant 0 : index
    %c0_21 = arith.constant 0 : index
    %c0_22 = arith.constant 0 : index
    %127 = vector.load %arg7[%c0_20, %c0_21, %c0_22] : memref<2x1x128xf32, #tpu.memory_space<vmem>>, vector<1x1x128xf32>
    %128 = vector.shape_cast %127 : vector<1x1x128xf32> to vector<1x128xf32>
    %129 = vector.broadcast %128 : vector<1x128xf32> to vector<16x128xf32>
    %130 = arith.addf %126, %129 : vector<16x128xf32>
    %c0_23 = arith.constant 0 : index
    %c0_24 = arith.constant 0 : index
    %c0_25 = arith.constant 0 : index
    %131 = vector.load %arg8[%c0_23, %c0_24, %c0_25] : memref<2x128x128xf32, #tpu.memory_space<vmem>>, vector<1x128x128xf32>
    %132 = vector.shape_cast %131 : vector<1x128x128xf32> to vector<128x128xf32>
    %cst_26 = arith.constant dense<0.000000e+00> : vector<16x128xf32>
    %133 = tpu.matmul %130, %132, %cst_26 {dimension_numbers = #tpu.dot_dimension_numbers<[1], [0], [0], [1], [0, 0, 1, 1], [], []>} : vector<16x128xf32>, vector<128x128xf32>, vector<16x128xf32> -> vector<16x128xf32>
    %c0_27 = arith.constant 0 : index
    %c0_28 = arith.constant 0 : index
    %c0_29 = arith.constant 0 : index
    %134 = vector.load %arg9[%c0_27, %c0_28, %c0_29] : memref<2x1x128xf32, #tpu.memory_space<vmem>>, vector<1x1x128xf32>
    %135 = vector.shape_cast %134 : vector<1x1x128xf32> to vector<1x128xf32>
    %136 = vector.broadcast %135 : vector<1x128xf32> to vector<16x128xf32>
    %137 = arith.addf %133, %136 : vector<16x128xf32>
    %cst_30 = arith.constant 5.000000e-01 : f32
    %138 = vector.broadcast %cst_30 : f32 to vector<16x128xf32>
    %139 = arith.mulf %138, %137 : vector<16x128xf32>
    %cst_31 = arith.constant 0.707106769 : f32
    %140 = vector.broadcast %cst_31 : f32 to vector<16x128xf32>
    %141 = arith.mulf %137, %140 : vector<16x128xf32>
    %142 = math.absf %141 : vector<16x128xf32>
    %cst_32 = arith.constant 0.327591091 : f32
    %143 = vector.broadcast %cst_32 : f32 to vector<16x128xf32>
    %144 = arith.mulf %143, %142 : vector<16x128xf32>
    %cst_33 = arith.constant 1.000000e+00 : f32
    %145 = vector.broadcast %cst_33 : f32 to vector<16x128xf32>
    %146 = arith.addf %145, %144 : vector<16x128xf32>
    %cst_34 = arith.constant 1.000000e+00 : f32
    %147 = vector.broadcast %cst_34 : f32 to vector<16x128xf32>
    %148 = arith.divf %147, %146 : vector<16x128xf32>
    %cst_35 = arith.constant 1.06140542 : f32
    %149 = vector.broadcast %cst_35 : f32 to vector<16x128xf32>
    %150 = arith.mulf %148, %149 : vector<16x128xf32>
    %cst_36 = arith.constant -1.45315206 : f32
    %151 = vector.broadcast %cst_36 : f32 to vector<16x128xf32>
    %152 = arith.addf %151, %150 : vector<16x128xf32>
    %153 = arith.mulf %148, %152 : vector<16x128xf32>
    %cst_37 = arith.constant 1.42141378 : f32
    %154 = vector.broadcast %cst_37 : f32 to vector<16x128xf32>
    %155 = arith.addf %154, %153 : vector<16x128xf32>
    %156 = arith.mulf %148, %155 : vector<16x128xf32>
    %cst_38 = arith.constant -0.284496725 : f32
    %157 = vector.broadcast %cst_38 : f32 to vector<16x128xf32>
    %158 = arith.addf %157, %156 : vector<16x128xf32>
    %159 = arith.mulf %148, %158 : vector<16x128xf32>
    %cst_39 = arith.constant 0.254829586 : f32
    %160 = vector.broadcast %cst_39 : f32 to vector<16x128xf32>
    %161 = arith.addf %160, %159 : vector<16x128xf32>
    %162 = arith.mulf %148, %161 : vector<16x128xf32>
    %cst_40 = arith.constant 0.000000e+00 : f32
    %163 = vector.broadcast %cst_40 : f32 to vector<16x128xf32>
    %164 = arith.subf %163, %142 : vector<16x128xf32>
    %165 = arith.mulf %164, %142 : vector<16x128xf32>
    %166 = math.exp %165 : vector<16x128xf32>
    %167 = arith.mulf %162, %166 : vector<16x128xf32>
    %cst_41 = arith.constant 1.000000e+00 : f32
    %168 = vector.broadcast %cst_41 : f32 to vector<16x128xf32>
    %169 = arith.subf %168, %167 : vector<16x128xf32>
    %cst_42 = arith.constant 0.000000e+00 : f32
    %170 = vector.broadcast %cst_42 : f32 to vector<16x128xf32>
    %171 = arith.cmpf oge, %141, %170 : vector<16x128xf32>
    %cst_43 = arith.constant 0.000000e+00 : f32
    %172 = vector.broadcast %cst_43 : f32 to vector<16x128xf32>
    %173 = arith.subf %172, %169 : vector<16x128xf32>
    %174 = arith.select %171, %169, %173 : vector<16x128xi1>, vector<16x128xf32>
    %cst_44 = arith.constant 1.000000e+00 : f32
    %175 = vector.broadcast %cst_44 : f32 to vector<16x128xf32>
    %176 = arith.addf %175, %174 : vector<16x128xf32>
    %177 = arith.mulf %139, %176 : vector<16x128xf32>
    %c0_45 = arith.constant 0 : index
    %c0_46 = arith.constant 0 : index
    %c0_47 = arith.constant 0 : index
    %178 = vector.load %arg10[%c0_45, %c0_46, %c0_47] : memref<2x128x128xf32, #tpu.memory_space<vmem>>, vector<1x128x128xf32>
    %179 = vector.shape_cast %178 : vector<1x128x128xf32> to vector<128x128xf32>
    %cst_48 = arith.constant dense<0.000000e+00> : vector<16x128xf32>
    %180 = tpu.matmul %177, %179, %cst_48 {dimension_numbers = #tpu.dot_dimension_numbers<[1], [0], [0], [1], [0, 0, 1, 1], [], []>} : vector<16x128xf32>, vector<128x128xf32>, vector<16x128xf32> -> vector<16x128xf32>
    %c0_49 = arith.constant 0 : index
    %c0_50 = arith.constant 0 : index
    %c0_51 = arith.constant 0 : index
    %181 = vector.load %arg11[%c0_49, %c0_50, %c0_51] : memref<2x1x128xf32, #tpu.memory_space<vmem>>, vector<1x1x128xf32>
    %182 = vector.shape_cast %181 : vector<1x1x128xf32> to vector<1x128xf32>
    %183 = vector.broadcast %182 : vector<1x128xf32> to vector<16x128xf32>
    %184 = arith.addf %180, %183 : vector<16x128xf32>
    %c0_52 = arith.constant 0 : index
    %c0_53 = arith.constant 0 : index
    %c0_54 = arith.constant 0 : index
    %185 = vector.load %arg12[%c0_52, %c0_53, %c0_54] : memref<2x128x128xf32, #tpu.memory_space<vmem>>, vector<1x128x128xf32>
    %186 = vector.shape_cast %185 : vector<1x128x128xf32> to vector<128x128xf32>
    %cst_55 = arith.constant dense<0.000000e+00> : vector<16x128xf32>
    %187 = tpu.matmul %184, %186, %cst_55 {dimension_numbers = #tpu.dot_dimension_numbers<[1], [0], [0], [1], [0, 0, 1, 1], [], []>} : vector<16x128xf32>, vector<128x128xf32>, vector<16x128xf32> -> vector<16x128xf32>
    %c0_56 = arith.constant 0 : index
    %c0_57 = arith.constant 0 : index
    %c0_58 = arith.constant 0 : index
    %188 = vector.load %arg13[%c0_56, %c0_57, %c0_58] : memref<2x1x128xf32, #tpu.memory_space<vmem>>, vector<1x1x128xf32>
    %189 = vector.shape_cast %188 : vector<1x1x128xf32> to vector<1x128xf32>
    %190 = vector.broadcast %189 : vector<1x128xf32> to vector<16x128xf32>
    %191 = arith.addf %187, %190 : vector<16x128xf32>
    %cst_59 = arith.constant 5.000000e-01 : f32
    %192 = vector.broadcast %cst_59 : f32 to vector<16x128xf32>
    %193 = arith.mulf %192, %191 : vector<16x128xf32>
    %cst_60 = arith.constant 0.707106769 : f32
    %194 = vector.broadcast %cst_60 : f32 to vector<16x128xf32>
    %195 = arith.mulf %191, %194 : vector<16x128xf32>
    %196 = math.absf %195 : vector<16x128xf32>
    %cst_61 = arith.constant 0.327591091 : f32
    %197 = vector.broadcast %cst_61 : f32 to vector<16x128xf32>
    %198 = arith.mulf %197, %196 : vector<16x128xf32>
    %cst_62 = arith.constant 1.000000e+00 : f32
    %199 = vector.broadcast %cst_62 : f32 to vector<16x128xf32>
    %200 = arith.addf %199, %198 : vector<16x128xf32>
    %cst_63 = arith.constant 1.000000e+00 : f32
    %201 = vector.broadcast %cst_63 : f32 to vector<16x128xf32>
    %202 = arith.divf %201, %200 : vector<16x128xf32>
    %cst_64 = arith.constant 1.06140542 : f32
    %203 = vector.broadcast %cst_64 : f32 to vector<16x128xf32>
    %204 = arith.mulf %202, %203 : vector<16x128xf32>
    %cst_65 = arith.constant -1.45315206 : f32
    %205 = vector.broadcast %cst_65 : f32 to vector<16x128xf32>
    %206 = arith.addf %205, %204 : vector<16x128xf32>
    %207 = arith.mulf %202, %206 : vector<16x128xf32>
    %cst_66 = arith.constant 1.42141378 : f32
    %208 = vector.broadcast %cst_66 : f32 to vector<16x128xf32>
    %209 = arith.addf %208, %207 : vector<16x128xf32>
    %210 = arith.mulf %202, %209 : vector<16x128xf32>
    %cst_67 = arith.constant -0.284496725 : f32
    %211 = vector.broadcast %cst_67 : f32 to vector<16x128xf32>
    %212 = arith.addf %211, %210 : vector<16x128xf32>
    %213 = arith.mulf %202, %212 : vector<16x128xf32>
    %cst_68 = arith.constant 0.254829586 : f32
    %214 = vector.broadcast %cst_68 : f32 to vector<16x128xf32>
    %215 = arith.addf %214, %213 : vector<16x128xf32>
    %216 = arith.mulf %202, %215 : vector<16x128xf32>
    %cst_69 = arith.constant 0.000000e+00 : f32
    %217 = vector.broadcast %cst_69 : f32 to vector<16x128xf32>
    %218 = arith.subf %217, %196 : vector<16x128xf32>
    %219 = arith.mulf %218, %196 : vector<16x128xf32>
    %220 = math.exp %219 : vector<16x128xf32>
    %221 = arith.mulf %216, %220 : vector<16x128xf32>
    %cst_70 = arith.constant 1.000000e+00 : f32
    %222 = vector.broadcast %cst_70 : f32 to vector<16x128xf32>
    %223 = arith.subf %222, %221 : vector<16x128xf32>
    %cst_71 = arith.constant 0.000000e+00 : f32
    %224 = vector.broadcast %cst_71 : f32 to vector<16x128xf32>
    %225 = arith.cmpf oge, %195, %224 : vector<16x128xf32>
    %cst_72 = arith.constant 0.000000e+00 : f32
    %226 = vector.broadcast %cst_72 : f32 to vector<16x128xf32>
    %227 = arith.subf %226, %223 : vector<16x128xf32>
    %228 = arith.select %225, %223, %227 : vector<16x128xi1>, vector<16x128xf32>
    %cst_73 = arith.constant 1.000000e+00 : f32
    %229 = vector.broadcast %cst_73 : f32 to vector<16x128xf32>
    %230 = arith.addf %229, %228 : vector<16x128xf32>
    %231 = arith.mulf %193, %230 : vector<16x128xf32>
    %c0_74 = arith.constant 0 : index
    %c0_75 = arith.constant 0 : index
    %c0_76 = arith.constant 0 : index
    %232 = vector.load %arg14[%c0_74, %c0_75, %c0_76] : memref<2x128x128xf32, #tpu.memory_space<vmem>>, vector<1x128x128xf32>
    %233 = vector.shape_cast %232 : vector<1x128x128xf32> to vector<128x128xf32>
    %cst_77 = arith.constant dense<0.000000e+00> : vector<16x128xf32>
    %234 = tpu.matmul %231, %233, %cst_77 {dimension_numbers = #tpu.dot_dimension_numbers<[1], [0], [0], [1], [0, 0, 1, 1], [], []>} : vector<16x128xf32>, vector<128x128xf32>, vector<16x128xf32> -> vector<16x128xf32>
    %c0_78 = arith.constant 0 : index
    %c0_79 = arith.constant 0 : index
    %c0_80 = arith.constant 0 : index
    %235 = vector.load %arg15[%c0_78, %c0_79, %c0_80] : memref<2x1x128xf32, #tpu.memory_space<vmem>>, vector<1x1x128xf32>
    %236 = vector.shape_cast %235 : vector<1x1x128xf32> to vector<1x128xf32>
    %237 = vector.broadcast %236 : vector<1x128xf32> to vector<16x128xf32>
    %238 = arith.addf %234, %237 : vector<16x128xf32>
    %239 = arith.addf %5, %238 : vector<16x128xf32>
    %240 = vector.shape_cast %239 : vector<16x128xf32> to vector<2x8x128xf32>
    %cst_81 = arith.constant 0.000000e+00 : f32
    %241 = vector.broadcast %cst_81 : f32 to vector<2x7x128xf32>
    %242 = tpu.concatenate %241, %240, %241 in 1 : vector<2x7x128xf32>, vector<2x8x128xf32>, vector<2x7x128xf32> -> vector<2x22x128xf32>
    %c1 = arith.constant 1 : index
    %c0_82 = arith.constant 0 : index
    %c0_83 = arith.constant 0 : index
    %243 = vector.load %arg4[%c1, %c0_82, %c0_83] : memref<2x15x128xf32, #tpu.memory_space<vmem>>, vector<1x15x128xf32>
    %244 = vector.shape_cast %243 : vector<1x15x128xf32> to vector<15x128xf32>
    %245 = vector.extract_strided_slice %242 {offsets = [0, 0, 0], sizes = [2, 8, 128], strides = [1, 1, 1]} : vector<2x22x128xf32> to vector<2x8x128xf32>
    %246 = vector.extract_strided_slice %244 {offsets = [0, 0], sizes = [1, 128], strides = [1, 1]} : vector<15x128xf32> to vector<1x128xf32>
    %247 = vector.shape_cast %246 : vector<1x128xf32> to vector<1x1x128xf32>
    %248 = vector.broadcast %247 : vector<1x1x128xf32> to vector<2x8x128xf32>
    %249 = arith.mulf %245, %248 : vector<2x8x128xf32>
    %250 = vector.extract_strided_slice %242 {offsets = [0, 1, 0], sizes = [2, 8, 128], strides = [1, 1, 1]} : vector<2x22x128xf32> to vector<2x8x128xf32>
    %251 = vector.extract_strided_slice %244 {offsets = [1, 0], sizes = [1, 128], strides = [1, 1]} : vector<15x128xf32> to vector<1x128xf32>
    %252 = vector.shape_cast %251 : vector<1x128xf32> to vector<1x1x128xf32>
    %253 = vector.broadcast %252 : vector<1x1x128xf32> to vector<2x8x128xf32>
    %254 = arith.mulf %250, %253 : vector<2x8x128xf32>
    %255 = arith.addf %249, %254 : vector<2x8x128xf32>
    %256 = vector.extract_strided_slice %242 {offsets = [0, 2, 0], sizes = [2, 8, 128], strides = [1, 1, 1]} : vector<2x22x128xf32> to vector<2x8x128xf32>
    %257 = vector.extract_strided_slice %244 {offsets = [2, 0], sizes = [1, 128], strides = [1, 1]} : vector<15x128xf32> to vector<1x128xf32>
    %258 = vector.shape_cast %257 : vector<1x128xf32> to vector<1x1x128xf32>
    %259 = vector.broadcast %258 : vector<1x1x128xf32> to vector<2x8x128xf32>
    %260 = arith.mulf %256, %259 : vector<2x8x128xf32>
    %261 = arith.addf %255, %260 : vector<2x8x128xf32>
    %262 = vector.extract_strided_slice %242 {offsets = [0, 3, 0], sizes = [2, 8, 128], strides = [1, 1, 1]} : vector<2x22x128xf32> to vector<2x8x128xf32>
    %263 = vector.extract_strided_slice %244 {offsets = [3, 0], sizes = [1, 128], strides = [1, 1]} : vector<15x128xf32> to vector<1x128xf32>
    %264 = vector.shape_cast %263 : vector<1x128xf32> to vector<1x1x128xf32>
    %265 = vector.broadcast %264 : vector<1x1x128xf32> to vector<2x8x128xf32>
    %266 = arith.mulf %262, %265 : vector<2x8x128xf32>
    %267 = arith.addf %261, %266 : vector<2x8x128xf32>
    %268 = vector.extract_strided_slice %242 {offsets = [0, 4, 0], sizes = [2, 8, 128], strides = [1, 1, 1]} : vector<2x22x128xf32> to vector<2x8x128xf32>
    %269 = vector.extract_strided_slice %244 {offsets = [4, 0], sizes = [1, 128], strides = [1, 1]} : vector<15x128xf32> to vector<1x128xf32>
    %270 = vector.shape_cast %269 : vector<1x128xf32> to vector<1x1x128xf32>
    %271 = vector.broadcast %270 : vector<1x1x128xf32> to vector<2x8x128xf32>
    %272 = arith.mulf %268, %271 : vector<2x8x128xf32>
    %273 = arith.addf %267, %272 : vector<2x8x128xf32>
    %274 = vector.extract_strided_slice %242 {offsets = [0, 5, 0], sizes = [2, 8, 128], strides = [1, 1, 1]} : vector<2x22x128xf32> to vector<2x8x128xf32>
    %275 = vector.extract_strided_slice %244 {offsets = [5, 0], sizes = [1, 128], strides = [1, 1]} : vector<15x128xf32> to vector<1x128xf32>
    %276 = vector.shape_cast %275 : vector<1x128xf32> to vector<1x1x128xf32>
    %277 = vector.broadcast %276 : vector<1x1x128xf32> to vector<2x8x128xf32>
    %278 = arith.mulf %274, %277 : vector<2x8x128xf32>
    %279 = arith.addf %273, %278 : vector<2x8x128xf32>
    %280 = vector.extract_strided_slice %242 {offsets = [0, 6, 0], sizes = [2, 8, 128], strides = [1, 1, 1]} : vector<2x22x128xf32> to vector<2x8x128xf32>
    %281 = vector.extract_strided_slice %244 {offsets = [6, 0], sizes = [1, 128], strides = [1, 1]} : vector<15x128xf32> to vector<1x128xf32>
    %282 = vector.shape_cast %281 : vector<1x128xf32> to vector<1x1x128xf32>
    %283 = vector.broadcast %282 : vector<1x1x128xf32> to vector<2x8x128xf32>
    %284 = arith.mulf %280, %283 : vector<2x8x128xf32>
    %285 = arith.addf %279, %284 : vector<2x8x128xf32>
    %286 = vector.extract_strided_slice %242 {offsets = [0, 7, 0], sizes = [2, 8, 128], strides = [1, 1, 1]} : vector<2x22x128xf32> to vector<2x8x128xf32>
    %287 = vector.extract_strided_slice %244 {offsets = [7, 0], sizes = [1, 128], strides = [1, 1]} : vector<15x128xf32> to vector<1x128xf32>
    %288 = vector.shape_cast %287 : vector<1x128xf32> to vector<1x1x128xf32>
    %289 = vector.broadcast %288 : vector<1x1x128xf32> to vector<2x8x128xf32>
    %290 = arith.mulf %286, %289 : vector<2x8x128xf32>
    %291 = arith.addf %285, %290 : vector<2x8x128xf32>
    %292 = vector.extract_strided_slice %242 {offsets = [0, 8, 0], sizes = [2, 8, 128], strides = [1, 1, 1]} : vector<2x22x128xf32> to vector<2x8x128xf32>
    %293 = vector.extract_strided_slice %244 {offsets = [8, 0], sizes = [1, 128], strides = [1, 1]} : vector<15x128xf32> to vector<1x128xf32>
    %294 = vector.shape_cast %293 : vector<1x128xf32> to vector<1x1x128xf32>
    %295 = vector.broadcast %294 : vector<1x1x128xf32> to vector<2x8x128xf32>
    %296 = arith.mulf %292, %295 : vector<2x8x128xf32>
    %297 = arith.addf %291, %296 : vector<2x8x128xf32>
    %298 = vector.extract_strided_slice %242 {offsets = [0, 9, 0], sizes = [2, 8, 128], strides = [1, 1, 1]} : vector<2x22x128xf32> to vector<2x8x128xf32>
    %299 = vector.extract_strided_slice %244 {offsets = [9, 0], sizes = [1, 128], strides = [1, 1]} : vector<15x128xf32> to vector<1x128xf32>
    %300 = vector.shape_cast %299 : vector<1x128xf32> to vector<1x1x128xf32>
    %301 = vector.broadcast %300 : vector<1x1x128xf32> to vector<2x8x128xf32>
    %302 = arith.mulf %298, %301 : vector<2x8x128xf32>
    %303 = arith.addf %297, %302 : vector<2x8x128xf32>
    %304 = vector.extract_strided_slice %242 {offsets = [0, 10, 0], sizes = [2, 8, 128], strides = [1, 1, 1]} : vector<2x22x128xf32> to vector<2x8x128xf32>
    %305 = vector.extract_strided_slice %244 {offsets = [10, 0], sizes = [1, 128], strides = [1, 1]} : vector<15x128xf32> to vector<1x128xf32>
    %306 = vector.shape_cast %305 : vector<1x128xf32> to vector<1x1x128xf32>
    %307 = vector.broadcast %306 : vector<1x1x128xf32> to vector<2x8x128xf32>
    %308 = arith.mulf %304, %307 : vector<2x8x128xf32>
    %309 = arith.addf %303, %308 : vector<2x8x128xf32>
    %310 = vector.extract_strided_slice %242 {offsets = [0, 11, 0], sizes = [2, 8, 128], strides = [1, 1, 1]} : vector<2x22x128xf32> to vector<2x8x128xf32>
    %311 = vector.extract_strided_slice %244 {offsets = [11, 0], sizes = [1, 128], strides = [1, 1]} : vector<15x128xf32> to vector<1x128xf32>
    %312 = vector.shape_cast %311 : vector<1x128xf32> to vector<1x1x128xf32>
    %313 = vector.broadcast %312 : vector<1x1x128xf32> to vector<2x8x128xf32>
    %314 = arith.mulf %310, %313 : vector<2x8x128xf32>
    %315 = arith.addf %309, %314 : vector<2x8x128xf32>
    %316 = vector.extract_strided_slice %242 {offsets = [0, 12, 0], sizes = [2, 8, 128], strides = [1, 1, 1]} : vector<2x22x128xf32> to vector<2x8x128xf32>
    %317 = vector.extract_strided_slice %244 {offsets = [12, 0], sizes = [1, 128], strides = [1, 1]} : vector<15x128xf32> to vector<1x128xf32>
    %318 = vector.shape_cast %317 : vector<1x128xf32> to vector<1x1x128xf32>
    %319 = vector.broadcast %318 : vector<1x1x128xf32> to vector<2x8x128xf32>
    %320 = arith.mulf %316, %319 : vector<2x8x128xf32>
    %321 = arith.addf %315, %320 : vector<2x8x128xf32>
    %322 = vector.extract_strided_slice %242 {offsets = [0, 13, 0], sizes = [2, 8, 128], strides = [1, 1, 1]} : vector<2x22x128xf32> to vector<2x8x128xf32>
    %323 = vector.extract_strided_slice %244 {offsets = [13, 0], sizes = [1, 128], strides = [1, 1]} : vector<15x128xf32> to vector<1x128xf32>
    %324 = vector.shape_cast %323 : vector<1x128xf32> to vector<1x1x128xf32>
    %325 = vector.broadcast %324 : vector<1x1x128xf32> to vector<2x8x128xf32>
    %326 = arith.mulf %322, %325 : vector<2x8x128xf32>
    %327 = arith.addf %321, %326 : vector<2x8x128xf32>
    %328 = vector.extract_strided_slice %242 {offsets = [0, 14, 0], sizes = [2, 8, 128], strides = [1, 1, 1]} : vector<2x22x128xf32> to vector<2x8x128xf32>
    %329 = vector.extract_strided_slice %244 {offsets = [14, 0], sizes = [1, 128], strides = [1, 1]} : vector<15x128xf32> to vector<1x128xf32>
    %330 = vector.shape_cast %329 : vector<1x128xf32> to vector<1x1x128xf32>
    %331 = vector.broadcast %330 : vector<1x1x128xf32> to vector<2x8x128xf32>
    %332 = arith.mulf %328, %331 : vector<2x8x128xf32>
    %333 = arith.addf %327, %332 : vector<2x8x128xf32>
    %334 = vector.shape_cast %333 : vector<2x8x128xf32> to vector<16x128xf32>
    %c1_84 = arith.constant 1 : index
    %c0_85 = arith.constant 0 : index
    %c0_86 = arith.constant 0 : index
    %335 = vector.load %arg5[%c1_84, %c0_85, %c0_86] : memref<2x1x128xf32, #tpu.memory_space<vmem>>, vector<1x1x128xf32>
    %336 = vector.shape_cast %335 : vector<1x1x128xf32> to vector<1x128xf32>
    %337 = vector.broadcast %336 : vector<1x128xf32> to vector<16x128xf32>
    %338 = arith.addf %334, %337 : vector<16x128xf32>
    %cst_87 = arith.constant dense<0.000000e+00> : vector<128xf32>
    %339 = vector.multi_reduction <add>, %338, %cst_87 [0] : vector<16x128xf32> to vector<128xf32>
    %340 = vector.shape_cast %339 : vector<128xf32> to vector<1x128xf32>
    %341 = arith.mulf %338, %338 : vector<16x128xf32>
    %cst_88 = arith.constant dense<0.000000e+00> : vector<128xf32>
    %342 = vector.multi_reduction <add>, %341, %cst_88 [0] : vector<16x128xf32> to vector<128xf32>
    %343 = vector.shape_cast %342 : vector<128xf32> to vector<1x128xf32>
    %cst_89 = arith.constant 6.250000e-02 : f32
    %344 = vector.broadcast %cst_89 : f32 to vector<1x128xf32>
    %345 = arith.mulf %340, %344 : vector<1x128xf32>
    %cst_90 = arith.constant 6.250000e-02 : f32
    %346 = vector.broadcast %cst_90 : f32 to vector<1x128xf32>
    %347 = arith.mulf %343, %346 : vector<1x128xf32>
    %348 = arith.mulf %345, %345 : vector<1x128xf32>
    %349 = arith.subf %347, %348 : vector<1x128xf32>
    %350 = vector.broadcast %345 : vector<1x128xf32> to vector<16x128xf32>
    %351 = arith.subf %338, %350 : vector<16x128xf32>
    %cst_91 = arith.constant 9.99999974E-6 : f32
    %352 = vector.broadcast %cst_91 : f32 to vector<1x128xf32>
    %353 = arith.addf %349, %352 : vector<1x128xf32>
    %354 = math.rsqrt %353 : vector<1x128xf32>
    %355 = vector.broadcast %354 : vector<1x128xf32> to vector<16x128xf32>
    %356 = arith.mulf %351, %355 : vector<16x128xf32>
    %c1_92 = arith.constant 1 : index
    %c0_93 = arith.constant 0 : index
    %c0_94 = arith.constant 0 : index
    %357 = vector.load %arg6[%c1_92, %c0_93, %c0_94] : memref<2x1x128xf32, #tpu.memory_space<vmem>>, vector<1x1x128xf32>
    %358 = vector.shape_cast %357 : vector<1x1x128xf32> to vector<1x128xf32>
    %359 = vector.broadcast %358 : vector<1x128xf32> to vector<16x128xf32>
    %360 = arith.mulf %356, %359 : vector<16x128xf32>
    %c1_95 = arith.constant 1 : index
    %c0_96 = arith.constant 0 : index
    %c0_97 = arith.constant 0 : index
    %361 = vector.load %arg7[%c1_95, %c0_96, %c0_97] : memref<2x1x128xf32, #tpu.memory_space<vmem>>, vector<1x1x128xf32>
    %362 = vector.shape_cast %361 : vector<1x1x128xf32> to vector<1x128xf32>
    %363 = vector.broadcast %362 : vector<1x128xf32> to vector<16x128xf32>
    %364 = arith.addf %360, %363 : vector<16x128xf32>
    %c1_98 = arith.constant 1 : index
    %c0_99 = arith.constant 0 : index
    %c0_100 = arith.constant 0 : index
    %365 = vector.load %arg8[%c1_98, %c0_99, %c0_100] : memref<2x128x128xf32, #tpu.memory_space<vmem>>, vector<1x128x128xf32>
    %366 = vector.shape_cast %365 : vector<1x128x128xf32> to vector<128x128xf32>
    %cst_101 = arith.constant dense<0.000000e+00> : vector<16x128xf32>
    %367 = tpu.matmul %364, %366, %cst_101 {dimension_numbers = #tpu.dot_dimension_numbers<[1], [0], [0], [1], [0, 0, 1, 1], [], []>} : vector<16x128xf32>, vector<128x128xf32>, vector<16x128xf32> -> vector<16x128xf32>
    %c1_102 = arith.constant 1 : index
    %c0_103 = arith.constant 0 : index
    %c0_104 = arith.constant 0 : index
    %368 = vector.load %arg9[%c1_102, %c0_103, %c0_104] : memref<2x1x128xf32, #tpu.memory_space<vmem>>, vector<1x1x128xf32>
    %369 = vector.shape_cast %368 : vector<1x1x128xf32> to vector<1x128xf32>
    %370 = vector.broadcast %369 : vector<1x128xf32> to vector<16x128xf32>
    %371 = arith.addf %367, %370 : vector<16x128xf32>
    %cst_105 = arith.constant 5.000000e-01 : f32
    %372 = vector.broadcast %cst_105 : f32 to vector<16x128xf32>
    %373 = arith.mulf %372, %371 : vector<16x128xf32>
    %cst_106 = arith.constant 0.707106769 : f32
    %374 = vector.broadcast %cst_106 : f32 to vector<16x128xf32>
    %375 = arith.mulf %371, %374 : vector<16x128xf32>
    %376 = math.absf %375 : vector<16x128xf32>
    %cst_107 = arith.constant 0.327591091 : f32
    %377 = vector.broadcast %cst_107 : f32 to vector<16x128xf32>
    %378 = arith.mulf %377, %376 : vector<16x128xf32>
    %cst_108 = arith.constant 1.000000e+00 : f32
    %379 = vector.broadcast %cst_108 : f32 to vector<16x128xf32>
    %380 = arith.addf %379, %378 : vector<16x128xf32>
    %cst_109 = arith.constant 1.000000e+00 : f32
    %381 = vector.broadcast %cst_109 : f32 to vector<16x128xf32>
    %382 = arith.divf %381, %380 : vector<16x128xf32>
    %cst_110 = arith.constant 1.06140542 : f32
    %383 = vector.broadcast %cst_110 : f32 to vector<16x128xf32>
    %384 = arith.mulf %382, %383 : vector<16x128xf32>
    %cst_111 = arith.constant -1.45315206 : f32
    %385 = vector.broadcast %cst_111 : f32 to vector<16x128xf32>
    %386 = arith.addf %385, %384 : vector<16x128xf32>
    %387 = arith.mulf %382, %386 : vector<16x128xf32>
    %cst_112 = arith.constant 1.42141378 : f32
    %388 = vector.broadcast %cst_112 : f32 to vector<16x128xf32>
    %389 = arith.addf %388, %387 : vector<16x128xf32>
    %390 = arith.mulf %382, %389 : vector<16x128xf32>
    %cst_113 = arith.constant -0.284496725 : f32
    %391 = vector.broadcast %cst_113 : f32 to vector<16x128xf32>
    %392 = arith.addf %391, %390 : vector<16x128xf32>
    %393 = arith.mulf %382, %392 : vector<16x128xf32>
    %cst_114 = arith.constant 0.254829586 : f32
    %394 = vector.broadcast %cst_114 : f32 to vector<16x128xf32>
    %395 = arith.addf %394, %393 : vector<16x128xf32>
    %396 = arith.mulf %382, %395 : vector<16x128xf32>
    %cst_115 = arith.constant 0.000000e+00 : f32
    %397 = vector.broadcast %cst_115 : f32 to vector<16x128xf32>
    %398 = arith.subf %397, %376 : vector<16x128xf32>
    %399 = arith.mulf %398, %376 : vector<16x128xf32>
    %400 = math.exp %399 : vector<16x128xf32>
    %401 = arith.mulf %396, %400 : vector<16x128xf32>
    %cst_116 = arith.constant 1.000000e+00 : f32
    %402 = vector.broadcast %cst_116 : f32 to vector<16x128xf32>
    %403 = arith.subf %402, %401 : vector<16x128xf32>
    %cst_117 = arith.constant 0.000000e+00 : f32
    %404 = vector.broadcast %cst_117 : f32 to vector<16x128xf32>
    %405 = arith.cmpf oge, %375, %404 : vector<16x128xf32>
    %cst_118 = arith.constant 0.000000e+00 : f32
    %406 = vector.broadcast %cst_118 : f32 to vector<16x128xf32>
    %407 = arith.subf %406, %403 : vector<16x128xf32>
    %408 = arith.select %405, %403, %407 : vector<16x128xi1>, vector<16x128xf32>
    %cst_119 = arith.constant 1.000000e+00 : f32
    %409 = vector.broadcast %cst_119 : f32 to vector<16x128xf32>
    %410 = arith.addf %409, %408 : vector<16x128xf32>
    %411 = arith.mulf %373, %410 : vector<16x128xf32>
    %c1_120 = arith.constant 1 : index
    %c0_121 = arith.constant 0 : index
    %c0_122 = arith.constant 0 : index
    %412 = vector.load %arg10[%c1_120, %c0_121, %c0_122] : memref<2x128x128xf32, #tpu.memory_space<vmem>>, vector<1x128x128xf32>
    %413 = vector.shape_cast %412 : vector<1x128x128xf32> to vector<128x128xf32>
    %cst_123 = arith.constant dense<0.000000e+00> : vector<16x128xf32>
    %414 = tpu.matmul %411, %413, %cst_123 {dimension_numbers = #tpu.dot_dimension_numbers<[1], [0], [0], [1], [0, 0, 1, 1], [], []>} : vector<16x128xf32>, vector<128x128xf32>, vector<16x128xf32> -> vector<16x128xf32>
    %c1_124 = arith.constant 1 : index
    %c0_125 = arith.constant 0 : index
    %c0_126 = arith.constant 0 : index
    %415 = vector.load %arg11[%c1_124, %c0_125, %c0_126] : memref<2x1x128xf32, #tpu.memory_space<vmem>>, vector<1x1x128xf32>
    %416 = vector.shape_cast %415 : vector<1x1x128xf32> to vector<1x128xf32>
    %417 = vector.broadcast %416 : vector<1x128xf32> to vector<16x128xf32>
    %418 = arith.addf %414, %417 : vector<16x128xf32>
    %c1_127 = arith.constant 1 : index
    %c0_128 = arith.constant 0 : index
    %c0_129 = arith.constant 0 : index
    %419 = vector.load %arg12[%c1_127, %c0_128, %c0_129] : memref<2x128x128xf32, #tpu.memory_space<vmem>>, vector<1x128x128xf32>
    %420 = vector.shape_cast %419 : vector<1x128x128xf32> to vector<128x128xf32>
    %cst_130 = arith.constant dense<0.000000e+00> : vector<16x128xf32>
    %421 = tpu.matmul %418, %420, %cst_130 {dimension_numbers = #tpu.dot_dimension_numbers<[1], [0], [0], [1], [0, 0, 1, 1], [], []>} : vector<16x128xf32>, vector<128x128xf32>, vector<16x128xf32> -> vector<16x128xf32>
    %c1_131 = arith.constant 1 : index
    %c0_132 = arith.constant 0 : index
    %c0_133 = arith.constant 0 : index
    %422 = vector.load %arg13[%c1_131, %c0_132, %c0_133] : memref<2x1x128xf32, #tpu.memory_space<vmem>>, vector<1x1x128xf32>
    %423 = vector.shape_cast %422 : vector<1x1x128xf32> to vector<1x128xf32>
    %424 = vector.broadcast %423 : vector<1x128xf32> to vector<16x128xf32>
    %425 = arith.addf %421, %424 : vector<16x128xf32>
    %cst_134 = arith.constant 5.000000e-01 : f32
    %426 = vector.broadcast %cst_134 : f32 to vector<16x128xf32>
    %427 = arith.mulf %426, %425 : vector<16x128xf32>
    %cst_135 = arith.constant 0.707106769 : f32
    %428 = vector.broadcast %cst_135 : f32 to vector<16x128xf32>
    %429 = arith.mulf %425, %428 : vector<16x128xf32>
    %430 = math.absf %429 : vector<16x128xf32>
    %cst_136 = arith.constant 0.327591091 : f32
    %431 = vector.broadcast %cst_136 : f32 to vector<16x128xf32>
    %432 = arith.mulf %431, %430 : vector<16x128xf32>
    %cst_137 = arith.constant 1.000000e+00 : f32
    %433 = vector.broadcast %cst_137 : f32 to vector<16x128xf32>
    %434 = arith.addf %433, %432 : vector<16x128xf32>
    %cst_138 = arith.constant 1.000000e+00 : f32
    %435 = vector.broadcast %cst_138 : f32 to vector<16x128xf32>
    %436 = arith.divf %435, %434 : vector<16x128xf32>
    %cst_139 = arith.constant 1.06140542 : f32
    %437 = vector.broadcast %cst_139 : f32 to vector<16x128xf32>
    %438 = arith.mulf %436, %437 : vector<16x128xf32>
    %cst_140 = arith.constant -1.45315206 : f32
    %439 = vector.broadcast %cst_140 : f32 to vector<16x128xf32>
    %440 = arith.addf %439, %438 : vector<16x128xf32>
    %441 = arith.mulf %436, %440 : vector<16x128xf32>
    %cst_141 = arith.constant 1.42141378 : f32
    %442 = vector.broadcast %cst_141 : f32 to vector<16x128xf32>
    %443 = arith.addf %442, %441 : vector<16x128xf32>
    %444 = arith.mulf %436, %443 : vector<16x128xf32>
    %cst_142 = arith.constant -0.284496725 : f32
    %445 = vector.broadcast %cst_142 : f32 to vector<16x128xf32>
    %446 = arith.addf %445, %444 : vector<16x128xf32>
    %447 = arith.mulf %436, %446 : vector<16x128xf32>
    %cst_143 = arith.constant 0.254829586 : f32
    %448 = vector.broadcast %cst_143 : f32 to vector<16x128xf32>
    %449 = arith.addf %448, %447 : vector<16x128xf32>
    %450 = arith.mulf %436, %449 : vector<16x128xf32>
    %cst_144 = arith.constant 0.000000e+00 : f32
    %451 = vector.broadcast %cst_144 : f32 to vector<16x128xf32>
    %452 = arith.subf %451, %430 : vector<16x128xf32>
    %453 = arith.mulf %452, %430 : vector<16x128xf32>
    %454 = math.exp %453 : vector<16x128xf32>
    %455 = arith.mulf %450, %454 : vector<16x128xf32>
    %cst_145 = arith.constant 1.000000e+00 : f32
    %456 = vector.broadcast %cst_145 : f32 to vector<16x128xf32>
    %457 = arith.subf %456, %455 : vector<16x128xf32>
    %cst_146 = arith.constant 0.000000e+00 : f32
    %458 = vector.broadcast %cst_146 : f32 to vector<16x128xf32>
    %459 = arith.cmpf oge, %429, %458 : vector<16x128xf32>
    %cst_147 = arith.constant 0.000000e+00 : f32
    %460 = vector.broadcast %cst_147 : f32 to vector<16x128xf32>
    %461 = arith.subf %460, %457 : vector<16x128xf32>
    %462 = arith.select %459, %457, %461 : vector<16x128xi1>, vector<16x128xf32>
    %cst_148 = arith.constant 1.000000e+00 : f32
    %463 = vector.broadcast %cst_148 : f32 to vector<16x128xf32>
    %464 = arith.addf %463, %462 : vector<16x128xf32>
    %465 = arith.mulf %427, %464 : vector<16x128xf32>
    %c1_149 = arith.constant 1 : index
    %c0_150 = arith.constant 0 : index
    %c0_151 = arith.constant 0 : index
    %466 = vector.load %arg14[%c1_149, %c0_150, %c0_151] : memref<2x128x128xf32, #tpu.memory_space<vmem>>, vector<1x128x128xf32>
    %467 = vector.shape_cast %466 : vector<1x128x128xf32> to vector<128x128xf32>
    %cst_152 = arith.constant dense<0.000000e+00> : vector<16x128xf32>
    %468 = tpu.matmul %465, %467, %cst_152 {dimension_numbers = #tpu.dot_dimension_numbers<[1], [0], [0], [1], [0, 0, 1, 1], [], []>} : vector<16x128xf32>, vector<128x128xf32>, vector<16x128xf32> -> vector<16x128xf32>
    %c1_153 = arith.constant 1 : index
    %c0_154 = arith.constant 0 : index
    %c0_155 = arith.constant 0 : index
    %469 = vector.load %arg15[%c1_153, %c0_154, %c0_155] : memref<2x1x128xf32, #tpu.memory_space<vmem>>, vector<1x1x128xf32>
    %470 = vector.shape_cast %469 : vector<1x1x128xf32> to vector<1x128xf32>
    %471 = vector.broadcast %470 : vector<1x128xf32> to vector<16x128xf32>
    %472 = arith.addf %468, %471 : vector<16x128xf32>
    %473 = arith.addf %239, %472 : vector<16x128xf32>
    %474 = vector.shape_cast %473 : vector<16x128xf32> to vector<2x8x128xf32>
    %cst_156 = arith.constant 0.000000e+00 : f32
    %475 = vector.broadcast %cst_156 : f32 to vector<2x32xf32>
    %c0_157 = arith.constant 0 : index
    %c0_158 = arith.constant 0 : index
    %476 = vector.load %arg17[%c0_157, %c0_158] : memref<1x32xf32, #tpu.memory_space<vmem>>, vector<1x32xf32>
    %477 = vector.broadcast %476 : vector<1x32xf32> to vector<2x32xf32>
    %478 = arith.addf %475, %477 : vector<2x32xf32>
    %479 = vector.extract_strided_slice %474 {offsets = [0, 0, 0], sizes = [2, 1, 128], strides = [1, 1, 1]} : vector<2x8x128xf32> to vector<2x1x128xf32>
    %480 = vector.shape_cast %479 : vector<2x1x128xf32> to vector<2x128xf32>
    %c0_159 = arith.constant 0 : index
    %c0_160 = arith.constant 0 : index
    %c0_161 = arith.constant 0 : index
    %481 = vector.load %arg16[%c0_159, %c0_160, %c0_161] : memref<8x128x32xf32, #tpu.memory_space<vmem>>, vector<1x128x32xf32>
    %482 = vector.shape_cast %481 : vector<1x128x32xf32> to vector<128x32xf32>
    %cst_162 = arith.constant dense<0.000000e+00> : vector<2x32xf32>
    %483 = tpu.matmul %480, %482, %cst_162 {dimension_numbers = #tpu.dot_dimension_numbers<[1], [0], [0], [1], [0, 0, 1, 1], [], []>} : vector<2x128xf32>, vector<128x32xf32>, vector<2x32xf32> -> vector<2x32xf32>
    %484 = arith.addf %478, %483 : vector<2x32xf32>
    %485 = vector.extract_strided_slice %474 {offsets = [0, 1, 0], sizes = [2, 1, 128], strides = [1, 1, 1]} : vector<2x8x128xf32> to vector<2x1x128xf32>
    %486 = vector.shape_cast %485 : vector<2x1x128xf32> to vector<2x128xf32>
    %c1_163 = arith.constant 1 : index
    %c0_164 = arith.constant 0 : index
    %c0_165 = arith.constant 0 : index
    %487 = vector.load %arg16[%c1_163, %c0_164, %c0_165] : memref<8x128x32xf32, #tpu.memory_space<vmem>>, vector<1x128x32xf32>
    %488 = vector.shape_cast %487 : vector<1x128x32xf32> to vector<128x32xf32>
    %cst_166 = arith.constant dense<0.000000e+00> : vector<2x32xf32>
    %489 = tpu.matmul %486, %488, %cst_166 {dimension_numbers = #tpu.dot_dimension_numbers<[1], [0], [0], [1], [0, 0, 1, 1], [], []>} : vector<2x128xf32>, vector<128x32xf32>, vector<2x32xf32> -> vector<2x32xf32>
    %490 = arith.addf %484, %489 : vector<2x32xf32>
    %491 = vector.extract_strided_slice %474 {offsets = [0, 2, 0], sizes = [2, 1, 128], strides = [1, 1, 1]} : vector<2x8x128xf32> to vector<2x1x128xf32>
    %492 = vector.shape_cast %491 : vector<2x1x128xf32> to vector<2x128xf32>
    %c2 = arith.constant 2 : index
    %c0_167 = arith.constant 0 : index
    %c0_168 = arith.constant 0 : index
    %493 = vector.load %arg16[%c2, %c0_167, %c0_168] : memref<8x128x32xf32, #tpu.memory_space<vmem>>, vector<1x128x32xf32>
    %494 = vector.shape_cast %493 : vector<1x128x32xf32> to vector<128x32xf32>
    %cst_169 = arith.constant dense<0.000000e+00> : vector<2x32xf32>
    %495 = tpu.matmul %492, %494, %cst_169 {dimension_numbers = #tpu.dot_dimension_numbers<[1], [0], [0], [1], [0, 0, 1, 1], [], []>} : vector<2x128xf32>, vector<128x32xf32>, vector<2x32xf32> -> vector<2x32xf32>
    %496 = arith.addf %490, %495 : vector<2x32xf32>
    %497 = vector.extract_strided_slice %474 {offsets = [0, 3, 0], sizes = [2, 1, 128], strides = [1, 1, 1]} : vector<2x8x128xf32> to vector<2x1x128xf32>
    %498 = vector.shape_cast %497 : vector<2x1x128xf32> to vector<2x128xf32>
    %c3 = arith.constant 3 : index
    %c0_170 = arith.constant 0 : index
    %c0_171 = arith.constant 0 : index
    %499 = vector.load %arg16[%c3, %c0_170, %c0_171] : memref<8x128x32xf32, #tpu.memory_space<vmem>>, vector<1x128x32xf32>
    %500 = vector.shape_cast %499 : vector<1x128x32xf32> to vector<128x32xf32>
    %cst_172 = arith.constant dense<0.000000e+00> : vector<2x32xf32>
    %501 = tpu.matmul %498, %500, %cst_172 {dimension_numbers = #tpu.dot_dimension_numbers<[1], [0], [0], [1], [0, 0, 1, 1], [], []>} : vector<2x128xf32>, vector<128x32xf32>, vector<2x32xf32> -> vector<2x32xf32>
    %502 = arith.addf %496, %501 : vector<2x32xf32>
    %503 = vector.extract_strided_slice %474 {offsets = [0, 4, 0], sizes = [2, 1, 128], strides = [1, 1, 1]} : vector<2x8x128xf32> to vector<2x1x128xf32>
    %504 = vector.shape_cast %503 : vector<2x1x128xf32> to vector<2x128xf32>
    %c4 = arith.constant 4 : index
    %c0_173 = arith.constant 0 : index
    %c0_174 = arith.constant 0 : index
    %505 = vector.load %arg16[%c4, %c0_173, %c0_174] : memref<8x128x32xf32, #tpu.memory_space<vmem>>, vector<1x128x32xf32>
    %506 = vector.shape_cast %505 : vector<1x128x32xf32> to vector<128x32xf32>
    %cst_175 = arith.constant dense<0.000000e+00> : vector<2x32xf32>
    %507 = tpu.matmul %504, %506, %cst_175 {dimension_numbers = #tpu.dot_dimension_numbers<[1], [0], [0], [1], [0, 0, 1, 1], [], []>} : vector<2x128xf32>, vector<128x32xf32>, vector<2x32xf32> -> vector<2x32xf32>
    %508 = arith.addf %502, %507 : vector<2x32xf32>
    %509 = vector.extract_strided_slice %474 {offsets = [0, 5, 0], sizes = [2, 1, 128], strides = [1, 1, 1]} : vector<2x8x128xf32> to vector<2x1x128xf32>
    %510 = vector.shape_cast %509 : vector<2x1x128xf32> to vector<2x128xf32>
    %c5 = arith.constant 5 : index
    %c0_176 = arith.constant 0 : index
    %c0_177 = arith.constant 0 : index
    %511 = vector.load %arg16[%c5, %c0_176, %c0_177] : memref<8x128x32xf32, #tpu.memory_space<vmem>>, vector<1x128x32xf32>
    %512 = vector.shape_cast %511 : vector<1x128x32xf32> to vector<128x32xf32>
    %cst_178 = arith.constant dense<0.000000e+00> : vector<2x32xf32>
    %513 = tpu.matmul %510, %512, %cst_178 {dimension_numbers = #tpu.dot_dimension_numbers<[1], [0], [0], [1], [0, 0, 1, 1], [], []>} : vector<2x128xf32>, vector<128x32xf32>, vector<2x32xf32> -> vector<2x32xf32>
    %514 = arith.addf %508, %513 : vector<2x32xf32>
    %515 = vector.extract_strided_slice %474 {offsets = [0, 6, 0], sizes = [2, 1, 128], strides = [1, 1, 1]} : vector<2x8x128xf32> to vector<2x1x128xf32>
    %516 = vector.shape_cast %515 : vector<2x1x128xf32> to vector<2x128xf32>
    %c6 = arith.constant 6 : index
    %c0_179 = arith.constant 0 : index
    %c0_180 = arith.constant 0 : index
    %517 = vector.load %arg16[%c6, %c0_179, %c0_180] : memref<8x128x32xf32, #tpu.memory_space<vmem>>, vector<1x128x32xf32>
    %518 = vector.shape_cast %517 : vector<1x128x32xf32> to vector<128x32xf32>
    %cst_181 = arith.constant dense<0.000000e+00> : vector<2x32xf32>
    %519 = tpu.matmul %516, %518, %cst_181 {dimension_numbers = #tpu.dot_dimension_numbers<[1], [0], [0], [1], [0, 0, 1, 1], [], []>} : vector<2x128xf32>, vector<128x32xf32>, vector<2x32xf32> -> vector<2x32xf32>
    %520 = arith.addf %514, %519 : vector<2x32xf32>
    %521 = vector.extract_strided_slice %474 {offsets = [0, 7, 0], sizes = [2, 1, 128], strides = [1, 1, 1]} : vector<2x8x128xf32> to vector<2x1x128xf32>
    %522 = vector.shape_cast %521 : vector<2x1x128xf32> to vector<2x128xf32>
    %c7 = arith.constant 7 : index
    %c0_182 = arith.constant 0 : index
    %c0_183 = arith.constant 0 : index
    %523 = vector.load %arg16[%c7, %c0_182, %c0_183] : memref<8x128x32xf32, #tpu.memory_space<vmem>>, vector<1x128x32xf32>
    %524 = vector.shape_cast %523 : vector<1x128x32xf32> to vector<128x32xf32>
    %cst_184 = arith.constant dense<0.000000e+00> : vector<2x32xf32>
    %525 = tpu.matmul %522, %524, %cst_184 {dimension_numbers = #tpu.dot_dimension_numbers<[1], [0], [0], [1], [0, 0, 1, 1], [], []>} : vector<2x128xf32>, vector<128x32xf32>, vector<2x32xf32> -> vector<2x32xf32>
    %526 = arith.addf %520, %525 : vector<2x32xf32>
    %c0_185 = arith.constant 0 : index
    %c0_186 = arith.constant 0 : index
    %527 = vector.load %arg18[%c0_185, %c0_186] : memref<2x32xf32, #tpu.memory_space<vmem>>, vector<2x32xf32>
    tpu.vector_store %arg18[%c0_185, %c0_186], %526 {strides = array<i32>} : memref<2x32xf32, #tpu.memory_space<vmem>>, vector<2x32xf32>,
    return
  }
  func.func @transform_0(%arg0: i32) -> (i32, i32) {
    %c0_i32 = arith.constant 0 : i32
    %c0_i32_0 = arith.constant 0 : i32
    %c0_i32_1 = arith.constant 0 : i32
    return %c0_i32, %c0_i32_0 : i32, i32
  }
  func.func @transform_1(%arg0: i32) -> (i32, i32) {
    %c0_i32 = arith.constant 0 : i32
    %c0_i32_0 = arith.constant 0 : i32
    %c0_i32_1 = arith.constant 0 : i32
    return %c0_i32, %c0_i32_0 : i32, i32
  }
  func.func @transform_2(%arg0: i32) -> (i32, i32) {
    %c0_i32 = arith.constant 0 : i32
    %c0_i32_0 = arith.constant 0 : i32
    %c0_i32_1 = arith.constant 0 : i32
    return %c0_i32, %c0_i32_0 : i32, i32
  }
  func.func @transform_3(%arg0: i32) -> (i32, i32, i32) {
    %c0_i32 = arith.constant 0 : i32
    %c0_i32_0 = arith.constant 0 : i32
    %c0_i32_1 = arith.constant 0 : i32
    %c0_i32_2 = arith.constant 0 : i32
    return %c0_i32, %c0_i32_0, %c0_i32_1 : i32, i32, i32
  }
  func.func @transform_4(%arg0: i32) -> (i32, i32, i32) {
    %c0_i32 = arith.constant 0 : i32
    %c0_i32_0 = arith.constant 0 : i32
    %c0_i32_1 = arith.constant 0 : i32
    %c0_i32_2 = arith.constant 0 : i32
    return %c0_i32, %c0_i32_0, %c0_i32_1 : i32, i32, i32
  }
  func.func @transform_5(%arg0: i32) -> (i32, i32, i32) {
    %c0_i32 = arith.constant 0 : i32
    %c0_i32_0 = arith.constant 0 : i32
    %c0_i32_1 = arith.constant 0 : i32
    %c0_i32_2 = arith.constant 0 : i32
    return %c0_i32, %c0_i32_0, %c0_i32_1 : i32, i32, i32
  }
  func.func @transform_6(%arg0: i32) -> (i32, i32, i32) {
    %c0_i32 = arith.constant 0 : i32
    %c0_i32_0 = arith.constant 0 : i32
    %c0_i32_1 = arith.constant 0 : i32
    %c0_i32_2 = arith.constant 0 : i32
    return %c0_i32, %c0_i32_0, %c0_i32_1 : i32, i32, i32
  }
  func.func @transform_7(%arg0: i32) -> (i32, i32, i32) {
    %c0_i32 = arith.constant 0 : i32
    %c0_i32_0 = arith.constant 0 : i32
    %c0_i32_1 = arith.constant 0 : i32
    %c0_i32_2 = arith.constant 0 : i32
    return %c0_i32, %c0_i32_0, %c0_i32_1 : i32, i32, i32
  }
  func.func @transform_8(%arg0: i32) -> (i32, i32, i32) {
    %c0_i32 = arith.constant 0 : i32
    %c0_i32_0 = arith.constant 0 : i32
    %c0_i32_1 = arith.constant 0 : i32
    %c0_i32_2 = arith.constant 0 : i32
    return %c0_i32, %c0_i32_0, %c0_i32_1 : i32, i32, i32
  }
  func.func @transform_9(%arg0: i32) -> (i32, i32, i32) {
    %c0_i32 = arith.constant 0 : i32
    %c0_i32_0 = arith.constant 0 : i32
    %c0_i32_1 = arith.constant 0 : i32
    %c0_i32_2 = arith.constant 0 : i32
    return %c0_i32, %c0_i32_0, %c0_i32_1 : i32, i32, i32
  }
  func.func @transform_10(%arg0: i32) -> (i32, i32, i32) {
    %c0_i32 = arith.constant 0 : i32
    %c0_i32_0 = arith.constant 0 : i32
    %c0_i32_1 = arith.constant 0 : i32
    %c0_i32_2 = arith.constant 0 : i32
    return %c0_i32, %c0_i32_0, %c0_i32_1 : i32, i32, i32
  }
  func.func @transform_11(%arg0: i32) -> (i32, i32, i32) {
    %c0_i32 = arith.constant 0 : i32
    %c0_i32_0 = arith.constant 0 : i32
    %c0_i32_1 = arith.constant 0 : i32
    %c0_i32_2 = arith.constant 0 : i32
    return %c0_i32, %c0_i32_0, %c0_i32_1 : i32, i32, i32
  }
  func.func @transform_12(%arg0: i32) -> (i32, i32, i32) {
    %c0_i32 = arith.constant 0 : i32
    %c0_i32_0 = arith.constant 0 : i32
    %c0_i32_1 = arith.constant 0 : i32
    %c0_i32_2 = arith.constant 0 : i32
    return %c0_i32, %c0_i32_0, %c0_i32_1 : i32, i32, i32
  }
  func.func @transform_13(%arg0: i32) -> (i32, i32, i32) {
    %c0_i32 = arith.constant 0 : i32
    %c0_i32_0 = arith.constant 0 : i32
    %c0_i32_1 = arith.constant 0 : i32
    %c0_i32_2 = arith.constant 0 : i32
    return %c0_i32, %c0_i32_0, %c0_i32_1 : i32, i32, i32
  }
  func.func @transform_14(%arg0: i32) -> (i32, i32, i32) {
    %c0_i32 = arith.constant 0 : i32
    %c0_i32_0 = arith.constant 0 : i32
    %c0_i32_1 = arith.constant 0 : i32
    %c0_i32_2 = arith.constant 0 : i32
    return %c0_i32, %c0_i32_0, %c0_i32_1 : i32, i32, i32
  }
  func.func @transform_15(%arg0: i32) -> (i32, i32, i32) {
    %c0_i32 = arith.constant 0 : i32
    %c0_i32_0 = arith.constant 0 : i32
    %c0_i32_1 = arith.constant 0 : i32
    %c0_i32_2 = arith.constant 0 : i32
    return %c0_i32, %c0_i32_0, %c0_i32_1 : i32, i32, i32
  }
  func.func @transform_16(%arg0: i32) -> (i32, i32) {
    %c0_i32 = arith.constant 0 : i32
    %c0_i32_0 = arith.constant 0 : i32
    %c0_i32_1 = arith.constant 0 : i32
    return %c0_i32, %c0_i32_0 : i32, i32
  }
  func.func @transform_17(%arg0: i32) -> (i32, i32) {
    %c0_i32 = arith.constant 0 : i32
    %c0_i32_0 = arith.constant 0 : i32
    %c0_i32_1 = arith.constant 0 : i32
    return %c0_i32, %c0_i32_0 : i32, i32
  }
}

</mosaic_0001>

<bundles_post_ra>
// kernel: model_forward.1
= control target key start
LH: loop header
LB: loop body
LE: loop exit
PB: predicated region body
PF: predicated region fallthrough
CT: control target
= control target key end

     0   :  { %vm69_vm0 = vcmask 261120   ;;  %v164_v32 = vlaneseq  ;;  %vm157_vm1 = vcmask 1046528   ;;  %vm204_vm2 = vcmask 1045504   ;;  %s5655_s1 = inlined_call_operand.vmem [shape: f32[32,128], index: 1, kind: input, shape index: {}]   ;;  %s5656_s0 = inlined_call_operand.vmem [shape: f32[16,32], index: 0, kind: input, shape index: {}]   ;;  %s5657_s7 = inlined_call_operand.vmem [shape: f32[2,128,128], index: 7, kind: input, shape index: {}]   ;;  %s5658_s3 = inlined_call_operand.vmem [shape: f32[2,15,128], index: 3, kind: input, shape index: {}]   ;;  %s5659_s2 = inlined_call_operand.vmem [shape: f32[1,128], index: 2, kind: input, shape index: {}]   ;;  %s5660_s4 = inlined_call_operand.vmem [shape: f32[2,1,128], index: 4, kind: input, shape index: {}]   ;;  %s5661_s5 = inlined_call_operand.vmem [shape: f32[2,1,128], index: 5, kind: input, shape index: {}]   ;;  %s5662_s6 = inlined_call_operand.vmem [shape: f32[2,1,128], index: 6, kind: input, shape index: {}]   ;;  %s5663_s9 = inlined_call_operand.vmem [shape: f32[2,128,128], index: 9, kind: input, shape index: {}]   ;;  %s5664_s11 = inlined_call_operand.vmem [shape: f32[2,128,128], index: 11, kind: input, shape index: {}]   ;;  %s5665_s8 = inlined_call_operand.vmem [shape: f32[2,1,128], index: 8, kind: input, shape index: {}]   ;;  %s5666_s10 = inlined_call_operand.vmem [shape: f32[2,1,128], index: 10, kind: input, shape index: {}]   ;;  %s5667_s13 = inlined_call_operand.vmem [shape: f32[2,128,128], index: 13, kind: input, shape index: {}]   ;;  %s5668_s12 = inlined_call_operand.vmem [shape: f32[2,1,128], index: 12, kind: input, shape index: {}]   ;;  %s5669_s14 = inlined_call_operand.vmem [shape: f32[2,1,128], index: 14, kind: input, shape index: {}]   ;;  %s5670_s15 = inlined_call_operand.vmem [shape: f32[8,128,32], index: 15, kind: input, shape index: {}]   ;;  %s5671_s16 = inlined_call_operand.vmem [shape: f32[1,32], index: 16, kind: input, shape index: {}]   ;;  %s5672_s17 = inlined_call_operand.vmem [shape: f32[2,32], index: 17, kind: output, shape index: {}]  }
   0x1   :  { %5675 = sst [smem:[#allocation2_spill]] %s5655_s1  ;;  %v505_v8 = vld [vmem:[%s5657_s7] sm:$0xff]  ;;  %v506_v9 = vld [vmem:[%s5657_s7 + $0x8] sm:$0xff]  ;;  %v507_v10 = vld [vmem:[%s5657_s7 + $0x10] sm:$0xff]  ;;  %vm227_vm3 = vcmask 1044480   ;;  %vm250_vm4 = vcmask 1043456  }
   0x2   :  { %5676 = sst [smem:[#allocation3_spill]] %s5656_s0  ;;  %s5677_s26 = sld [smem:[#allocation2_spill]]  ;;  %v3686_v11 = vpack.c.bf16 %v506_v9, %v505_v8  ;;  %v508_v12 = vld [vmem:[%s5657_s7 + $0x18] sm:$0xff]  ;;  %v509_v14 = vld [vmem:[%s5657_s7 + $0x20] sm:$0xff]  ;;  %v510_v15 = vld [vmem:[%s5657_s7 + $0x28] sm:$0xff]  ;;  %v4347_v33 = vshrl.u32 %v164_v32, 7 }
   0x3   :  { %s5678_s20 = sld [smem:[#allocation3_spill]]  ;;  %v3690_v13 = vpack.c.bf16 %v508_v12, %v507_v10  ;;  %v3694_v16 = vpack.c.bf16 %v510_v15, %v509_v14  ;;  %v511_v17 = vld [vmem:[%s5657_s7 + $0x30] sm:$0xff]  ;;  %v512_v18 = vld [vmem:[%s5657_s7 + $0x38] sm:$0xff]  ;;  %v513_v20 = vld [vmem:[%s5657_s7 + $0x40] sm:$0xff]  ;;  %vm273_vm5 = vcmask 1042432   ;;  %vm296_vm6 = vcmask 1041408  }
   0x4   :  { %v3698_v19 = vpack.c.bf16 %v512_v18, %v511_v17  ;;  %v514_v21 = vld [vmem:[%s5657_s7 + $0x48] sm:$0xff]  ;;  %v515_v23 = vld [vmem:[%s5657_s7 + $0x50] sm:$0xff]  ;;  %v516_v24 = vld [vmem:[%s5657_s7 + $0x58] sm:$0xff]  ;;  %v4350_v34 = vsub.s32 1, %v4347_v33  ;;  %v4353_v35 = vsub.s32 2, %v4347_v33  ;;  %v4356_v36 = vsub.s32 3, %v4347_v33 }
   0x5   :  { %v3702_v22 = vpack.c.bf16 %v514_v21, %v513_v20  ;;  %v3706_v25 = vpack.c.bf16 %v516_v24, %v515_v23  ;;  %v517_v26 = vld [vmem:[%s5657_s7 + $0x60] sm:$0xff]  ;;  %v518_v27 = vld [vmem:[%s5657_s7 + $0x68] sm:$0xff]  ;;  %v519_v29 = vld [vmem:[%s5657_s7 + $0x70] sm:$0xff]  ;;  %v4364_v38 = vsub.s32 0, %v4347_v33  ;;  %v4382_v43 = vsub.s32 4, %v4347_v33 }
   0x6   :  { %v3710_v28 = vpack.c.bf16 %v518_v27, %v517_v26  ;;  %v520_v30 = vld [vmem:[%s5657_s7 + $0x78] sm:$0xff]  ;;  %v4361_v37 = vld [vmem:[%s5658_s3 + $0x8] sm:$0x7f]  ;;  %v162_v39 = vld [vmem:[%s5658_s3] sm:$0xff]  ;;  %v4388_v45 = vsub.s32 5, %v4347_v33  ;;  %v4391_v46 = vsub.s32 6, %v4347_v33 }
   0x7   :  { %v3714_v31 = vpack.c.bf16 %v520_v30, %v519_v29  ;;  %v4371_v40 = vrot.slane %v4361_v37, %v4350_v34  ;;  %v4375_v41 = vrot.slane %v4361_v37, %v4353_v35  ;;  %v4379_v42 = vrot.slane %v4361_v37, %v4356_v36  ;;  %v2618_v44 = vld [vmem:[%s5659_s2] ss:$0 sm:$0xff] }
   0x8   :  { %v58_v0 = vld [vmem:[%s5677_s26] sm:$0xff]  ;;  %v59_v1 = vld [vmem:[%s5677_s26 + $0x8] sm:$0xff]  ;;  %v60_v2 = vld [vmem:[%s5677_s26 + $0x10] sm:$0xff]  ;;  %v4394_v47 = vrot.slane %v162_v39, %v4364_v38  ;;  %v309_v48 = vsub.s32 7, %v4347_v33  ;;  %v4398_v50 = vrot.slane %v162_v39, %v4350_v34  ;;  %v4412_v55 = vrot.slane %v162_v39, %v4353_v35 }
   0x9   :  { %v3678_v3 = vpack.c.bf16 %v59_v1, %v58_v0  ;;  %v61_v4 = vld [vmem:[%s5677_s26 + $0x18] sm:$0xff]  ;;  %v56_v5 = vld [vmem:[%s5678_s20] sm:$0xff]  ;;  %v57_v7 = vld [vmem:[%s5678_s20 + $0x8] sm:$0xff]  ;;  %v4401_v51 = vmul.f32 0.0, %v4371_v40  ;;  %v4404_v52 = vmul.f32 0.0, %v4375_v41  ;;  %v4407_v53 = vmul.f32 0.0, %v4379_v42 }
   0xa   :  { %v3682_v6 = vpack.c.bf16 %v61_v4, %v60_v2  ;;  %3115 = vmatprep.mubr.msk.f32.mxu0 %vm69_vm0, %v56_v5  ;;  %v4415_v56 = vrot.slane %v162_v39, %v4356_v36  ;;  %v4418_v57 = vrot.slane %v162_v39, %v4382_v43  ;;  %v4421_v59 = vrot.slane %v162_v39, %v4388_v45 }
   0xb   :  { %3679 = vmatprep.subr.bf16.mxu0 %v3678_v3  ;;  %v4424_v60 = vrot.slane %v162_v39, %v4391_v46  ;;  %v4431_v63 = vrot.slane %v162_v39, %v309_v48  ;;  %v4435_v0 = vrot.slane %v4361_v37, %v4364_v38  ;;  %v349_v1 = vrot.slane %v4401_v51, 1 }
   0xc   :  { %3681 = vmatpush3.bf16.msra.mxu0 %v3678_v3  ;;  %v368_v2 = vrot.slane %v4404_v52, 2  ;;  %v387_v3 = vrot.slane %v4407_v53, 3  ;;  %v4442_v4 = vrot.slane %v4361_v37, %v4382_v43  ;;  %v4451_v8 = vrot.slane %v4361_v37, %v4388_v45 }
   0xd   :  { %3683 = vmatprep.subr.bf16.mxu0 %v3682_v6  ;;  %vm319_vm7 = vcmask 1040384   ;;  %v4476_v32 = vrot.slane %v4361_v37, %v4391_v46 }
  0x10   :  { %3685 = vmatpush3.bf16.msra.mxu0 %v3682_v6 }
  0x11   :  { %3687 = vmatprep.subr.bf16.mxu0 %v3686_v11 }
  0x13   :  { %3116 = vmatmul.mubr.msk.f32.vlgmr.msra.gmra.mrb[0].mxu0 %vm69_vm0, %v57_v7  ;;  %vm4189_vm0 = vmmov 0  }
  0x14   :  { %3689 = vmatpush3.bf16.msra.mxu0 %v3686_v11 }
  0x15   :  { %3691 = vmatprep.subr.bf16.mxu0 %v3690_v13 }
  0x18   :  { %3693 = vmatpush3.bf16.msra.mxu0 %v3690_v13 }
  0x19   :  { %3695 = vmatprep.subr.bf16.mxu0 %v3694_v16 }
  0x1c   :  { %3697 = vmatpush3.bf16.msra.mxu0 %v3694_v16 }
  0x1d   :  { %3699 = vmatprep.subr.bf16.mxu0 %v3698_v19 }
  0x20   :  { %3701 = vmatpush3.bf16.msra.mxu0 %v3698_v19 }
  0x21   :  { %3703 = vmatprep.subr.bf16.mxu0 %v3702_v22 }
  0x24   :  { %3705 = vmatpush3.bf16.msra.mxu0 %v3702_v22 }
  0x25   :  { %3707 = vmatprep.subr.bf16.mxu0 %v3706_v25 }
  0x28   :  { %3709 = vmatpush3.bf16.msra.mxu0 %v3706_v25 }
  0x29   :  { %3711 = vmatprep.subr.bf16.mxu0 %v3710_v28 }
  0x2c   :  { %3713 = vmatpush3.bf16.msra.mxu0 %v3710_v28 }
  0x2d   :  { %3715 = vmatprep.subr.bf16.mxu0 %v3714_v31 }
  0x30   :  { %3717 = vmatpush3.bf16.msra.mxu0 %v3714_v31  ;;  %v4472_v31 = vmul.f32 0.0, %v4442_v4 }
  0xe6   :  { %v3117_v49 = vpop.f32.mrb[0].mxu0 }
  0xe7   :  { %v4409_v54 = vadd.f32 %v3117_v49, %v2618_v44  ;;  %v142_v58 = vpop.f32.mrb[1].mxu0 }
  0xe8   :  { %v4426_v61 = vadd.f32 %v2618_v44, %v142_v58 }
  0xe9   :  { %v154_v62 = vrot.slane %v4409_v54, 1 }
  0xea   :  { %v153_v7 = vrot.slane %v4426_v61, 1 }
  0xeb   :  { %v159_v5 = vsel %vm157_vm1, 0.0, %v154_v62  ;;  %v4446_v6 = vsel %vm157_vm1, %v154_v62, 0.0 }
  0xec   :  { %v169_v9 = vmul.f32 %v4394_v47, %v159_v5  ;;  %v176_v10 = vmul.f32 %v4398_v50, %v159_v5  ;;  %v177_v11 = vmul.f32 %v4398_v50, %v4446_v6  ;;  %v198_v12 = vmul.f32 %v4412_v55, %v159_v5 }
  0xed   :  { %v199_v13 = vmul.f32 %v4412_v55, %v4446_v6  ;;  %v221_v14 = vmul.f32 %v4415_v56, %v159_v5  ;;  %v222_v15 = vmul.f32 %v4415_v56, %v4446_v6  ;;  %v244_v16 = vmul.f32 %v4418_v57, %v159_v5 }
  0xee   :  { %v185_v17 = vrot.slane %v176_v10, 1  ;;  %v186_v18 = vrot.slane %v177_v11, 1  ;;  %v208_v19 = vrot.slane %v198_v12, 2  ;;  %v245_v20 = vmul.f32 %v4418_v57, %v4446_v6 }
  0xef   :  { %v209_v21 = vrot.slane %v199_v13, 2  ;;  %v231_v22 = vrot.slane %v221_v14, 3  ;;  %v232_v23 = vrot.slane %v222_v15, 3  ;;  %v254_v24 = vrot.slane %v244_v16, 4 }
  0xf0   :  { %v187_v25 = vsel %vm157_vm1, %v185_v17, %v186_v18  ;;  %v255_v26 = vrot.slane %v245_v20, 4  ;;  %v267_v27 = vmul.f32 %v4421_v59, %v159_v5  ;;  %v268_v28 = vmul.f32 %v4421_v59, %v4446_v6 }
  0xf1   :  { %v191_v29 = vadd.f32 %v187_v25, %v169_v9  ;;  %v290_v30 = vmul.f32 %v4424_v60, %v159_v5  ;;  %v210_v39 = vsel %vm204_vm2, %v208_v19, %v209_v21  ;;  %v291_v58 = vmul.f32 %v4424_v60, %v4446_v6 }
  0xf2   :  { %v277_v44 = vrot.slane %v267_v27, 5  ;;  %v278_v49 = vrot.slane %v268_v28, 5  ;;  %v313_v9 = vmul.f32 %v4431_v63, %v159_v5  ;;  %v314_v11 = vmul.f32 %v4431_v63, %v4446_v6 }
  0xf3   :  { %v214_v62 = vadd.f32 %v210_v39, %v191_v29  ;;  %v300_v10 = vrot.slane %v290_v30, 6  ;;  %v233_v12 = vsel %vm227_vm3, %v231_v22, %v232_v23  ;;  %v256_v13 = vsel %vm250_vm4, %v254_v24, %v255_v26 }
  0xf4   :  { %v301_v37 = vrot.slane %v291_v58, 6  ;;  %v158_v14 = vsel %vm157_vm1, 0.0, %v153_v7  ;;  %v279_v16 = vsel %vm273_vm5, %v277_v44, %v278_v49  ;;  %v323_v17 = vrot.slane %v313_v9, 7 }
  0xf5   :  { %v237_v15 = vadd.f32 %v233_v12, %v214_v62  ;;  %v4489_v18 = vsel %vm157_vm1, %v153_v7, 0.0  ;;  %v324_v5 = vrot.slane %v314_v11, 7  ;;  %v174_v20 = vmul.f32 %v4398_v50, %v158_v14 }
  0xf6   :  { %v302_v19 = vsel %vm296_vm6, %v300_v10, %v301_v37  ;;  %v175_v21 = vmul.f32 %v4398_v50, %v4489_v18  ;;  %v168_v23 = vmul.f32 %v4394_v47, %v158_v14  ;;  %v196_v24 = vmul.f32 %v4412_v55, %v158_v14 }
  0xf7   :  { %v260_v22 = vadd.f32 %v256_v13, %v237_v15  ;;  %v197_v25 = vmul.f32 %v4412_v55, %v4489_v18  ;;  %v182_v26 = vrot.slane %v174_v20, 1  ;;  %v219_v7 = vmul.f32 %v4415_v56, %v158_v14 }
  0xf8   :  { %v183_v27 = vrot.slane %v175_v21, 1  ;;  %v220_v28 = vmul.f32 %v4415_v56, %v4489_v18  ;;  %v205_v30 = vrot.slane %v196_v24, 2  ;;  %v242_v50 = vmul.f32 %v4418_v57, %v158_v14 }
  0xf9   :  { %v283_v29 = vadd.f32 %v279_v16, %v260_v22  ;;  %v206_v39 = vrot.slane %v197_v25, 2  ;;  %v228_v47 = vrot.slane %v219_v7, 3  ;;  %v243_v58 = vmul.f32 %v4418_v57, %v4489_v18 }
  0xfa   :  { %v184_v44 = vsel %vm157_vm1, %v182_v26, %v183_v27  ;;  %v229_v49 = vrot.slane %v220_v28, 3  ;;  %v325_v62 = vsel %vm319_vm7, %v323_v17, %v324_v5  ;;  %v251_v11 = vrot.slane %v242_v50, 4 }
  0xfb   :  { %v306_v55 = vadd.f32 %v302_v19, %v283_v29  ;;  %v190_v10 = vadd.f32 %v184_v44, %v168_v23  ;;  %v207_v9 = vsel %vm204_vm2, %v205_v30, %v206_v39  ;;  %v252_v56 = vrot.slane %v243_v58, 4 }
  0xfc   :  { %v265_v12 = vmul.f32 %v4421_v59, %v158_v14  ;;  %v266_v13 = vmul.f32 %v4421_v59, %v4489_v18  ;;  %v288_v16 = vmul.f32 %v4424_v60, %v158_v14  ;;  %v289_v57 = vmul.f32 %v4424_v60, %v4489_v18 }
  0xfd   :  { %v329_v37 = vadd.f32 %v325_v62, %v306_v55  ;;  %v213_v15 = vadd.f32 %v207_v9, %v190_v10  ;;  %v230_v19 = vsel %vm227_vm3, %v228_v47, %v229_v49  ;;  %v311_v20 = vmul.f32 %v4431_v63, %v158_v14 }
  0xfe   :  { %v274_v17 = vrot.slane %v265_v12, 5  ;;  %v275_v5 = vrot.slane %v266_v13, 5  ;;  %v335_v21 = vmul.f32 %v4435_v0, %v4446_v6  ;;  %v4519_v23 = vmul.f32 0.0, %v4451_v8 }
  0xff   :  { %v236_v22 = vadd.f32 %v230_v19, %v213_v15  ;;  %v4522_v59 = vmul.f32 0.0, %v4476_v32  ;;  %v253_v24 = vsel %vm250_vm4, %v251_v11, %v252_v56  ;;  %v297_v25 = vrot.slane %v288_v16, 6 }
 0x100   :  { %v298_v60 = vrot.slane %v289_v57, 6  ;;  %v312_v26 = vmul.f32 %v4431_v63, %v4489_v18  ;;  %v337_v27 = vadd.f32 %v335_v21, %v329_v37  ;;  %v276_v14 = vsel %vm273_vm5, %v274_v17, %v275_v5 }
 0x101   :  { %v259_v7 = vadd.f32 %v253_v24, %v236_v22  ;;  %v344_v28 = vmul.f32 %v4371_v40, %v4446_v6  ;;  %v320_v29 = vrot.slane %v311_v20, 7  ;;  %v342_v39 = vmul.f32 %v4371_v40, %v4489_v18 }
 0x102   :  { %v321_v30 = vrot.slane %v312_v26, 7  ;;  %v363_v50 = vmul.f32 %v4375_v41, %v4446_v6  ;;  %v361_v63 = vmul.f32 %v4375_v41, %v4489_v18  ;;  %v382_v49 = vmul.f32 %v4379_v42, %v4446_v6 }
 0x103   :  { %v282_v44 = vadd.f32 %v276_v14, %v259_v7  ;;  %v351_v47 = vrot.slane %v344_v28, 1  ;;  %v299_v58 = vsel %vm296_vm6, %v297_v25, %v298_v60  ;;  %v380_v62 = vmul.f32 %v4379_v42, %v4489_v18 }
 0x104   :  { %v370_v55 = vrot.slane %v363_v50, 2  ;;  %v406_v10 = vrot.slane %v4472_v31, 4  ;;  %v389_v11 = vrot.slane %v382_v49, 3  ;;  %v425_v56 = vrot.slane %v4519_v23, 5 }
 0x105   :  { %v305_v40 = vadd.f32 %v299_v58, %v282_v44  ;;  %v352_v9 = vsel %vm157_vm1, %v351_v47, %v349_v1  ;;  %v322_v41 = vsel %vm319_vm7, %v320_v29, %v321_v30  ;;  %v334_v12 = vmul.f32 %v4435_v0, %v4489_v18 }
 0x106   :  { %v348_v13 = vrot.slane %v342_v39, 1  ;;  %v356_v37 = vadd.f32 %v352_v9, %v337_v27  ;;  %v367_v16 = vrot.slane %v361_v63, 2  ;;  %v371_v42 = vsel %vm204_vm2, %v370_v55, %v368_v2 }
 0x107   :  { %v328_v15 = vadd.f32 %v322_v41, %v305_v40  ;;  %v401_v31 = vmul.f32 %v4442_v4, %v4446_v6  ;;  %v386_v19 = vrot.slane %v380_v62, 3  ;;  %v399_v17 = vmul.f32 %v4442_v4, %v4489_v18 }
 0x108   :  { %v375_v57 = vadd.f32 %v371_v42, %v356_v37  ;;  %v420_v5 = vmul.f32 %v4451_v8, %v4446_v6  ;;  %v390_v20 = vsel %vm227_vm3, %v389_v11, %v387_v3  ;;  %v439_v22 = vmul.f32 %v4476_v32, %v4446_v6 }
 0x109   :  { %v336_v0 = vadd.f32 %v334_v12, %v328_v15  ;;  %v408_v21 = vrot.slane %v401_v31, 4  ;;  %v350_v23 = vsel %vm157_vm1, %v348_v13, %v349_v1  ;;  %v418_v4 = vmul.f32 %v4451_v8, %v4489_v18 }
 0x10a   :  { %v394_v24 = vadd.f32 %v390_v20, %v375_v57  ;;  %v427_v25 = vrot.slane %v420_v5, 5  ;;  %v444_v27 = vrot.slane %v4522_v59, 6  ;;  %v446_v7 = vrot.slane %v439_v22, 6 }
 0x10b   :  { %v355_v60 = vadd.f32 %v350_v23, %v336_v0  ;;  %v409_v26 = vsel %vm250_vm4, %v408_v21, %v406_v10  ;;  %v369_v14 = vsel %vm204_vm2, %v367_v16, %v368_v2  ;;  %v405_v6 = vrot.slane %v399_v17, 4 }
 0x10c   :  { %v413_v28 = vadd.f32 %v409_v26, %v394_v24  ;;  %v437_v51 = vmul.f32 %v4476_v32, %v4489_v18  ;;  %v428_v29 = vsel %vm273_vm5, %v427_v25, %v425_v56  ;;  %v388_v8 = vsel %vm227_vm3, %v386_v19, %v387_v3  ;;  %v2621_v32 = vld [vmem:[%s5660_s4] ss:$0 sm:$0xff] }
 0x10d   :  { %v374_v1 = vadd.f32 %v369_v14, %v355_v60  ;;  %v424_v30 = vrot.slane %v418_v4, 5  ;;  %v447_v50 = vsel %vm296_vm6, %v446_v7, %v444_v27  ;;  %v407_v52 = vsel %vm250_vm4, %v405_v6, %v406_v10  ;;  %v2622_v24 = vld [vmem:[%s5661_s5] ss:$0 sm:$0xff] }
 0x10e   :  { %v432_v39 = vadd.f32 %v428_v29, %v413_v28  ;;  %v443_v2 = vrot.slane %v437_v51, 6  ;;  %v2623_v60 = vld [vmem:[%s5662_s6] ss:$0 sm:$0xff]  ;;  %v658_v28 = vld [vmem:[%s5663_s9 + $0x8] sm:$0xff]  ;;  %v660_v29 = vld [vmem:[%s5663_s9 + $0x18] sm:$0xff] }
 0x10f   :  { %v393_v59 = vadd.f32 %v388_v8, %v374_v1  ;;  %v426_v47 = vsel %vm273_vm5, %v424_v30, %v425_v56  ;;  %v657_v6 = vld [vmem:[%s5663_s9] sm:$0xff]  ;;  %v659_v1 = vld [vmem:[%s5663_s9 + $0x10] sm:$0xff] }
 0x110   :  { %v451_v44 = vadd.f32 %v447_v50, %v432_v39  ;;  %v445_v3 = vsel %vm296_vm6, %v443_v2, %v444_v27  ;;  %v3718_v51 = vpack.c.bf16 %v658_v28, %v657_v6  ;;  %v3722_v8 = vpack.c.bf16 %v660_v29, %v659_v1  ;;  %v661_v30 = vld [vmem:[%s5663_s9 + $0x20] sm:$0xff]  ;;  %v662_v39 = vld [vmem:[%s5663_s9 + $0x28] sm:$0xff]  ;;  %v663_v50 = vld [vmem:[%s5663_s9 + $0x30] sm:$0xff] }
 0x111   :  { %v412_v18 = vadd.f32 %v407_v52, %v393_v59  ;;  %v3726_v59 = vpack.c.bf16 %v662_v39, %v661_v30  ;;  %v664_v52 = vld [vmem:[%s5663_s9 + $0x38] sm:$0xff]  ;;  %v665_v2 = vld [vmem:[%s5663_s9 + $0x40] sm:$0xff] }
 0x112   :  { %v460_v53 = vadd.f32 %v2621_v32, %v451_v44  ;;  %3719 = vmatprep.subr.bf16.mxu0 %v3718_v51  ;;  %v3730_v44 = vpack.c.bf16 %v664_v52, %v663_v50 }
 0x113   :  { %v431_v63 = vadd.f32 %v426_v47, %v412_v18  ;;  %v667_v47 = vld [vmem:[%s5663_s9 + $0x50] sm:$0xff] }
 0x114   :  { %v469_v55 = vmul.f32 %v460_v53, %v460_v53 }
 0x115   :  { %v450_v49 = vadd.f32 %v445_v3, %v431_v63  ;;  %v668_v63 = vld [vmem:[%s5663_s9 + $0x58] sm:$0xff]  ;;  %v669_v3 = vld [vmem:[%s5663_s9 + $0x60] sm:$0xff] }
 0x117   :  { %v459_v58 = vadd.f32 %v2621_v32, %v450_v49  ;;  %v666_v32 = vld [vmem:[%s5663_s9 + $0x48] sm:$0xff] }
 0x118   :  { %v3734_v18 = vpack.c.bf16 %v666_v32, %v665_v2  ;;  %v670_v49 = vld [vmem:[%s5663_s9 + $0x68] sm:$0xff] }
 0x119   :  { %v461_v62 = vadd.f32 %v460_v53, %v459_v58  ;;  %v468_v40 = vmul.f32 %v459_v58, %v459_v58 }
 0x11b   :  { %v462_v9 = vrot.slane %v461_v62, 4  ;;  %v470_v10 = vadd.f32 %v469_v55, %v468_v40  ;;  %v671_v55 = vld [vmem:[%s5663_s9 + $0x70] sm:$0xff] }
 0x11d   :  { %v463_v11 = vadd.f32 %v462_v9, %v461_v62  ;;  %v471_v41 = vrot.slane %v470_v10, 4  ;;  %v672_v62 = vld [vmem:[%s5663_s9 + $0x78] sm:$0xff]  ;;  %v755_v9 = vld [vmem:[%s5664_s11] sm:$0xff] }
 0x11e   :  { %v3746_v40 = vpack.c.bf16 %v672_v62, %v671_v55 }
 0x11f   :  { %v464_v12 = vrot.slane %v463_v11, 2  ;;  %v472_v13 = vadd.f32 %v471_v41, %v470_v10  ;;  %v756_v10 = vld [vmem:[%s5664_s11 + $0x8] sm:$0xff]  ;;  %v2624_v41 = vld [vmem:[%s5665_s8] ss:$0 sm:$0xff] }
 0x121   :  { %v465_v37 = vadd.f32 %v464_v12, %v463_v11  ;;  %v473_v15 = vrot.slane %v472_v13, 2  ;;  %v4646_v11 = vpack.c.bf16 %v756_v10, %v755_v9 }
 0x123   :  { %v466_v16 = vrot.slane %v465_v37, 1  ;;  %v474_v42 = vadd.f32 %v473_v15, %v472_v13 }
 0x125   :  { %v467_v56 = vadd.f32 %v466_v16, %v465_v37  ;;  %v475_v31 = vrot.slane %v474_v42, 1 }
 0x127   :  { %v476_v57 = vadd.f32 %v475_v31, %v474_v42  ;;  %v477_v19 = vmul.f32 0.0625, %v467_v56 }
 0x129   :  { %v478_v17 = vmul.f32 0.0625, %v476_v57  ;;  %v479_v5 = vmul.f32 %v477_v19, %v477_v19  ;;  %v481_v21 = vsub.f32 %v459_v58, %v477_v19  ;;  %v482_v22 = vsub.f32 %v460_v53, %v477_v19 }
 0x12a   :  { %v3738_v53 = vpack.c.bf16 %v668_v63, %v667_v47  ;;  %v3742_v58 = vpack.c.bf16 %v670_v49, %v669_v3 }
 0x12b   :  { %v480_v0 = vsub.f32 %v478_v17, %v479_v5 }
 0x12d   :  { %v483_v20 = vadd.f32 1e-05, %v480_v0 }
 0x12f   :  { %4152 = vrsqrt.f32 %v483_v20 }
 0x139   :  { %v4153_v23 = vpop.eup %4152 }
 0x13a   :  { %v485_v4 = vmul.f32 %v4153_v23, %v481_v21  ;;  %v486_v25 = vmul.f32 %v4153_v23, %v482_v22 }
 0x13c   :  { %v494_v26 = vmul.f32 %v2622_v24, %v485_v4  ;;  %v495_v27 = vmul.f32 %v2622_v24, %v486_v25 }
 0x13e   :  { %v503_v7 = vadd.f32 %v2623_v60, %v494_v26  ;;  %v504_v14 = vadd.f32 %v2623_v60, %v495_v27 }
 0x140   :  { %3150 = vmatprep.mubr.f32.mxu0 %v503_v7 }
 0x141   :  { %3151 = vmatmul.mubr.f32.vlgmr.msra.gmra.mrb[2].mxu0 %v504_v14 }
 0x142   :  { %3721 = vmatpush3.bf16.msra.mxu0 %v3718_v51 }
 0x143   :  { %3723 = vmatprep.subr.bf16.mxu0 %v3722_v8 }
 0x146   :  { %3725 = vmatpush3.bf16.msra.mxu0 %v3722_v8 }
 0x147   :  { %3727 = vmatprep.subr.bf16.mxu0 %v3726_v59 }
 0x14a   :  { %3729 = vmatpush3.bf16.msra.mxu0 %v3726_v59 }
 0x14b   :  { %3731 = vmatprep.subr.bf16.mxu0 %v3730_v44 }
 0x14e   :  { %3733 = vmatpush3.bf16.msra.mxu0 %v3730_v44 }
 0x14f   :  { %3735 = vmatprep.subr.bf16.mxu0 %v3734_v18 }
 0x152   :  { %3737 = vmatpush3.bf16.msra.mxu0 %v3734_v18 }
 0x153   :  { %3739 = vmatprep.subr.bf16.mxu0 %v3738_v53 }
 0x156   :  { %3741 = vmatpush3.bf16.msra.mxu0 %v3738_v53 }
 0x157   :  { %3743 = vmatprep.subr.bf16.mxu0 %v3742_v58 }
 0x15a   :  { %3745 = vmatpush3.bf16.msra.mxu0 %v3742_v58 }
 0x15b   :  { %3747 = vmatprep.subr.bf16.mxu0 %v3746_v40 }
 0x15e   :  { %3749 = vmatpush3.bf16.msra.mxu0 %v3746_v40 }
 0x15f   :  { %3751 = vmatprep.subr.bf16.mxu0 %v4646_v11 }
 0x214   :  { %v3152_v12 = vpop.f32.mrb[2].mxu0 }
 0x215   :  { %v600_v13 = vadd.f32 %v3152_v12, %v2624_v41  ;;  %v594_v37 = vpop.f32.mrb[3].mxu0  ;;  %v758_v12 = vld [vmem:[%s5664_s11 + $0x18] sm:$0xff] }
 0x216   :  { %v595_v15 = vadd.f32 %v2624_v41, %v594_v37  ;;  %v757_v41 = vld [vmem:[%s5664_s11 + $0x10] sm:$0xff] }
 0x217   :  { %v606_v16 = vmul.f32 0.70710677, %v600_v13  ;;  %v604_v37 = vmul.f32 0.5, %v600_v13  ;;  %v761_v13 = vld [vmem:[%s5664_s11 + $0x30] sm:$0xff] }
 0x218   :  { %v605_v42 = vmul.f32 0.70710677, %v595_v15  ;;  %v603_v9 = vmul.f32 0.5, %v595_v15  ;;  %v760_v15 = vld [vmem:[%s5664_s11 + $0x28] sm:$0xff] }
 0x219   :  { %v608_v56 = vand.u32 2147483647, %v606_v16  ;;  %vm648_vm8 = vcmp.ge.f32.partialorder %v606_v16, 0.0  ;;  %v759_v16 = vld [vmem:[%s5664_s11 + $0x20] sm:$0xff] }
 0x21a   :  { %v607_v31 = vand.u32 2147483647, %v605_v42  ;;  %vm647_vm9 = vcmp.ge.f32.partialorder %v605_v42, 0.0  ;;  %v3758_v42 = vpack.c.bf16 %v760_v15, %v759_v16 }
 0x21b   :  { %v610_v57 = vmul.f32 0.3275911, %v608_v56  ;;  %v636_v0 = vsub.f32 0.0, %v608_v56 }
 0x21c   :  { %v609_v19 = vmul.f32 0.3275911, %v607_v31  ;;  %v635_v20 = vsub.f32 0.0, %v607_v31 }
 0x21d   :  { %v612_v17 = vadd.f32 1.0, %v610_v57  ;;  %v638_v22 = vmul.f32 %v636_v0, %v608_v56  ;;  %v3754_v57 = vpack.c.bf16 %v758_v12, %v757_v41  ;;  %v2626_v41 = vld [vmem:[%s5668_s12] ss:$0 sm:$0xff] }
 0x21e   :  { %v611_v5 = vadd.f32 1.0, %v609_v19  ;;  %v637_v4 = vmul.f32 %v635_v20, %v607_v31  ;;  %v762_v19 = vld [vmem:[%s5664_s11 + $0x38] sm:$0xff]  ;;  %v765_v20 = vld [vmem:[%s5664_s11 + $0x50] sm:$0xff] }
 0x21f   :  { %4154 = vrcp.f32 %v612_v17  ;;  %v641_v26 = vmul.f32 1.442695, %v638_v22  ;;  %v3762_v17 = vpack.c.bf16 %v762_v19, %v761_v13 }
 0x220   :  { %4156 = vrcp.f32 %v611_v5  ;;  %v639_v14 = vmul.f32 1.442695, %v637_v4  ;;  %v763_v5 = vld [vmem:[%s5664_s11 + $0x40] sm:$0xff] }
 0x221   :  { %4158 = vpow2.f32 %v641_v26 }
 0x222   :  { %4160 = vpow2.f32 %v639_v14 }
 0x229   :  { %v4155_v21 = vpop.eup %4154 }
 0x22a   :  { %v4157_v23 = vpop.eup %4156  ;;  %v618_v24 = vmul.f32 1.0614054, %v4155_v21 }
 0x22b   :  { %v617_v25 = vmul.f32 1.0614054, %v4157_v23  ;;  %v4159_v44 = vpop.eup %4158 }
 0x22c   :  { %v620_v60 = vadd.f32 -1.4531521, %v618_v24  ;;  %v4161_v18 = vpop.eup %4160  ;;  %v768_v24 = vld [vmem:[%s5664_s11 + $0x68] sm:$0xff] }
 0x22d   :  { %v619_v27 = vadd.f32 -1.4531521, %v617_v25  ;;  %v769_v25 = vld [vmem:[%s5664_s11 + $0x70] sm:$0xff] }
 0x22e   :  { %v622_v7 = vmul.f32 %v4155_v21, %v620_v60  ;;  %v770_v60 = vld [vmem:[%s5664_s11 + $0x78] sm:$0xff] }
 0x22f   :  { %v621_v6 = vmul.f32 %v4157_v23, %v619_v27  ;;  %v3778_v26 = vpack.c.bf16 %v770_v60, %v769_v25  ;;  %v2625_v27 = vld [vmem:[%s5666_s10] ss:$0 sm:$0xff] }
 0x230   :  { %v624_v28 = vadd.f32 1.4214138, %v622_v7 }
 0x231   :  { %v623_v51 = vadd.f32 1.4214138, %v621_v6 }
 0x232   :  { %v626_v1 = vmul.f32 %v4155_v21, %v624_v28 }
 0x233   :  { %v625_v29 = vmul.f32 %v4157_v23, %v623_v51  ;;  %v907_v51 = vld [vmem:[%s5667_s13] sm:$0xff] }
 0x234   :  { %v628_v8 = vadd.f32 -0.28449672, %v626_v1  ;;  %v908_v1 = vld [vmem:[%s5667_s13 + $0x8] sm:$0xff] }
 0x235   :  { %v627_v30 = vadd.f32 -0.28449672, %v625_v29  ;;  %v3782_v29 = vpack.c.bf16 %v908_v1, %v907_v51 }
 0x236   :  { %v630_v39 = vmul.f32 %v4155_v21, %v628_v8  ;;  %v909_v8 = vld [vmem:[%s5667_s13 + $0x10] sm:$0xff] }
 0x237   :  { %v629_v59 = vmul.f32 %v4157_v23, %v627_v30  ;;  %v910_v30 = vld [vmem:[%s5667_s13 + $0x18] sm:$0xff] }
 0x238   :  { %v632_v50 = vadd.f32 0.2548296, %v630_v39  ;;  %v3786_v39 = vpack.c.bf16 %v910_v30, %v909_v8 }
 0x239   :  { %v631_v52 = vadd.f32 0.2548296, %v629_v59  ;;  %v911_v59 = vld [vmem:[%s5667_s13 + $0x20] sm:$0xff] }
 0x23a   :  { %v634_v2 = vmul.f32 %v4155_v21, %v632_v50  ;;  %v766_v21 = vld [vmem:[%s5664_s11 + $0x58] sm:$0xff]  ;;  %v912_v50 = vld [vmem:[%s5667_s13 + $0x28] sm:$0xff] }
 0x23b   :  { %v633_v32 = vmul.f32 %v4157_v23, %v631_v52  ;;  %v3770_v22 = vpack.c.bf16 %v766_v21, %v765_v20  ;;  %v767_v23 = vld [vmem:[%s5664_s11 + $0x60] sm:$0xff]  ;;  %v3790_v52 = vpack.c.bf16 %v912_v50, %v911_v59 }
 0x23c   :  { %v644_v47 = vmul.f32 %v4159_v44, %v634_v2  ;;  %v3774_v4 = vpack.c.bf16 %v768_v24, %v767_v23  ;;  %v913_v2 = vld [vmem:[%s5667_s13 + $0x30] sm:$0xff]  ;;  %v914_v44 = vld [vmem:[%s5667_s13 + $0x38] sm:$0xff] }
 0x23d   :  { %v643_v63 = vmul.f32 %v4161_v18, %v633_v32  ;;  %v915_v32 = vld [vmem:[%s5667_s13 + $0x40] sm:$0xff]  ;;  %v3794_v18 = vpack.c.bf16 %v914_v44, %v913_v2 }
 0x23e   :  { %v646_v53 = vsub.f32 1.0, %v644_v47  ;;  %v916_v47 = vld [vmem:[%s5667_s13 + $0x48] sm:$0xff] }
 0x23f   :  { %v645_v3 = vsub.f32 1.0, %v643_v63  ;;  %v3798_v63 = vpack.c.bf16 %v916_v47, %v915_v32 }
 0x240   :  { %v650_v49 = vsub.f32 0.0, %v646_v53 }
 0x241   :  { %v649_v58 = vsub.f32 0.0, %v645_v3 }
 0x242   :  { %v652_v55 = vsel %vm648_vm8, %v646_v53, %v650_v49  ;;  %v917_v53 = vld [vmem:[%s5667_s13 + $0x50] sm:$0xff] }
 0x243   :  { %v654_v62 = vadd.f32 1.0, %v652_v55  ;;  %v651_v40 = vsel %vm647_vm9, %v645_v3, %v649_v58  ;;  %v918_v3 = vld [vmem:[%s5667_s13 + $0x58] sm:$0xff]  ;;  %v919_v58 = vld [vmem:[%s5667_s13 + $0x60] sm:$0xff]  ;;  %v920_v55 = vld [vmem:[%s5667_s13 + $0x68] sm:$0xff] }
 0x244   :  { %v653_v10 = vadd.f32 1.0, %v651_v40  ;;  %v3802_v49 = vpack.c.bf16 %v918_v3, %v917_v53  ;;  %v921_v40 = vld [vmem:[%s5667_s13 + $0x70] sm:$0xff] }
 0x245   :  { %v656_v31 = vmul.f32 %v654_v62, %v604_v37  ;;  %v3806_v62 = vpack.c.bf16 %v920_v55, %v919_v58 }
 0x246   :  { %v655_v56 = vmul.f32 %v653_v10, %v603_v9  ;;  %v922_v9 = vld [vmem:[%s5667_s13 + $0x78] sm:$0xff] }
 0x247   :  { %v3810_v10 = vpack.c.bf16 %v922_v9, %v921_v40 }
 0x248   :  { %3185 = vmatprep.mubr.f32.mxu0 %v655_v56 }
 0x249   :  { %3186 = vmatmul.mubr.f32.vlgmr.msra.gmra.mrb[4].mxu0 %v656_v31 }
 0x24a   :  { %3753 = vmatpush3.bf16.msra.mxu0 %v4646_v11  ;;  %v764_v11 = vld [vmem:[%s5664_s11 + $0x48] sm:$0xff] }
 0x24b   :  { %3755 = vmatprep.subr.bf16.mxu0 %v3754_v57  ;;  %v3766_v0 = vpack.c.bf16 %v764_v11, %v763_v5 }
 0x24e   :  { %3757 = vmatpush3.bf16.msra.mxu0 %v3754_v57 }
 0x24f   :  { %3759 = vmatprep.subr.bf16.mxu0 %v3758_v42 }
 0x252   :  { %3761 = vmatpush3.bf16.msra.mxu0 %v3758_v42 }
 0x253   :  { %3763 = vmatprep.subr.bf16.mxu0 %v3762_v17 }
 0x256   :  { %3765 = vmatpush3.bf16.msra.mxu0 %v3762_v17 }
 0x257   :  { %3767 = vmatprep.subr.bf16.mxu0 %v3766_v0 }
 0x25a   :  { %3769 = vmatpush3.bf16.msra.mxu0 %v3766_v0 }
 0x25b   :  { %3771 = vmatprep.subr.bf16.mxu0 %v3770_v22 }
 0x25e   :  { %3773 = vmatpush3.bf16.msra.mxu0 %v3770_v22 }
 0x25f   :  { %3775 = vmatprep.subr.bf16.mxu0 %v3774_v4 }
 0x262   :  { %3777 = vmatpush3.bf16.msra.mxu0 %v3774_v4 }
 0x263   :  { %3779 = vmatprep.subr.bf16.mxu0 %v3778_v26 }
 0x266   :  { %3781 = vmatpush3.bf16.msra.mxu0 %v3778_v26 }
 0x267   :  { %3783 = vmatprep.subr.bf16.mxu0 %v3782_v29 }
 0x31c   :  { %v3187_v7 = vpop.f32.mrb[4].mxu0 }
 0x31d   :  { %v746_v14 = vpop.f32.mrb[5].mxu0  ;;  %v752_v28 = vadd.f32 %v3187_v7, %v2625_v27 }
 0x31e   :  { %v747_v6 = vadd.f32 %v2625_v27, %v746_v14 }
 0x320   :  { %3220 = vmatprep.mubr.f32.mxu0 %v747_v6 }
 0x321   :  { %3221 = vmatmul.mubr.f32.vlgmr.msra.gmra.mrb[6].mxu0 %v752_v28 }
 0x322   :  { %3785 = vmatpush3.bf16.msra.mxu0 %v3782_v29 }
 0x323   :  { %3787 = vmatprep.subr.bf16.mxu0 %v3786_v39 }
 0x326   :  { %3789 = vmatpush3.bf16.msra.mxu0 %v3786_v39 }
 0x327   :  { %3791 = vmatprep.subr.bf16.mxu0 %v3790_v52 }
 0x32a   :  { %3793 = vmatpush3.bf16.msra.mxu0 %v3790_v52 }
 0x32b   :  { %3795 = vmatprep.subr.bf16.mxu0 %v3794_v18 }
 0x32e   :  { %3797 = vmatpush3.bf16.msra.mxu0 %v3794_v18 }
 0x32f   :  { %3799 = vmatprep.subr.bf16.mxu0 %v3798_v63 }
 0x332   :  { %3801 = vmatpush3.bf16.msra.mxu0 %v3798_v63 }
 0x333   :  { %3803 = vmatprep.subr.bf16.mxu0 %v3802_v49 }
 0x336   :  { %3805 = vmatpush3.bf16.msra.mxu0 %v3802_v49 }
 0x337   :  { %3807 = vmatprep.subr.bf16.mxu0 %v3806_v62 }
 0x33a   :  { %3809 = vmatpush3.bf16.msra.mxu0 %v3806_v62 }
 0x33b   :  { %3811 = vmatprep.subr.bf16.mxu0 %v3810_v10 }
 0x33e   :  { %3813 = vmatpush3.bf16.msra.mxu0 %v3810_v10 }
 0x3f4   :  { %v3222_v12 = vpop.f32.mrb[6].mxu0 }
 0x3f5   :  { %v850_v37 = vadd.f32 %v3222_v12, %v2626_v41  ;;  %v844_v56 = vpop.f32.mrb[7].mxu0 }
 0x3f6   :  { %v845_v31 = vadd.f32 %v2626_v41, %v844_v56  ;;  %v2636_v56 = vld [vmem:[%s5657_s7 + $0x80] sm:$0xff] }
 0x3f7   :  { %v856_v57 = vmul.f32 0.70710677, %v850_v37  ;;  %v854_v10 = vmul.f32 0.5, %v850_v37  ;;  %v2639_v37 = vld [vmem:[%s5657_s7 + $0x98] sm:$0xff] }
 0x3f8   :  { %v855_v16 = vmul.f32 0.70710677, %v845_v31  ;;  %v853_v40 = vmul.f32 0.5, %v845_v31 }
 0x3f9   :  { %v858_v15 = vand.u32 2147483647, %v856_v57  ;;  %vm898_vm10 = vcmp.ge.f32.partialorder %v856_v57, 0.0  ;;  %v2637_v57 = vld [vmem:[%s5657_s7 + $0x88] sm:$0xff] }
 0x3fa   :  { %v857_v42 = vand.u32 2147483647, %v855_v16  ;;  %vm897_vm11 = vcmp.ge.f32.partialorder %v855_v16, 0.0  ;;  %v2638_v16 = vld [vmem:[%s5657_s7 + $0x90] sm:$0xff] }
 0x3fb   :  { %v860_v13 = vmul.f32 0.3275911, %v858_v15  ;;  %v886_v11 = vsub.f32 0.0, %v858_v15  ;;  %v3818_v31 = vpack.c.bf16 %v2639_v37, %v2638_v16 }
 0x3fc   :  { %v859_v19 = vmul.f32 0.3275911, %v857_v42  ;;  %v885_v0 = vsub.f32 0.0, %v857_v42 }
 0x3fd   :  { %v862_v17 = vadd.f32 1.0, %v860_v13  ;;  %v888_v21 = vmul.f32 %v886_v11, %v858_v15  ;;  %v3814_v15 = vpack.c.bf16 %v2637_v57, %v2636_v56  ;;  %v2641_v13 = vld [vmem:[%s5657_s7 + $0xa8] sm:$0xff] }
 0x3fe   :  { %v861_v5 = vadd.f32 1.0, %v859_v19  ;;  %v887_v24 = vmul.f32 %v885_v0, %v857_v42  ;;  %v2640_v42 = vld [vmem:[%s5657_s7 + $0xa0] sm:$0xff] }
 0x3ff   :  { %4162 = vrcp.f32 %v862_v17  ;;  %v891_v60 = vmul.f32 1.442695, %v888_v21  ;;  %3815 = vmatprep.subr.bf16.mxu0 %v3814_v15  ;;  %v3822_v19 = vpack.c.bf16 %v2641_v13, %v2640_v42  ;;  %v2642_v17 = vld [vmem:[%s5657_s7 + $0xb0] sm:$0xff]  ;;  %v2644_v0 = vld [vmem:[%s5657_s7 + $0xc0] sm:$0xff] }
 0x400   :  { %4164 = vrcp.f32 %v861_v5  ;;  %v889_v7 = vmul.f32 1.442695, %v887_v24  ;;  %v2643_v5 = vld [vmem:[%s5657_s7 + $0xb8] sm:$0xff] }
 0x401   :  { %4166 = vpow2.f32 %v891_v60  ;;  %v3826_v11 = vpack.c.bf16 %v2643_v5, %v2642_v17 }
 0x402   :  { %4168 = vpow2.f32 %v889_v7 }
 0x409   :  { %v4163_v20 = vpop.eup %4162 }
 0x40a   :  { %v4165_v22 = vpop.eup %4164  ;;  %v868_v23 = vmul.f32 1.0614054, %v4163_v20 }
 0x40b   :  { %v867_v4 = vmul.f32 1.0614054, %v4165_v22  ;;  %v4167_v2 = vpop.eup %4166 }
 0x40c   :  { %v870_v25 = vadd.f32 -1.4531521, %v868_v23  ;;  %v4169_v32 = vpop.eup %4168  ;;  %v2647_v23 = vld [vmem:[%s5657_s7 + $0xd8] sm:$0xff] }
 0x40d   :  { %v869_v26 = vadd.f32 -1.4531521, %v867_v4  ;;  %v2648_v4 = vld [vmem:[%s5657_s7 + $0xe0] sm:$0xff] }
 0x40e   :  { %v872_v27 = vmul.f32 %v4163_v20, %v870_v25  ;;  %v2649_v25 = vld [vmem:[%s5657_s7 + $0xe8] sm:$0xff] }
 0x40f   :  { %v871_v14 = vmul.f32 %v4165_v22, %v869_v26  ;;  %v3838_v60 = vpack.c.bf16 %v2649_v25, %v2648_v4  ;;  %v2650_v26 = vld [vmem:[%s5657_s7 + $0xf0] sm:$0xff] }
 0x410   :  { %v874_v6 = vadd.f32 1.4214138, %v872_v27  ;;  %v2651_v27 = vld [vmem:[%s5657_s7 + $0xf8] sm:$0xff] }
 0x411   :  { %v873_v28 = vadd.f32 1.4214138, %v871_v14  ;;  %v3842_v7 = vpack.c.bf16 %v2651_v27, %v2650_v26  ;;  %v2629_v14 = vld [vmem:[%s5658_s3 + $0x18] sm:$0x7f] }
 0x412   :  { %v876_v51 = vmul.f32 %v4163_v20, %v874_v6  ;;  %v4801_v6 = vrot.slane %v2629_v14, %v4350_v34 }
 0x413   :  { %v875_v1 = vmul.f32 %v4165_v22, %v873_v28  ;;  %v2627_v28 = vld [vmem:[%s5669_s14] ss:$0 sm:$0xff] }
 0x414   :  { %v878_v29 = vadd.f32 -0.28449672, %v876_v51  ;;  %v4807_v51 = vrot.slane %v2629_v14, %v4353_v35 }
 0x415   :  { %v877_v8 = vadd.f32 -0.28449672, %v875_v1 }
 0x416   :  { %v880_v30 = vmul.f32 %v4163_v20, %v878_v29  ;;  %v2628_v29 = vld [vmem:[%s5658_s3 + $0x10] sm:$0xff] }
 0x417   :  { %v879_v39 = vmul.f32 %v4165_v22, %v877_v8 }
 0x418   :  { %v882_v59 = vadd.f32 0.2548296, %v880_v30 }
 0x419   :  { %v881_v50 = vadd.f32 0.2548296, %v879_v39  ;;  %v4813_v39 = vmul.f32 0.0, %v4801_v6 }
 0x41a   :  { %v884_v52 = vmul.f32 %v4163_v20, %v882_v59  ;;  %v2645_v20 = vld [vmem:[%s5657_s7 + $0xc8] sm:$0xff] }
 0x41b   :  { %v883_v44 = vmul.f32 %v4165_v22, %v881_v50  ;;  %v3830_v21 = vpack.c.bf16 %v2645_v20, %v2644_v0  ;;  %v2646_v22 = vld [vmem:[%s5657_s7 + $0xd0] sm:$0xff]  ;;  %v4816_v50 = vmul.f32 0.0, %v4807_v51 }
 0x41c   :  { %v894_v18 = vmul.f32 %v4167_v2, %v884_v52  ;;  %v3834_v24 = vpack.c.bf16 %v2647_v23, %v2646_v22  ;;  %v4819_v52 = vrot.slane %v2629_v14, %v4356_v36  ;;  %v4822_v2 = vrot.slane %v2629_v14, %v4382_v43 }
 0x41d   :  { %v893_v47 = vmul.f32 %v4169_v32, %v883_v44  ;;  %v1023_v32 = vrot.slane %v2628_v29, %v4364_v38 }
 0x41e   :  { %v896_v63 = vsub.f32 1.0, %v894_v18  ;;  %v1029_v18 = vrot.slane %v2628_v29, %v4350_v34  ;;  %v4850_v34 = vrot.slane %v2628_v29, %v309_v48 }
 0x41f   :  { %v895_v53 = vsub.f32 1.0, %v893_v47  ;;  %v4830_v47 = vrot.slane %v2628_v29, %v4353_v35  ;;  %v4853_v35 = vrot.slane %v2629_v14, %v4364_v38  ;;  %v4869_v38 = vrot.slane %v2629_v14, %v4388_v45 }
 0x420   :  { %v900_v3 = vsub.f32 0.0, %v896_v63 }
 0x421   :  { %v899_v49 = vsub.f32 0.0, %v895_v53 }
 0x422   :  { %v902_v58 = vsel %vm898_vm10, %v896_v63, %v900_v3  ;;  %v4833_v63 = vrot.slane %v2628_v29, %v4356_v36  ;;  %v4839_v3 = vrot.slane %v2628_v29, %v4388_v45  ;;  %v1199_v36 = vrot.slane %v4813_v39, 1 }
 0x423   :  { %v904_v55 = vadd.f32 1.0, %v902_v58  ;;  %v901_v62 = vsel %vm897_vm11, %v895_v53, %v899_v49  ;;  %v4836_v53 = vrot.slane %v2628_v29, %v4382_v43  ;;  %v4846_v58 = vrot.slane %v2628_v29, %v4391_v46 }
 0x424   :  { %v903_v9 = vadd.f32 1.0, %v901_v62  ;;  %v1218_v43 = vrot.slane %v4816_v50, 2 }
 0x425   :  { %v906_v12 = vmul.f32 %v904_v55, %v854_v10  ;;  %v4858_v55 = vmul.f32 0.0, %v4819_v52 }
 0x426   :  { %v905_v41 = vmul.f32 %v903_v9, %v853_v40 }
 0x428   :  { %3255 = vmatprep.mubr.f32.mxu0 %v905_v41 }
 0x429   :  { %3256 = vmatmul.mubr.f32.vlgmr.msra.gmra.mrb[8].mxu0 %v906_v12 }
 0x42a   :  { %3817 = vmatpush3.bf16.msra.mxu0 %v3814_v15 }
 0x42b   :  { %3819 = vmatprep.subr.bf16.mxu0 %v3818_v31 }
 0x42e   :  { %3821 = vmatpush3.bf16.msra.mxu0 %v3818_v31 }
 0x42f   :  { %3823 = vmatprep.subr.bf16.mxu0 %v3822_v19 }
 0x432   :  { %3825 = vmatpush3.bf16.msra.mxu0 %v3822_v19 }
 0x433   :  { %3827 = vmatprep.subr.bf16.mxu0 %v3826_v11 }
 0x436   :  { %3829 = vmatpush3.bf16.msra.mxu0 %v3826_v11 }
 0x437   :  { %3831 = vmatprep.subr.bf16.mxu0 %v3830_v21 }
 0x43a   :  { %3833 = vmatpush3.bf16.msra.mxu0 %v3830_v21 }
 0x43b   :  { %3835 = vmatprep.subr.bf16.mxu0 %v3834_v24 }
 0x43e   :  { %3837 = vmatpush3.bf16.msra.mxu0 %v3834_v24  ;;  %v4888_v24 = vrot.slane %v2629_v14, %v4391_v46 }
 0x43f   :  { %3839 = vmatprep.subr.bf16.mxu0 %v3838_v60 }
 0x442   :  { %3841 = vmatpush3.bf16.msra.mxu0 %v3838_v60 }
 0x443   :  { %3843 = vmatprep.subr.bf16.mxu0 %v3842_v7 }
 0x446   :  { %3845 = vmatpush3.bf16.msra.mxu0 %v3842_v7 }
 0x4fc   :  { %v3257_v1 = vpop.f32.mrb[8].mxu0 }
 0x4fd   :  { %v1002_v8 = vadd.f32 %v3257_v1, %v2627_v28  ;;  %v996_v30 = vpop.f32.mrb[9].mxu0 }
 0x4fe   :  { %v997_v59 = vadd.f32 %v2627_v28, %v996_v30 }
 0x4ff   :  { %v4825_v44 = vadd.f32 %v1002_v8, %v4409_v54 }
 0x500   :  { %v4842_v49 = vadd.f32 %v997_v59, %v4426_v61  ;;  %v4861_v61 = vmul.f32 0.0, %v4822_v2 }
 0x501   :  { %v1010_v54 = vrot.slane %v4825_v44, 1 }
 0x502   :  { %v1009_v33 = vrot.slane %v4842_v49, 1 }
 0x503   :  { %v1014_v62 = vsel %vm157_vm1, 0.0, %v1010_v54  ;;  %v4865_v40 = vsel %vm157_vm1, %v1010_v54, 0.0 }
 0x504   :  { %v1025_v48 = vmul.f32 %v1023_v32, %v1014_v62  ;;  %v1032_v9 = vmul.f32 %v1029_v18, %v1014_v62  ;;  %v1033_v10 = vmul.f32 %v1029_v18, %v4865_v40  ;;  %v1054_v41 = vmul.f32 %v4830_v47, %v1014_v62 }
 0x505   :  { %v1055_v12 = vmul.f32 %v4830_v47, %v4865_v40  ;;  %v1076_v56 = vmul.f32 %v4833_v63, %v1014_v62  ;;  %v1077_v57 = vmul.f32 %v4833_v63, %v4865_v40  ;;  %v1098_v16 = vmul.f32 %v4836_v53, %v1014_v62 }
 0x506   :  { %v1041_v15 = vrot.slane %v1032_v9, 1  ;;  %v1042_v37 = vrot.slane %v1033_v10, 1  ;;  %v1063_v45 = vrot.slane %v1054_v41, 2  ;;  %v1099_v31 = vmul.f32 %v4836_v53, %v4865_v40 }
 0x507   :  { %v1064_v42 = vrot.slane %v1055_v12, 2  ;;  %v1085_v13 = vrot.slane %v1076_v56, 3  ;;  %v1086_v19 = vrot.slane %v1077_v57, 3  ;;  %v1107_v17 = vrot.slane %v1098_v16, 4 }
 0x508   :  { %v1043_v5 = vsel %vm157_vm1, %v1041_v15, %v1042_v37  ;;  %v1108_v11 = vrot.slane %v1099_v31, 4  ;;  %v1120_v0 = vmul.f32 %v4839_v3, %v1014_v62  ;;  %v1121_v20 = vmul.f32 %v4839_v3, %v4865_v40 }
 0x509   :  { %v1047_v21 = vadd.f32 %v1043_v5, %v1025_v48  ;;  %v1065_v22 = vsel %vm204_vm2, %v1063_v45, %v1064_v42  ;;  %v1142_v23 = vmul.f32 %v4846_v58, %v1014_v62  ;;  %v1087_v4 = vsel %vm227_vm3, %v1085_v13, %v1086_v19 }
 0x50a   :  { %v1129_v25 = vrot.slane %v1120_v0, 5  ;;  %v1130_v60 = vrot.slane %v1121_v20, 5  ;;  %v1143_v26 = vmul.f32 %v4846_v58, %v4865_v40  ;;  %v1164_v28 = vmul.f32 %v4850_v34, %v1014_v62 }
 0x50b   :  { %v1069_v27 = vadd.f32 %v1065_v22, %v1047_v21  ;;  %v1151_v7 = vrot.slane %v1142_v23, 6  ;;  %v1165_v1 = vmul.f32 %v4850_v34, %v4865_v40  ;;  %v1109_v29 = vsel %vm250_vm4, %v1107_v17, %v1108_v11 }
 0x50c   :  { %v1152_v8 = vrot.slane %v1143_v26, 6  ;;  %v1013_v46 = vsel %vm157_vm1, 0.0, %v1009_v33  ;;  %v4899_v14 = vsel %vm157_vm1, %v1009_v33, 0.0  ;;  %v1131_v59 = vsel %vm273_vm5, %v1129_v25, %v1130_v60 }
 0x50d   :  { %v1091_v30 = vadd.f32 %v1087_v4, %v1069_v27  ;;  %v1173_v54 = vrot.slane %v1164_v28, 7  ;;  %v1174_v48 = vrot.slane %v1165_v1, 7  ;;  %v1024_v9 = vmul.f32 %v1023_v32, %v1013_v46 }
 0x50e   :  { %v1030_v10 = vmul.f32 %v1029_v18, %v1013_v46  ;;  %v1031_v62 = vmul.f32 %v1029_v18, %v4899_v14  ;;  %v1052_v41 = vmul.f32 %v4830_v47, %v1013_v46  ;;  %v1153_v56 = vsel %vm296_vm6, %v1151_v7, %v1152_v8 }
 0x50f   :  { %v1113_v12 = vadd.f32 %v1109_v29, %v1091_v30  ;;  %v1053_v57 = vmul.f32 %v4830_v47, %v4899_v14  ;;  %v1074_v33 = vmul.f32 %v4833_v63, %v1013_v46  ;;  %v1075_v45 = vmul.f32 %v4833_v63, %v4899_v14 }
 0x510   :  { %v1038_v16 = vrot.slane %v1030_v10, 1  ;;  %v1039_v15 = vrot.slane %v1031_v62, 1  ;;  %v1060_v37 = vrot.slane %v1052_v41, 2  ;;  %v1096_v18 = vmul.f32 %v4836_v53, %v1013_v46 }
 0x511   :  { %v1135_v32 = vadd.f32 %v1131_v59, %v1113_v12  ;;  %v1061_v31 = vrot.slane %v1053_v57, 2  ;;  %v1082_v42 = vrot.slane %v1074_v33, 3  ;;  %v1083_v19 = vrot.slane %v1075_v45, 3 }
 0x512   :  { %v1040_v13 = vsel %vm157_vm1, %v1038_v16, %v1039_v15  ;;  %v1097_v17 = vmul.f32 %v4836_v53, %v4899_v14  ;;  %v1118_v47 = vmul.f32 %v4839_v3, %v1013_v46  ;;  %v1175_v11 = vsel %vm319_vm7, %v1173_v54, %v1174_v48 }
 0x513   :  { %v1157_v5 = vadd.f32 %v1153_v56, %v1135_v32  ;;  %v1046_v0 = vadd.f32 %v1040_v13, %v1024_v9  ;;  %v1062_v20 = vsel %vm204_vm2, %v1060_v37, %v1061_v31  ;;  %v1084_v63 = vsel %vm227_vm3, %v1082_v42, %v1083_v19 }
 0x514   :  { %v1104_v21 = vrot.slane %v1096_v18, 4  ;;  %v1105_v22 = vrot.slane %v1097_v17, 4  ;;  %v1119_v23 = vmul.f32 %v4839_v3, %v4899_v14  ;;  %v1126_v25 = vrot.slane %v1118_v47, 5 }
 0x515   :  { %v1068_v4 = vadd.f32 %v1062_v20, %v1046_v0  ;;  %v1140_v60 = vmul.f32 %v4846_v58, %v1013_v46  ;;  %v1141_v53 = vmul.f32 %v4846_v58, %v4899_v14  ;;  %v1179_v26 = vadd.f32 %v1175_v11, %v1157_v5 }
 0x516   :  { %v1127_v27 = vrot.slane %v1119_v23, 5  ;;  %v1162_v7 = vmul.f32 %v4850_v34, %v1013_v46  ;;  %v1163_v28 = vmul.f32 %v4850_v34, %v4899_v14  ;;  %v1237_v29 = vrot.slane %v4858_v55, 3 }
 0x517   :  { %v1090_v1 = vadd.f32 %v1084_v63, %v1068_v4  ;;  %v4928_v8 = vmul.f32 0.0, %v4869_v38  ;;  %v4931_v3 = vmul.f32 0.0, %v4888_v24  ;;  %v1106_v30 = vsel %vm250_vm4, %v1104_v21, %v1105_v22 }
 0x518   :  { %v1148_v59 = vrot.slane %v1140_v60, 6  ;;  %v1149_v58 = vrot.slane %v1141_v53, 6  ;;  %v1185_v54 = vmul.f32 %v4853_v35, %v4865_v40  ;;  %v1128_v48 = vsel %vm273_vm5, %v1126_v25, %v1127_v27 }
 0x519   :  { %v1112_v46 = vadd.f32 %v1106_v30, %v1090_v1  ;;  %v1192_v34 = vmul.f32 %v4801_v6, %v4899_v14  ;;  %v1194_v55 = vmul.f32 %v4801_v6, %v4865_v40  ;;  %v1170_v9 = vrot.slane %v1162_v7, 7 }
 0x51a   :  { %v1171_v10 = vrot.slane %v1163_v28, 7  ;;  %v1187_v62 = vadd.f32 %v1185_v54, %v1179_v26  ;;  %v1213_v41 = vmul.f32 %v4807_v51, %v4865_v40  ;;  %v1211_v57 = vmul.f32 %v4807_v51, %v4899_v14  ;;  %v2631_v54 = vld [vmem:[%s5660_s4 + $0x1] ss:$0 sm:$0xff] }
 0x51b   :  { %v1134_v12 = vadd.f32 %v1128_v48, %v1112_v46  ;;  %v1201_v56 = vrot.slane %v1194_v55, 1  ;;  %v1256_v33 = vrot.slane %v4861_v61, 4  ;;  %v1150_v16 = vsel %vm296_vm6, %v1148_v59, %v1149_v58 }
 0x51c   :  { %v1198_v15 = vrot.slane %v1192_v34, 1  ;;  %v1220_v37 = vrot.slane %v1213_v41, 2  ;;  %v1232_v6 = vmul.f32 %v4819_v52, %v4865_v40  ;;  %v1230_v31 = vmul.f32 %v4819_v52, %v4899_v14 }
 0x51d   :  { %v1156_v45 = vadd.f32 %v1150_v16, %v1134_v12  ;;  %v1202_v32 = vsel %vm157_vm1, %v1201_v56, %v1199_v36  ;;  %v1275_v42 = vrot.slane %v4928_v8, 5  ;;  %v1172_v51 = vsel %vm319_vm7, %v1170_v9, %v1171_v10 }
 0x51e   :  { %v1184_v61 = vmul.f32 %v4853_v35, %v4899_v14  ;;  %v1206_v18 = vadd.f32 %v1202_v32, %v1187_v62  ;;  %v1239_v13 = vrot.slane %v1232_v6, 3  ;;  %v1217_v17 = vrot.slane %v1211_v57, 2 }
 0x51f   :  { %v1178_v19 = vadd.f32 %v1172_v51, %v1156_v45  ;;  %v1221_v47 = vsel %vm204_vm2, %v1220_v37, %v1218_v43  ;;  %v1251_v5 = vmul.f32 %v4822_v2, %v4865_v40  ;;  %v1200_v52 = vsel %vm157_vm1, %v1198_v15, %v1199_v36 }
 0x520   :  { %v1225_v11 = vadd.f32 %v1221_v47, %v1206_v18  ;;  %v1249_v0 = vmul.f32 %v4822_v2, %v4899_v14  ;;  %v1270_v35 = vmul.f32 %v4869_v38, %v4865_v40  ;;  %v1236_v63 = vrot.slane %v1230_v31, 3 }
 0x521   :  { %v1186_v20 = vadd.f32 %v1184_v61, %v1178_v19  ;;  %v1240_v21 = vsel %vm227_vm3, %v1239_v13, %v1237_v29  ;;  %v1258_v22 = vrot.slane %v1251_v5, 4  ;;  %v1268_v4 = vmul.f32 %v4869_v38, %v4899_v14 }
 0x522   :  { %v1244_v23 = vadd.f32 %v1240_v21, %v1225_v11  ;;  %v1277_v25 = vrot.slane %v1270_v35, 5  ;;  %v1289_v39 = vmul.f32 %v4888_v24, %v4865_v40  ;;  %v1219_v2 = vsel %vm204_vm2, %v1217_v17, %v1218_v43  ;;  %v2635_v35 = vld [vmem:[%s5662_s6 + $0x1] ss:$0 sm:$0xff] }
 0x523   :  { %v1205_v36 = vadd.f32 %v1200_v52, %v1186_v20  ;;  %v1259_v60 = vsel %vm250_vm4, %v1258_v22, %v1256_v33  ;;  %v1294_v53 = vrot.slane %v4931_v3, 6  ;;  %v1255_v26 = vrot.slane %v1249_v0, 4  ;;  %v2633_v52 = vld [vmem:[%s5661_s5 + $0x1] ss:$0 sm:$0xff] }
 0x524   :  { %v1263_v27 = vadd.f32 %v1259_v60, %v1244_v23  ;;  %v1287_v7 = vmul.f32 %v4888_v24, %v4899_v14  ;;  %v1296_v28 = vrot.slane %v1289_v39, 6  ;;  %v1278_v1 = vsel %vm273_vm5, %v1277_v25, %v1275_v42  ;;  %v2654_v23 = vld [vmem:[%s5663_s9 + $0x80] sm:$0xff]  ;;  %v2656_v39 = vld [vmem:[%s5663_s9 + $0x90] sm:$0xff] }
 0x525   :  { %v1224_v38 = vadd.f32 %v1219_v2, %v1205_v36  ;;  %v1238_v40 = vsel %vm227_vm3, %v1236_v63, %v1237_v29  ;;  %v1274_v8 = vrot.slane %v1268_v4, 5  ;;  %v1257_v59 = vsel %vm250_vm4, %v1255_v26, %v1256_v33  ;;  %v2655_v4 = vld [vmem:[%s5663_s9 + $0x88] sm:$0xff]  ;;  %v2657_v36 = vld [vmem:[%s5663_s9 + $0x98] sm:$0xff]  ;;  %v2658_v60 = vld [vmem:[%s5663_s9 + $0xa0] sm:$0xff] }
 0x526   :  { %v1282_v30 = vadd.f32 %v1278_v1, %v1263_v27  ;;  %v1297_v43 = vsel %vm296_vm6, %v1296_v28, %v1294_v53  ;;  %v1293_v58 = vrot.slane %v1287_v7, 6  ;;  %v3846_v25 = vpack.c.bf16 %v2655_v4, %v2654_v23  ;;  %v2660_v27 = vld [vmem:[%s5663_s9 + $0xb0] sm:$0xff]  ;;  %v2661_v7 = vld [vmem:[%s5663_s9 + $0xb8] sm:$0xff]  ;;  %v2662_v28 = vld [vmem:[%s5663_s9 + $0xc0] sm:$0xff] }
 0x527   :  { %v1243_v50 = vadd.f32 %v1238_v40, %v1224_v38  ;;  %v1276_v14 = vsel %vm273_vm5, %v1274_v8, %v1275_v42  ;;  %v3850_v2 = vpack.c.bf16 %v2657_v36, %v2656_v39  ;;  %v3858_v38 = vpack.c.bf16 %v2661_v7, %v2660_v27  ;;  %v2663_v1 = vld [vmem:[%s5663_s9 + $0xc8] sm:$0xff]  ;;  %v2664_v8 = vld [vmem:[%s5663_s9 + $0xd0] sm:$0xff] }
 0x528   :  { %v1301_v3 = vadd.f32 %v1297_v43, %v1282_v30  ;;  %v1295_v29 = vsel %vm296_vm6, %v1293_v58, %v1294_v53  ;;  %3847 = vmatprep.subr.bf16.mxu0 %v3846_v25  ;;  %v2659_v53 = vld [vmem:[%s5663_s9 + $0xa8] sm:$0xff]  ;;  %v3862_v40 = vpack.c.bf16 %v2663_v1, %v2662_v28  ;;  %v2665_v30 = vld [vmem:[%s5663_s9 + $0xd8] sm:$0xff]  ;;  %v2666_v43 = vld [vmem:[%s5663_s9 + $0xe0] sm:$0xff]  ;;  %vm1895_vm1 = vcmask 1041409  }
 0x529   :  { %v1262_v24 = vadd.f32 %v1257_v59, %v1243_v50  ;;  %v3854_v26 = vpack.c.bf16 %v2659_v53, %v2658_v60  ;;  %v3866_v50 = vpack.c.bf16 %v2665_v30, %v2664_v8  ;;  %v2667_v59 = vld [vmem:[%s5663_s9 + $0xe8] sm:$0xff]  ;;  %vm2612_vm2 = vcmask 254976  }
 0x52a   :  { %v1311_v48 = vadd.f32 %v2631_v54, %v1301_v3  ;;  %v3870_v58 = vpack.c.bf16 %v2667_v59, %v2666_v43  ;;  %v2668_v3 = vld [vmem:[%s5663_s9 + $0xf0] sm:$0xff]  ;;  %v2675_v43 = vld [vmem:[%s5664_s11 + $0x98] sm:$0xff] }
 0x52b   :  { %v1281_v46 = vadd.f32 %v1276_v14, %v1262_v24  ;;  %v2672_v14 = vld [vmem:[%s5664_s11 + $0x80] sm:$0xff] }
 0x52c   :  { %v1320_v9 = vmul.f32 %v1311_v48, %v1311_v48 }
 0x52d   :  { %v1300_v34 = vadd.f32 %v1295_v29, %v1281_v46  ;;  %v2673_v46 = vld [vmem:[%s5664_s11 + $0x88] sm:$0xff]  ;;  %v2653_v29 = vld [vmem:[%s5665_s8 + $0x1] ss:$0 sm:$0xff] }
 0x52f   :  { %v1310_v55 = vadd.f32 %v2631_v54, %v1300_v34  ;;  %v2669_v54 = vld [vmem:[%s5663_s9 + $0xf8] sm:$0xff] }
 0x530   :  { %v3874_v24 = vpack.c.bf16 %v2669_v54, %v2668_v3 }
 0x531   :  { %v1312_v10 = vadd.f32 %v1311_v48, %v1310_v55  ;;  %v1319_v62 = vmul.f32 %v1310_v55, %v1310_v55 }
 0x533   :  { %v1313_v41 = vrot.slane %v1312_v10, 4  ;;  %v1321_v12 = vadd.f32 %v1320_v9, %v1319_v62 }
 0x535   :  { %v1314_v56 = vadd.f32 %v1313_v41, %v1312_v10  ;;  %v1322_v57 = vrot.slane %v1321_v12, 4 }
 0x537   :  { %v1315_v33 = vrot.slane %v1314_v56, 2  ;;  %v1323_v16 = vadd.f32 %v1322_v57, %v1321_v12 }
 0x539   :  { %v1316_v15 = vadd.f32 %v1315_v33, %v1314_v56  ;;  %v1324_v37 = vrot.slane %v1323_v16, 2 }
 0x53b   :  { %v1317_v6 = vrot.slane %v1316_v15, 1  ;;  %v1325_v45 = vadd.f32 %v1324_v37, %v1323_v16 }
 0x53d   :  { %v1318_v32 = vadd.f32 %v1317_v6, %v1316_v15  ;;  %v1326_v31 = vrot.slane %v1325_v45, 1 }
 0x53f   :  { %v1327_v42 = vadd.f32 %v1326_v31, %v1325_v45  ;;  %v1328_v51 = vmul.f32 0.0625, %v1318_v32 }
 0x541   :  { %v1329_v61 = vmul.f32 0.0625, %v1327_v42  ;;  %v1330_v18 = vmul.f32 %v1328_v51, %v1328_v51  ;;  %v1332_v17 = vsub.f32 %v1310_v55, %v1328_v51  ;;  %v1333_v47 = vsub.f32 %v1311_v48, %v1328_v51 }
 0x542   :  { %v5051_v48 = vpack.c.bf16 %v2673_v46, %v2672_v14  ;;  %v2677_v14 = vld [vmem:[%s5664_s11 + $0xa8] sm:$0xff] }
 0x543   :  { %v1331_v13 = vsub.f32 %v1329_v61, %v1330_v18 }
 0x545   :  { %v1334_v19 = vadd.f32 1e-05, %v1331_v13 }
 0x547   :  { %4170 = vrsqrt.f32 %v1334_v19 }
 0x551   :  { %v4171_v5 = vpop.eup %4170 }
 0x552   :  { %v1336_v11 = vmul.f32 %v4171_v5, %v1332_v17  ;;  %v1337_v0 = vmul.f32 %v4171_v5, %v1333_v47 }
 0x554   :  { %v1346_v20 = vmul.f32 %v2633_v52, %v1336_v11  ;;  %v1347_v63 = vmul.f32 %v2633_v52, %v1337_v0 }
 0x556   :  { %v1356_v21 = vadd.f32 %v2635_v35, %v1346_v20  ;;  %v1357_v22 = vadd.f32 %v2635_v35, %v1347_v63 }
 0x558   :  { %3290 = vmatprep.mubr.f32.mxu0 %v1356_v21 }
 0x559   :  { %3291 = vmatmul.mubr.f32.vlgmr.msra.gmra.mrb[10].mxu0 %v1357_v22 }
 0x55a   :  { %3849 = vmatpush3.bf16.msra.mxu0 %v3846_v25 }
 0x55b   :  { %3851 = vmatprep.subr.bf16.mxu0 %v3850_v2 }
 0x55e   :  { %3853 = vmatpush3.bf16.msra.mxu0 %v3850_v2 }
 0x55f   :  { %3855 = vmatprep.subr.bf16.mxu0 %v3854_v26 }
 0x562   :  { %3857 = vmatpush3.bf16.msra.mxu0 %v3854_v26 }
 0x563   :  { %3859 = vmatprep.subr.bf16.mxu0 %v3858_v38 }
 0x566   :  { %3861 = vmatpush3.bf16.msra.mxu0 %v3858_v38 }
 0x567   :  { %3863 = vmatprep.subr.bf16.mxu0 %v3862_v40 }
 0x56a   :  { %3865 = vmatpush3.bf16.msra.mxu0 %v3862_v40 }
 0x56b   :  { %3867 = vmatprep.subr.bf16.mxu0 %v3866_v50 }
 0x56e   :  { %3869 = vmatpush3.bf16.msra.mxu0 %v3866_v50  ;;  %v2674_v50 = vld [vmem:[%s5664_s11 + $0x90] sm:$0xff] }
 0x56f   :  { %3871 = vmatprep.subr.bf16.mxu0 %v3870_v58  ;;  %v3882_v54 = vpack.c.bf16 %v2675_v43, %v2674_v50  ;;  %v1882_v50 = vld [vmem:[%s5670_s15 + $0x30] sm:$0xff]  ;;  %v1883_v43 = vld [vmem:[%s5670_s15 + $0x38] sm:$0xff] }
 0x572   :  { %3873 = vmatpush3.bf16.msra.mxu0 %v3870_v58 }
 0x573   :  { %3875 = vmatprep.subr.bf16.mxu0 %v3874_v24 }
 0x576   :  { %3877 = vmatpush3.bf16.msra.mxu0 %v3874_v24  ;;  %v2676_v24 = vld [vmem:[%s5664_s11 + $0xa0] sm:$0xff] }
 0x577   :  { %3879 = vmatprep.subr.bf16.mxu0 %v5051_v48  ;;  %v3886_v46 = vpack.c.bf16 %v2677_v14, %v2676_v24  ;;  %v1886_v14 = vld [vmem:[%s5670_s15 + $0x50] sm:$0xff] }
 0x62c   :  { %v3292_v34 = vpop.f32.mrb[10].mxu0 }
 0x62d   :  { %v1455_v55 = vadd.f32 %v3292_v34, %v2653_v29  ;;  %v1449_v9 = vpop.f32.mrb[11].mxu0  ;;  %v2679_v34 = vld [vmem:[%s5664_s11 + $0xb8] sm:$0xff] }
 0x62e   :  { %v1450_v10 = vadd.f32 %v2653_v29, %v1449_v9  ;;  %v2678_v29 = vld [vmem:[%s5664_s11 + $0xb0] sm:$0xff]  ;;  %v2680_v9 = vld [vmem:[%s5664_s11 + $0xc0] sm:$0xff] }
 0x62f   :  { %v1461_v62 = vmul.f32 0.70710677, %v1455_v55  ;;  %v1459_v59 = vmul.f32 0.5, %v1455_v55  ;;  %v3890_v55 = vpack.c.bf16 %v2679_v34, %v2678_v29  ;;  %v2689_v34 = vld [vmem:[%s5668_s12 + $0x1] ss:$0 sm:$0xff] }
 0x630   :  { %v1460_v41 = vmul.f32 0.70710677, %v1450_v10  ;;  %v1458_v8 = vmul.f32 0.5, %v1450_v10 }
 0x631   :  { %v1463_v12 = vand.u32 2147483647, %v1461_v62  ;;  %vm1503_vm12 = vcmp.ge.f32.partialorder %v1461_v62, 0.0  ;;  %v2682_v62 = vld [vmem:[%s5664_s11 + $0xd0] sm:$0xff] }
 0x632   :  { %v1462_v56 = vand.u32 2147483647, %v1460_v41  ;;  %vm1502_vm13 = vcmp.ge.f32.partialorder %v1460_v41, 0.0  ;;  %v2683_v41 = vld [vmem:[%s5664_s11 + $0xd8] sm:$0xff] }
 0x633   :  { %v1465_v57 = vmul.f32 0.3275911, %v1463_v12  ;;  %v1491_v37 = vsub.f32 0.0, %v1463_v12 }
 0x634   :  { %v1464_v33 = vmul.f32 0.3275911, %v1462_v56  ;;  %v1490_v6 = vsub.f32 0.0, %v1462_v56 }
 0x635   :  { %v1467_v16 = vadd.f32 1.0, %v1465_v57  ;;  %v1493_v32 = vmul.f32 %v1491_v37, %v1463_v12  ;;  %v3898_v12 = vpack.c.bf16 %v2683_v41, %v2682_v62  ;;  %v2685_v57 = vld [vmem:[%s5664_s11 + $0xe8] sm:$0xff] }
 0x636   :  { %v1466_v15 = vadd.f32 1.0, %v1464_v33  ;;  %v1492_v51 = vmul.f32 %v1490_v6, %v1462_v56  ;;  %v2684_v56 = vld [vmem:[%s5664_s11 + $0xe0] sm:$0xff] }
 0x637   :  { %4172 = vrcp.f32 %v1467_v16  ;;  %v1496_v13 = vmul.f32 1.442695, %v1493_v32  ;;  %v3902_v33 = vpack.c.bf16 %v2685_v57, %v2684_v56  ;;  %v2686_v16 = vld [vmem:[%s5664_s11 + $0xf0] sm:$0xff]  ;;  %v2671_v6 = vld [vmem:[%s5666_s10 + $0x1] ss:$0 sm:$0xff] }
 0x638   :  { %4174 = vrcp.f32 %v1466_v15  ;;  %v1494_v47 = vmul.f32 1.442695, %v1492_v51  ;;  %v2687_v15 = vld [vmem:[%s5664_s11 + $0xf8] sm:$0xff]  ;;  %v2690_v51 = vld [vmem:[%s5667_s13 + $0x80] sm:$0xff] }
 0x639   :  { %4176 = vpow2.f32 %v1496_v13  ;;  %v3906_v37 = vpack.c.bf16 %v2687_v15, %v2686_v16  ;;  %v2692_v13 = vld [vmem:[%s5667_s13 + $0x90] sm:$0xff] }
 0x63a   :  { %4178 = vpow2.f32 %v1494_v47  ;;  %v2694_v47 = vld [vmem:[%s5667_s13 + $0xa0] sm:$0xff] }
 0x641   :  { %v4173_v45 = vpop.eup %4172 }
 0x642   :  { %v4175_v31 = vpop.eup %4174  ;;  %v1473_v42 = vmul.f32 1.0614054, %v4173_v45 }
 0x643   :  { %v1472_v61 = vmul.f32 1.0614054, %v4175_v31  ;;  %v4177_v39 = vpop.eup %4176 }
 0x644   :  { %v1475_v18 = vadd.f32 -1.4531521, %v1473_v42  ;;  %v4179_v2 = vpop.eup %4178 }
 0x645   :  { %v1474_v19 = vadd.f32 -1.4531521, %v1472_v61  ;;  %v2691_v61 = vld [vmem:[%s5667_s13 + $0x88] sm:$0xff] }
 0x646   :  { %v1477_v17 = vmul.f32 %v4173_v45, %v1475_v18  ;;  %v3910_v18 = vpack.c.bf16 %v2691_v61, %v2690_v51 }
 0x647   :  { %v1476_v5 = vmul.f32 %v4175_v31, %v1474_v19  ;;  %v2693_v19 = vld [vmem:[%s5667_s13 + $0x98] sm:$0xff] }
 0x648   :  { %v1479_v52 = vadd.f32 1.4214138, %v1477_v17  ;;  %v3914_v17 = vpack.c.bf16 %v2693_v19, %v2692_v13 }
 0x649   :  { %v1478_v11 = vadd.f32 1.4214138, %v1476_v5  ;;  %v2695_v5 = vld [vmem:[%s5667_s13 + $0xa8] sm:$0xff] }
 0x64a   :  { %v1481_v0 = vmul.f32 %v4173_v45, %v1479_v52  ;;  %v3918_v52 = vpack.c.bf16 %v2695_v5, %v2694_v47 }
 0x64b   :  { %v1480_v35 = vmul.f32 %v4175_v31, %v1478_v11  ;;  %v2696_v11 = vld [vmem:[%s5667_s13 + $0xb0] sm:$0xff] }
 0x64c   :  { %v1483_v20 = vadd.f32 -0.28449672, %v1481_v0  ;;  %v2697_v0 = vld [vmem:[%s5667_s13 + $0xb8] sm:$0xff] }
 0x64d   :  { %v1482_v63 = vadd.f32 -0.28449672, %v1480_v35  ;;  %v2698_v35 = vld [vmem:[%s5667_s13 + $0xc0] sm:$0xff] }
 0x64e   :  { %v1485_v21 = vmul.f32 %v4173_v45, %v1483_v20  ;;  %v3922_v20 = vpack.c.bf16 %v2697_v0, %v2696_v11 }
 0x64f   :  { %v1484_v22 = vmul.f32 %v4175_v31, %v1482_v63  ;;  %v2699_v63 = vld [vmem:[%s5667_s13 + $0xc8] sm:$0xff] }
 0x650   :  { %v1487_v23 = vadd.f32 0.2548296, %v1485_v21  ;;  %v3926_v21 = vpack.c.bf16 %v2699_v63, %v2698_v35 }
 0x651   :  { %v1486_v4 = vadd.f32 0.2548296, %v1484_v22  ;;  %v2700_v22 = vld [vmem:[%s5667_s13 + $0xd0] sm:$0xff] }
 0x652   :  { %v1489_v25 = vmul.f32 %v4173_v45, %v1487_v23  ;;  %v2701_v23 = vld [vmem:[%s5667_s13 + $0xd8] sm:$0xff] }
 0x653   :  { %v1488_v36 = vmul.f32 %v4175_v31, %v1486_v4  ;;  %v4188_v4 = vmov 0.0|0.0  }
 0x654   :  { %v1499_v60 = vmul.f32 %v4177_v39, %v1489_v25  ;;  %3942 = vmatprep.subr.bf16.mxu1 %v4188_v4  ;;  %v1876_v25 = vld [vmem:[%s5670_s15] sm:$0xff]  ;;  %v1877_v39 = vld [vmem:[%s5670_s15 + $0x8] sm:$0xff] }
 0x655   :  { %v1498_v53 = vmul.f32 %v4179_v2, %v1488_v36  ;;  %v1878_v36 = vld [vmem:[%s5670_s15 + $0x10] sm:$0xff]  ;;  %v3943_v2 = vpack.c.bf16 %v1877_v39, %v1876_v25 }
 0x656   :  { %v1501_v26 = vsub.f32 1.0, %v1499_v60  ;;  %v1879_v60 = vld [vmem:[%s5670_s15 + $0x18] sm:$0xff] }
 0x657   :  { %v1500_v27 = vsub.f32 1.0, %v1498_v53  ;;  %v3930_v53 = vpack.c.bf16 %v2701_v23, %v2700_v22  ;;  %3944 = vmatpush3.bf16.msra.mxu1 %v3943_v2 }
 0x658   :  { %v1505_v7 = vsub.f32 0.0, %v1501_v26  ;;  %3945 = vmatprep.subr.bf16.mxu1 %v4188_v4 }
 0x659   :  { %v1504_v28 = vsub.f32 0.0, %v1500_v27 }
 0x65a   :  { %v1507_v38 = vsel %vm1503_vm12, %v1501_v26, %v1505_v7  ;;  %v2702_v26 = vld [vmem:[%s5667_s13 + $0xe0] sm:$0xff]  ;;  %v3946_v7 = vpack.c.bf16 %v1879_v60, %v1878_v36 }
 0x65b   :  { %v1509_v1 = vadd.f32 1.0, %v1507_v38  ;;  %v1506_v40 = vsel %vm1502_vm13, %v1500_v27, %v1504_v28  ;;  %v2703_v27 = vld [vmem:[%s5667_s13 + $0xe8] sm:$0xff]  ;;  %v1880_v28 = vld [vmem:[%s5670_s15 + $0x20] sm:$0xff] }
 0x65c   :  { %v1508_v30 = vadd.f32 1.0, %v1506_v40  ;;  %v1881_v38 = vld [vmem:[%s5670_s15 + $0x28] sm:$0xff]  ;;  %v2704_v40 = vld [vmem:[%s5667_s13 + $0xf0] sm:$0xff]  ;;  %3947 = vmatpush3.bf16.msra.mxu1 %v3946_v7 }
 0x65d   :  { %v1511_v3 = vmul.f32 %v1509_v1, %v1459_v59  ;;  %v3934_v1 = vpack.c.bf16 %v2703_v27, %v2702_v26  ;;  %3948 = vmatprep.subr.bf16.mxu1 %v4188_v4 }
 0x65e   :  { %v1510_v58 = vmul.f32 %v1508_v30, %v1458_v8  ;;  %v2705_v8 = vld [vmem:[%s5667_s13 + $0xf8] sm:$0xff]  ;;  %v3949_v30 = vpack.c.bf16 %v1881_v38, %v1880_v28 }
 0x65f   :  { %v3938_v59 = vpack.c.bf16 %v2705_v8, %v2704_v40 }
 0x660   :  { %3325 = vmatprep.mubr.f32.mxu0 %v1510_v58  ;;  %3950 = vmatpush3.bf16.msra.mxu1 %v3949_v30  ;;  %v3952_v58 = vpack.c.bf16 %v1883_v43, %v1882_v50 }
 0x661   :  { %3326 = vmatmul.mubr.f32.vlgmr.msra.gmra.mrb[12].mxu0 %v1511_v3  ;;  %3951 = vmatprep.subr.bf16.mxu1 %v4188_v4  ;;  %v1884_v3 = vld [vmem:[%s5670_s15 + $0x40] sm:$0xff] }
 0x662   :  { %3881 = vmatpush3.bf16.msra.mxu0 %v5051_v48  ;;  %v2681_v48 = vld [vmem:[%s5664_s11 + $0xc8] sm:$0xff] }
 0x663   :  { %3883 = vmatprep.subr.bf16.mxu0 %v3882_v54  ;;  %v3894_v10 = vpack.c.bf16 %v2681_v48, %v2680_v9 }
 0x664   :  { %3953 = vmatpush3.bf16.msra.mxu1 %v3952_v58 }
 0x665   :  { %3954 = vmatprep.subr.bf16.mxu1 %v4188_v4 }
 0x666   :  { %3885 = vmatpush3.bf16.msra.mxu0 %v3882_v54  ;;  %v1885_v54 = vld [vmem:[%s5670_s15 + $0x48] sm:$0xff] }
 0x667   :  { %3887 = vmatprep.subr.bf16.mxu0 %v3886_v46  ;;  %v3955_v24 = vpack.c.bf16 %v1885_v54, %v1884_v3  ;;  %v1888_v3 = vld [vmem:[%s5670_s15 + $0x60] sm:$0xff]  ;;  %v1889_v54 = vld [vmem:[%s5670_s15 + $0x68] sm:$0xff] }
 0x669   :  { %3956 = vmatpush3.bf16.msra.mxu1 %v3955_v24  ;;  %v3961_v24 = vpack.c.bf16 %v1889_v54, %v1888_v3  ;;  %v2727_v3 = vld [vmem:[%s5670_s15 + $0x110] sm:$0xff]  ;;  %v2728_v54 = vld [vmem:[%s5670_s15 + $0x118] sm:$0xff] }
 0x66a   :  { %3889 = vmatpush3.bf16.msra.mxu0 %v3886_v46  ;;  %v1887_v46 = vld [vmem:[%s5670_s15 + $0x58] sm:$0xff]  ;;  %3957 = vmatprep.subr.bf16.mxu1 %v4188_v4 }
 0x66b   :  { %3891 = vmatprep.subr.bf16.mxu0 %v3890_v55  ;;  %v3958_v29 = vpack.c.bf16 %v1887_v46, %v1886_v14  ;;  %v1890_v14 = vld [vmem:[%s5670_s15 + $0x70] sm:$0xff]  ;;  %v1891_v46 = vld [vmem:[%s5670_s15 + $0x78] sm:$0xff] }
 0x66d   :  { %3959 = vmatpush3.bf16.msra.mxu1 %v3958_v29  ;;  %v4190_v29 = vmov 0.0  }
 0x66e   :  { %3893 = vmatpush3.bf16.msra.mxu0 %v3890_v55  ;;  %3960 = vmatprep.subr.bf16.mxu1 %v4188_v4 }
 0x66f   :  { %3895 = vmatprep.subr.bf16.mxu0 %v3894_v10  ;;  %3430 = vmatprep.mubr.msk.f32.mxu1 %vm4189_vm0, %v4190_v29 }
 0x671   :  { %3962 = vmatpush3.bf16.msra.mxu1 %v3961_v24  ;;  %v3994_v24 = vpack.c.bf16 %v2728_v54, %v2727_v3  ;;  %v2766_v3 = vld [vmem:[%s5670_s15 + $0x248] sm:$0xff] }
 0x672   :  { %3897 = vmatpush3.bf16.msra.mxu0 %v3894_v10  ;;  %3963 = vmatprep.subr.bf16.mxu1 %v4188_v4 }
 0x673   :  { %3899 = vmatprep.subr.bf16.mxu0 %v3898_v12 }
 0x676   :  { %3901 = vmatpush3.bf16.msra.mxu0 %v3898_v12 }
 0x677   :  { %3903 = vmatprep.subr.bf16.mxu0 %v3902_v33 }
 0x67a   :  { %3905 = vmatpush3.bf16.msra.mxu0 %v3902_v33 }
 0x67b   :  { %3907 = vmatprep.subr.bf16.mxu0 %v3906_v37 }
 0x67e   :  { %3909 = vmatpush3.bf16.msra.mxu0 %v3906_v37 }
 0x67f   :  { %3911 = vmatprep.subr.bf16.mxu0 %v3910_v18 }
 0x734   :  { %v3327_v45 = vpop.f32.mrb[12].mxu0 }
 0x735   :  { %v1603_v32 = vpop.f32.mrb[13].mxu0  ;;  %v1609_v42 = vadd.f32 %v3327_v45, %v2671_v6 }
 0x736   :  { %v1604_v31 = vadd.f32 %v2671_v6, %v1603_v32 }
 0x738   :  { %3360 = vmatprep.mubr.f32.mxu0 %v1604_v31 }
 0x739   :  { %3361 = vmatmul.mubr.f32.vlgmr.msra.gmra.mrb[14].mxu0 %v1609_v42 }
 0x73a   :  { %3913 = vmatpush3.bf16.msra.mxu0 %v3910_v18 }
 0x73b   :  { %3915 = vmatprep.subr.bf16.mxu0 %v3914_v17 }
 0x73e   :  { %3917 = vmatpush3.bf16.msra.mxu0 %v3914_v17 }
 0x73f   :  { %3919 = vmatprep.subr.bf16.mxu0 %v3918_v52 }
 0x742   :  { %3921 = vmatpush3.bf16.msra.mxu0 %v3918_v52 }
 0x743   :  { %3923 = vmatprep.subr.bf16.mxu0 %v3922_v20 }
 0x746   :  { %3925 = vmatpush3.bf16.msra.mxu0 %v3922_v20 }
 0x747   :  { %3927 = vmatprep.subr.bf16.mxu0 %v3926_v21 }
 0x74a   :  { %3929 = vmatpush3.bf16.msra.mxu0 %v3926_v21 }
 0x74b   :  { %3931 = vmatprep.subr.bf16.mxu0 %v3930_v53 }
 0x74e   :  { %3933 = vmatpush3.bf16.msra.mxu0 %v3930_v53 }
 0x74f   :  { %3935 = vmatprep.subr.bf16.mxu0 %v3934_v1 }
 0x752   :  { %3937 = vmatpush3.bf16.msra.mxu0 %v3934_v1 }
 0x753   :  { %3939 = vmatprep.subr.bf16.mxu0 %v3938_v59 }
 0x756   :  { %3941 = vmatpush3.bf16.msra.mxu0 %v3938_v59 }
 0x80c   :  { %v3362_v55 = vpop.f32.mrb[14].mxu0 }
 0x80d   :  { %v1709_v9 = vadd.f32 %v3362_v55, %v2689_v34  ;;  %v1703_v48 = vpop.f32.mrb[15].mxu0  ;;  %v2707_v55 = vld [vmem:[%s5669_s14 + $0x1] ss:$0 sm:$0xff] }
 0x80e   :  { %v1704_v10 = vadd.f32 %v2689_v34, %v1703_v48  ;;  %v3964_v34 = vpack.c.bf16 %v1891_v46, %v1890_v14  ;;  %v2729_v14 = vld [vmem:[%s5670_s15 + $0x120] sm:$0xff]  ;;  %v2730_v46 = vld [vmem:[%s5670_s15 + $0x128] sm:$0xff] }
 0x80f   :  { %v1715_v62 = vmul.f32 0.70710677, %v1709_v9  ;;  %v1713_v43 = vmul.f32 0.5, %v1709_v9 }
 0x810   :  { %v1714_v41 = vmul.f32 0.70710677, %v1704_v10  ;;  %v1712_v30 = vmul.f32 0.5, %v1704_v10  ;;  %3965 = vmatpush3.bf16.msra.mxu1 %v3964_v34  ;;  %v3997_v34 = vpack.c.bf16 %v2730_v46, %v2729_v14  ;;  %v2768_v14 = vld [vmem:[%s5670_s15 + $0x258] sm:$0xff] }
 0x811   :  { %v1717_v12 = vand.u32 2147483647, %v1715_v62  ;;  %vm1757_vm14 = vcmp.ge.f32.partialorder %v1715_v62, 0.0  ;;  %3966 = vmatprep.subr.bf16.mxu1 %v4188_v4  ;;  %v2709_v62 = vld [vmem:[%s5670_s15 + $0x80] sm:$0xff] }
 0x812   :  { %v1716_v56 = vand.u32 2147483647, %v1714_v41  ;;  %vm1756_vm15 = vcmp.ge.f32.partialorder %v1714_v41, 0.0  ;;  %v2710_v41 = vld [vmem:[%s5670_s15 + $0x88] sm:$0xff] }
 0x813   :  { %v1719_v57 = vmul.f32 0.3275911, %v1717_v12  ;;  %v1745_v37 = vsub.f32 0.0, %v1717_v12 }
 0x814   :  { %v1718_v33 = vmul.f32 0.3275911, %v1716_v56  ;;  %v1744_v6 = vsub.f32 0.0, %v1716_v56 }
 0x815   :  { %v1721_v16 = vadd.f32 1.0, %v1719_v57  ;;  %v1747_v32 = vmul.f32 %v1745_v37, %v1717_v12 }
 0x816   :  { %v1720_v15 = vadd.f32 1.0, %v1718_v33  ;;  %v1746_v51 = vmul.f32 %v1744_v6, %v1716_v56  ;;  %v3967_v33 = vpack.c.bf16 %v2710_v41, %v2709_v62  ;;  %v2734_v62 = vld [vmem:[%s5670_s15 + $0x148] sm:$0xff] }
 0x817   :  { %4180 = vrcp.f32 %v1721_v16  ;;  %v1750_v13 = vmul.f32 1.442695, %v1747_v32  ;;  %v2712_v32 = vld [vmem:[%s5670_s15 + $0x98] sm:$0xff] }
 0x818   :  { %4182 = vrcp.f32 %v1720_v15  ;;  %v1748_v47 = vmul.f32 1.442695, %v1746_v51 }
 0x819   :  { %4184 = vpow2.f32 %v1750_v13 }
 0x81a   :  { %4186 = vpow2.f32 %v1748_v47 }
 0x821   :  { %v4181_v45 = vpop.eup %4180 }
 0x822   :  { %v4183_v31 = vpop.eup %4182  ;;  %v1727_v42 = vmul.f32 1.0614054, %v4181_v45 }
 0x823   :  { %v1726_v61 = vmul.f32 1.0614054, %v4183_v31  ;;  %v4185_v36 = vpop.eup %4184 }
 0x824   :  { %v1729_v18 = vadd.f32 -1.4531521, %v1727_v42  ;;  %v4187_v60 = vpop.eup %4186 }
 0x825   :  { %v1728_v19 = vadd.f32 -1.4531521, %v1726_v61 }
 0x826   :  { %v1731_v17 = vmul.f32 %v4181_v45, %v1729_v18 }
 0x827   :  { %v1730_v5 = vmul.f32 %v4183_v31, %v1728_v19 }
 0x828   :  { %v1733_v52 = vadd.f32 1.4214138, %v1731_v17 }
 0x829   :  { %v1732_v11 = vadd.f32 1.4214138, %v1730_v5 }
 0x82a   :  { %v1735_v0 = vmul.f32 %v4181_v45, %v1733_v52 }
 0x82b   :  { %v1734_v35 = vmul.f32 %v4183_v31, %v1732_v11 }
 0x82c   :  { %v1737_v20 = vadd.f32 -0.28449672, %v1735_v0 }
 0x82d   :  { %v1736_v63 = vadd.f32 -0.28449672, %v1734_v35 }
 0x82e   :  { %v1739_v21 = vmul.f32 %v4181_v45, %v1737_v20  ;;  %v2713_v20 = vld [vmem:[%s5670_s15 + $0xa0] sm:$0xff] }
 0x82f   :  { %v1738_v22 = vmul.f32 %v4183_v31, %v1736_v63  ;;  %v2714_v63 = vld [vmem:[%s5670_s15 + $0xa8] sm:$0xff] }
 0x830   :  { %v1741_v23 = vadd.f32 0.2548296, %v1739_v21 }
 0x831   :  { %v1740_v25 = vadd.f32 0.2548296, %v1738_v22 }
 0x832   :  { %v1743_v39 = vmul.f32 %v4181_v45, %v1741_v23  ;;  %v2711_v45 = vld [vmem:[%s5670_s15 + $0x90] sm:$0xff] }
 0x833   :  { %v1742_v2 = vmul.f32 %v4183_v31, %v1740_v25  ;;  %v3970_v52 = vpack.c.bf16 %v2712_v32, %v2711_v45  ;;  %v3973_v25 = vpack.c.bf16 %v2714_v63, %v2713_v20  ;;  %v2741_v32 = vld [vmem:[%s5670_s15 + $0x180] sm:$0xff]  ;;  %v2751_v63 = vld [vmem:[%s5670_s15 + $0x1d0] sm:$0xff] }
 0x834   :  { %v1753_v53 = vmul.f32 %v4185_v36, %v1743_v39  ;;  %v2715_v39 = vld [vmem:[%s5670_s15 + $0xb0] sm:$0xff]  ;;  %v2716_v36 = vld [vmem:[%s5670_s15 + $0xb8] sm:$0xff] }
 0x835   :  { %v1752_v26 = vmul.f32 %v4187_v60, %v1742_v2  ;;  %v3976_v2 = vpack.c.bf16 %v2716_v36, %v2715_v39  ;;  %v2717_v60 = vld [vmem:[%s5670_s15 + $0xc0] sm:$0xff]  ;;  %v2754_v36 = vld [vmem:[%s5670_s15 + $0x1e8] sm:$0xff] }
 0x836   :  { %v1755_v27 = vsub.f32 1.0, %v1753_v53  ;;  %v2718_v53 = vld [vmem:[%s5670_s15 + $0xc8] sm:$0xff]  ;;  %v2753_v39 = vld [vmem:[%s5670_s15 + $0x1e0] sm:$0xff] }
 0x837   :  { %v1754_v7 = vsub.f32 1.0, %v1752_v26  ;;  %v3979_v26 = vpack.c.bf16 %v2718_v53, %v2717_v60  ;;  %v2755_v60 = vld [vmem:[%s5670_s15 + $0x1f0] sm:$0xff]  ;;  %v2756_v53 = vld [vmem:[%s5670_s15 + $0x1f8] sm:$0xff] }
 0x838   :  { %v1759_v28 = vsub.f32 0.0, %v1755_v27 }
 0x839   :  { %v1758_v38 = vsub.f32 0.0, %v1754_v7 }
 0x83a   :  { %v1761_v1 = vsel %vm1757_vm14, %v1755_v27, %v1759_v28  ;;  %v2719_v27 = vld [vmem:[%s5670_s15 + $0xd0] sm:$0xff] }
 0x83b   :  { %v1763_v40 = vadd.f32 1.0, %v1761_v1  ;;  %v1760_v8 = vsel %vm1756_vm15, %v1754_v7, %v1758_v38  ;;  %v2720_v7 = vld [vmem:[%s5670_s15 + $0xd8] sm:$0xff]  ;;  %v2721_v38 = vld [vmem:[%s5670_s15 + $0xe0] sm:$0xff]  ;;  %v2722_v1 = vld [vmem:[%s5670_s15 + $0xe8] sm:$0xff] }
 0x83c   :  { %v1762_v50 = vadd.f32 1.0, %v1760_v8  ;;  %v3982_v28 = vpack.c.bf16 %v2720_v7, %v2719_v27  ;;  %v2723_v8 = vld [vmem:[%s5670_s15 + $0xf0] sm:$0xff]  ;;  %v2757_v27 = vld [vmem:[%s5670_s15 + $0x200] sm:$0xff]  ;;  %v2758_v7 = vld [vmem:[%s5670_s15 + $0x208] sm:$0xff] }
 0x83d   :  { %v1765_v58 = vmul.f32 %v1763_v40, %v1713_v43  ;;  %v3985_v40 = vpack.c.bf16 %v2722_v1, %v2721_v38  ;;  %v2725_v43 = vld [vmem:[%s5670_s15 + $0x100] sm:$0xff]  ;;  %v2759_v38 = vld [vmem:[%s5670_s15 + $0x210] sm:$0xff]  ;;  %v2760_v1 = vld [vmem:[%s5670_s15 + $0x218] sm:$0xff] }
 0x83e   :  { %v1764_v59 = vmul.f32 %v1762_v50, %v1712_v30  ;;  %v2724_v30 = vld [vmem:[%s5670_s15 + $0xf8] sm:$0xff] }
 0x83f   :  { %v3988_v50 = vpack.c.bf16 %v2724_v30, %v2723_v8  ;;  %v2761_v8 = vld [vmem:[%s5670_s15 + $0x220] sm:$0xff]  ;;  %v2762_v30 = vld [vmem:[%s5670_s15 + $0x228] sm:$0xff] }
 0x840   :  { %3395 = vmatprep.mubr.f32.mxu0 %v1764_v59  ;;  %v2726_v59 = vld [vmem:[%s5670_s15 + $0x108] sm:$0xff] }
 0x841   :  { %3396 = vmatmul.mubr.f32.vlgmr.msra.gmra.mrb[16].mxu0 %v1765_v58  ;;  %v3991_v58 = vpack.c.bf16 %v2726_v59, %v2725_v43  ;;  %v2764_v43 = vld [vmem:[%s5670_s15 + $0x238] sm:$0xff] }
 0x914   :  { %v3397_v9 = vpop.f32.mrb[16].mxu0 }
 0x915   :  { %v1863_v48 = vadd.f32 %v3397_v9, %v2707_v55  ;;  %v1857_v10 = vpop.f32.mrb[17].mxu0  ;;  %v2732_v9 = vld [vmem:[%s5670_s15 + $0x138] sm:$0xff] }
 0x916   :  { %v1858_v12 = vadd.f32 %v2707_v55, %v1857_v10  ;;  %v2731_v55 = vld [vmem:[%s5670_s15 + $0x130] sm:$0xff]  ;;  %v2733_v10 = vld [vmem:[%s5670_s15 + $0x140] sm:$0xff] }
 0x917   :  { %v1867_v56 = vadd.f32 %v1863_v48, %v4825_v44  ;;  %v4000_v48 = vpack.c.bf16 %v2732_v9, %v2731_v55  ;;  %v4003_v41 = vpack.c.bf16 %v2734_v62, %v2733_v10  ;;  %v2770_v55 = vld [vmem:[%s5670_s15 + $0x268] sm:$0xff]  ;;  %v2772_v10 = vld [vmem:[%s5670_s15 + $0x278] sm:$0xff] }
 0x918   :  { %v1866_v57 = vadd.f32 %v1858_v12, %v4842_v49  ;;  %v2735_v12 = vld [vmem:[%s5670_s15 + $0x150] sm:$0xff] }
 0x919   :  { %v1894_v16 = vrot.slane %v1867_v56, 7  ;;  %v2078_v15 = vrot.slane %v1867_v56, 1  ;;  %v2170_v37 = vrot.slane %v1867_v56, 2  ;;  %v2262_v6 = vrot.slane %v1867_v56, 3 }
 0x91a   :  { %v1986_v31 = vrot.slane %v1866_v57, 1  ;;  %v2077_v42 = vrot.slane %v1866_v57, 2  ;;  %v2169_v51 = vrot.slane %v1866_v57, 3  ;;  %v2261_v44 = vrot.slane %v1866_v57, 4 }
 0x91b   :  { %v1896_v49 = vsel %vm1895_vm1, %v1894_v16, %v1866_v57  ;;  %v2353_v61 = vrot.slane %v1866_v57, 5  ;;  %v2354_v18 = vrot.slane %v1867_v56, 4  ;;  %v2445_v13 = vrot.slane %v1866_v57, 6  ;;  %v2738_v16 = vld [vmem:[%s5670_s15 + $0x168] sm:$0xff] }
 0x91c   :  { %3431 = vmatmul.mubr.f32.vlgmr.msra.gmra.mrb[0].mxu1 %v1896_v49  ;;  %v1987_v19 = vsel %vm1895_vm1, %v1867_v56, %v1986_v31  ;;  %v5233_v17 = vsel %vm1895_vm1, %v2078_v15, %v2077_v42  ;;  %v5236_v47 = vsel %vm1895_vm1, %v2170_v37, %v2169_v51  ;;  %v5239_v5 = vsel %vm1895_vm1, %v2262_v6, %v2261_v44  ;;  %v2739_v37 = vld [vmem:[%s5670_s15 + $0x170] sm:$0xff]  ;;  %v2740_v6 = vld [vmem:[%s5670_s15 + $0x178] sm:$0xff]  ;;  %v2742_v31 = vld [vmem:[%s5670_s15 + $0x188] sm:$0xff] }
 0x91d   :  { %3968 = vmatpush3.bf16.msra.mxu1 %v3967_v33  ;;  %3465 = vmatprep.mubr.msk.f32.mxu1 %vm4189_vm0, %v4190_v29  ;;  %v5244_v11 = vsel %vm1895_vm1, %v2354_v18, %v2353_v61  ;;  %v2446_v0 = vrot.slane %v1867_v56, 5  ;;  %v2537_v35 = vrot.slane %v1866_v57, 7  ;;  %v2538_v21 = vrot.slane %v1867_v56, 6  ;;  %v2736_v56 = vld [vmem:[%s5670_s15 + $0x158] sm:$0xff]  ;;  %v2737_v33 = vld [vmem:[%s5670_s15 + $0x160] sm:$0xff]  ;;  %v2743_v51 = vld [vmem:[%s5670_s15 + $0x190] sm:$0xff] }
 0x91e   :  { %3969 = vmatprep.subr.bf16.mxu1 %v4188_v4  ;;  %v4006_v57 = vpack.c.bf16 %v2736_v56, %v2735_v12  ;;  %v4009_v15 = vpack.c.bf16 %v2738_v16, %v2737_v33  ;;  %v4012_v45 = vpack.c.bf16 %v2740_v6, %v2739_v37  ;;  %v4015_v42 = vpack.c.bf16 %v2742_v31, %v2741_v32  ;;  %v2744_v44 = vld [vmem:[%s5670_s15 + $0x198] sm:$0xff]  ;;  %v2745_v61 = vld [vmem:[%s5670_s15 + $0x1a0] sm:$0xff]  ;;  %v2746_v18 = vld [vmem:[%s5670_s15 + $0x1a8] sm:$0xff] }
 0x91f   :  { %v5254_v22 = vsel %vm1895_vm1, %v2446_v0, %v2445_v13  ;;  %v5257_v23 = vsel %vm1895_vm1, %v2538_v21, %v2537_v35  ;;  %v4018_v49 = vpack.c.bf16 %v2744_v44, %v2743_v51  ;;  %v4021_v13 = vpack.c.bf16 %v2746_v18, %v2745_v61  ;;  %v2749_v0 = vld [vmem:[%s5670_s15 + $0x1c0] sm:$0xff]  ;;  %v2750_v35 = vld [vmem:[%s5670_s15 + $0x1c8] sm:$0xff]  ;;  %v2752_v21 = vld [vmem:[%s5670_s15 + $0x1d8] sm:$0xff] }
 0x920   :  { %v4027_v20 = vpack.c.bf16 %v2750_v35, %v2749_v0  ;;  %v2774_v12 = vld [vmem:[%s5670_s15 + $0x288] sm:$0xff]  ;;  %v2776_v33 = vld [vmem:[%s5670_s15 + $0x298] sm:$0xff]  ;;  %v2781_v31 = vld [vmem:[%s5670_s15 + $0x2c0] sm:$0xff] }
 0x921   :  { %3971 = vmatpush3.bf16.msra.mxu1 %v3970_v52  ;;  %v2778_v37 = vld [vmem:[%s5670_s15 + $0x2a8] sm:$0xff]  ;;  %v2783_v44 = vld [vmem:[%s5670_s15 + $0x2d0] sm:$0xff]  ;;  %v2785_v18 = vld [vmem:[%s5670_s15 + $0x2e0] sm:$0xff] }
 0x922   :  { %3972 = vmatprep.subr.bf16.mxu1 %v4188_v4  ;;  %v2789_v35 = vld [vmem:[%s5670_s15 + $0x300] sm:$0xff] }
 0x925   :  { %3974 = vmatpush3.bf16.msra.mxu1 %v3973_v25  ;;  %v4030_v25 = vpack.c.bf16 %v2752_v21, %v2751_v63  ;;  %v2791_v21 = vld [vmem:[%s5670_s15 + $0x310] sm:$0xff] }
 0x926   :  { %3975 = vmatprep.subr.bf16.mxu1 %v4188_v4 }
 0x929   :  { %3977 = vmatpush3.bf16.msra.mxu1 %v3976_v2  ;;  %v4033_v2 = vpack.c.bf16 %v2754_v36, %v2753_v39  ;;  %v2793_v36 = vld [vmem:[%s5670_s15 + $0x320] sm:$0xff] }
 0x92a   :  { %3978 = vmatprep.subr.bf16.mxu1 %v4188_v4 }
 0x92d   :  { %3980 = vmatpush3.bf16.msra.mxu1 %v3979_v26  ;;  %v4036_v26 = vpack.c.bf16 %v2756_v53, %v2755_v60  ;;  %v2796_v53 = vld [vmem:[%s5670_s15 + $0x338] sm:$0xff] }
 0x92e   :  { %3981 = vmatprep.subr.bf16.mxu1 %v4188_v4 }
 0x931   :  { %3983 = vmatpush3.bf16.msra.mxu1 %v3982_v28  ;;  %v4039_v28 = vpack.c.bf16 %v2758_v7, %v2757_v27  ;;  %v2797_v27 = vld [vmem:[%s5670_s15 + $0x340] sm:$0xff]  ;;  %v2798_v7 = vld [vmem:[%s5670_s15 + $0x348] sm:$0xff] }
 0x932   :  { %3984 = vmatprep.subr.bf16.mxu1 %v4188_v4 }
 0x935   :  { %3986 = vmatpush3.bf16.msra.mxu1 %v3985_v40  ;;  %v4042_v40 = vpack.c.bf16 %v2760_v1, %v2759_v38  ;;  %v2799_v38 = vld [vmem:[%s5670_s15 + $0x350] sm:$0xff]  ;;  %v2800_v1 = vld [vmem:[%s5670_s15 + $0x358] sm:$0xff] }
 0x936   :  { %3987 = vmatprep.subr.bf16.mxu1 %v4188_v4 }
 0x939   :  { %3989 = vmatpush3.bf16.msra.mxu1 %v3988_v50  ;;  %v4045_v50 = vpack.c.bf16 %v2762_v30, %v2761_v8  ;;  %v2801_v8 = vld [vmem:[%s5670_s15 + $0x360] sm:$0xff]  ;;  %v2802_v30 = vld [vmem:[%s5670_s15 + $0x368] sm:$0xff] }
 0x93a   :  { %3990 = vmatprep.subr.bf16.mxu1 %v4188_v4 }
 0x93c   :  { %3466 = vmatmul.mubr.f32.vlgmr.msra.gmra.mrb[0].mxu1 %v1987_v19  ;;  %v2747_v19 = vld [vmem:[%s5670_s15 + $0x1b0] sm:$0xff] }
 0x93d   :  { %3992 = vmatpush3.bf16.msra.mxu1 %v3991_v58  ;;  %3500 = vmatprep.mubr.msk.f32.mxu1 %vm4189_vm0, %v4190_v29  ;;  %v2765_v58 = vld [vmem:[%s5670_s15 + $0x240] sm:$0xff] }
 0x93e   :  { %3993 = vmatprep.subr.bf16.mxu1 %v4188_v4  ;;  %v4051_v54 = vpack.c.bf16 %v2766_v3, %v2765_v58  ;;  %v2805_v58 = vld [vmem:[%s5670_s15 + $0x380] sm:$0xff]  ;;  %v2806_v3 = vld [vmem:[%s5670_s15 + $0x388] sm:$0xff] }
 0x941   :  { %3995 = vmatpush3.bf16.msra.mxu1 %v3994_v24  ;;  %v2767_v24 = vld [vmem:[%s5670_s15 + $0x250] sm:$0xff] }
 0x942   :  { %3996 = vmatprep.subr.bf16.mxu1 %v4188_v4  ;;  %v4054_v46 = vpack.c.bf16 %v2768_v14, %v2767_v24  ;;  %v2807_v24 = vld [vmem:[%s5670_s15 + $0x390] sm:$0xff]  ;;  %v2808_v14 = vld [vmem:[%s5670_s15 + $0x398] sm:$0xff] }
 0x945   :  { %3998 = vmatpush3.bf16.msra.mxu1 %v3997_v34  ;;  %v2769_v34 = vld [vmem:[%s5670_s15 + $0x260] sm:$0xff] }
 0x946   :  { %3999 = vmatprep.subr.bf16.mxu1 %v4188_v4  ;;  %v4057_v9 = vpack.c.bf16 %v2770_v55, %v2769_v34  ;;  %v2809_v34 = vld [vmem:[%s5670_s15 + $0x3a0] sm:$0xff]  ;;  %v2810_v55 = vld [vmem:[%s5670_s15 + $0x3a8] sm:$0xff] }
 0x949   :  { %4001 = vmatpush3.bf16.msra.mxu1 %v4000_v48  ;;  %v2771_v48 = vld [vmem:[%s5670_s15 + $0x270] sm:$0xff] }
 0x94a   :  { %4002 = vmatprep.subr.bf16.mxu1 %v4188_v4  ;;  %v4060_v62 = vpack.c.bf16 %v2772_v10, %v2771_v48  ;;  %v2813_v10 = vld [vmem:[%s5670_s15 + $0x3c0] sm:$0xff] }
 0x94d   :  { %4004 = vmatpush3.bf16.msra.mxu1 %v4003_v41  ;;  %v2773_v41 = vld [vmem:[%s5670_s15 + $0x280] sm:$0xff] }
 0x94e   :  { %4005 = vmatprep.subr.bf16.mxu1 %v4188_v4  ;;  %v4063_v56 = vpack.c.bf16 %v2774_v12, %v2773_v41  ;;  %v2815_v12 = vld [vmem:[%s5670_s15 + $0x3d0] sm:$0xff] }
 0x951   :  { %4007 = vmatpush3.bf16.msra.mxu1 %v4006_v57  ;;  %v2775_v57 = vld [vmem:[%s5670_s15 + $0x290] sm:$0xff] }
 0x952   :  { %4008 = vmatprep.subr.bf16.mxu1 %v4188_v4  ;;  %v4066_v16 = vpack.c.bf16 %v2776_v33, %v2775_v57  ;;  %v2817_v33 = vld [vmem:[%s5670_s15 + $0x3e0] sm:$0xff] }
 0x955   :  { %4010 = vmatpush3.bf16.msra.mxu1 %v4009_v15  ;;  %v2777_v15 = vld [vmem:[%s5670_s15 + $0x2a0] sm:$0xff] }
 0x956   :  { %4011 = vmatprep.subr.bf16.mxu1 %v4188_v4  ;;  %v4069_v6 = vpack.c.bf16 %v2778_v37, %v2777_v15  ;;  %v2819_v37 = vld [vmem:[%s5670_s15 + $0x3f0] sm:$0xff] }
 0x959   :  { %4013 = vmatpush3.bf16.msra.mxu1 %v4012_v45  ;;  %v2780_v45 = vld [vmem:[%s5670_s15 + $0x2b8] sm:$0xff] }
 0x95a   :  { %4014 = vmatprep.subr.bf16.mxu1 %v4188_v4 }
 0x95c   :  { %3501 = vmatmul.mubr.f32.vlgmr.msra.gmra.mrb[0].mxu1 %v5233_v17  ;;  %v2748_v17 = vld [vmem:[%s5670_s15 + $0x1b8] sm:$0xff] }
 0x95d   :  { %4016 = vmatpush3.bf16.msra.mxu1 %v4015_v42  ;;  %3535 = vmatprep.mubr.msk.f32.mxu1 %vm4189_vm0, %v4190_v29  ;;  %v4024_v52 = vpack.c.bf16 %v2748_v17, %v2747_v19  ;;  %v2782_v42 = vld [vmem:[%s5670_s15 + $0x2c8] sm:$0xff]  ;;  %v2787_v17 = vld [vmem:[%s5670_s15 + $0x2f0] sm:$0xff] }
 0x95e   :  { %4017 = vmatprep.subr.bf16.mxu1 %v4188_v4  ;;  %v4075_v51 = vpack.c.bf16 %v2782_v42, %v2781_v31 }
 0x961   :  { %4019 = vmatpush3.bf16.msra.mxu1 %v4018_v49  ;;  %v2784_v49 = vld [vmem:[%s5670_s15 + $0x2d8] sm:$0xff] }
 0x962   :  { %4020 = vmatprep.subr.bf16.mxu1 %v4188_v4  ;;  %v4078_v61 = vpack.c.bf16 %v2784_v49, %v2783_v44 }
 0x965   :  { %4022 = vmatpush3.bf16.msra.mxu1 %v4021_v13  ;;  %v2786_v13 = vld [vmem:[%s5670_s15 + $0x2e8] sm:$0xff] }
 0x966   :  { %4023 = vmatprep.subr.bf16.mxu1 %v4188_v4  ;;  %v4081_v19 = vpack.c.bf16 %v2786_v13, %v2785_v18 }
 0x969   :  { %4025 = vmatpush3.bf16.msra.mxu1 %v4024_v52  ;;  %v2788_v52 = vld [vmem:[%s5670_s15 + $0x2f8] sm:$0xff] }
 0x96a   :  { %4026 = vmatprep.subr.bf16.mxu1 %v4188_v4  ;;  %v4084_v0 = vpack.c.bf16 %v2788_v52, %v2787_v17 }
 0x96d   :  { %4028 = vmatpush3.bf16.msra.mxu1 %v4027_v20  ;;  %v2790_v20 = vld [vmem:[%s5670_s15 + $0x308] sm:$0xff] }
 0x96e   :  { %4029 = vmatprep.subr.bf16.mxu1 %v4188_v4  ;;  %v4087_v63 = vpack.c.bf16 %v2790_v20, %v2789_v35 }
 0x971   :  { %4031 = vmatpush3.bf16.msra.mxu1 %v4030_v25  ;;  %v2792_v25 = vld [vmem:[%s5670_s15 + $0x318] sm:$0xff] }
 0x972   :  { %4032 = vmatprep.subr.bf16.mxu1 %v4188_v4  ;;  %v4090_v39 = vpack.c.bf16 %v2792_v25, %v2791_v21 }
 0x975   :  { %4034 = vmatpush3.bf16.msra.mxu1 %v4033_v2  ;;  %v2794_v2 = vld [vmem:[%s5670_s15 + $0x328] sm:$0xff] }
 0x976   :  { %4035 = vmatprep.subr.bf16.mxu1 %v4188_v4  ;;  %v4093_v60 = vpack.c.bf16 %v2794_v2, %v2793_v36 }
 0x979   :  { %4037 = vmatpush3.bf16.msra.mxu1 %v4036_v26 }
 0x97a   :  { %4038 = vmatprep.subr.bf16.mxu1 %v4188_v4 }
 0x97c   :  { %3536 = vmatmul.mubr.f32.vlgmr.msra.gmra.mrb[0].mxu1 %v5236_v47  ;;  %v2763_v47 = vld [vmem:[%s5670_s15 + $0x230] sm:$0xff] }
 0x97d   :  { %4040 = vmatpush3.bf16.msra.mxu1 %v4039_v28  ;;  %3570 = vmatprep.mubr.msk.f32.mxu1 %vm4189_vm0, %v4190_v29  ;;  %v4048_v59 = vpack.c.bf16 %v2764_v43, %v2763_v47  ;;  %v4099_v28 = vpack.c.bf16 %v2798_v7, %v2797_v27  ;;  %v2803_v47 = vld [vmem:[%s5670_s15 + $0x370] sm:$0xff]  ;;  %v2804_v43 = vld [vmem:[%s5670_s15 + $0x378] sm:$0xff] }
 0x97e   :  { %4041 = vmatprep.subr.bf16.mxu1 %v4188_v4 }
 0x981   :  { %4043 = vmatpush3.bf16.msra.mxu1 %v4042_v40  ;;  %v4102_v40 = vpack.c.bf16 %v2800_v1, %v2799_v38 }
 0x982   :  { %4044 = vmatprep.subr.bf16.mxu1 %v4188_v4 }
 0x985   :  { %4046 = vmatpush3.bf16.msra.mxu1 %v4045_v50  ;;  %v4105_v50 = vpack.c.bf16 %v2802_v30, %v2801_v8 }
 0x986   :  { %4047 = vmatprep.subr.bf16.mxu1 %v4188_v4 }
 0x989   :  { %4049 = vmatpush3.bf16.msra.mxu1 %v4048_v59  ;;  %v4108_v59 = vpack.c.bf16 %v2804_v43, %v2803_v47 }
 0x98a   :  { %4050 = vmatprep.subr.bf16.mxu1 %v4188_v4 }
 0x98d   :  { %4052 = vmatpush3.bf16.msra.mxu1 %v4051_v54  ;;  %v4111_v54 = vpack.c.bf16 %v2806_v3, %v2805_v58 }
 0x98e   :  { %4053 = vmatprep.subr.bf16.mxu1 %v4188_v4 }
 0x991   :  { %4055 = vmatpush3.bf16.msra.mxu1 %v4054_v46  ;;  %v4114_v46 = vpack.c.bf16 %v2808_v14, %v2807_v24 }
 0x992   :  { %4056 = vmatprep.subr.bf16.mxu1 %v4188_v4 }
 0x995   :  { %4058 = vmatpush3.bf16.msra.mxu1 %v4057_v9  ;;  %v4117_v9 = vpack.c.bf16 %v2810_v55, %v2809_v34 }
 0x996   :  { %4059 = vmatprep.subr.bf16.mxu1 %v4188_v4 }
 0x999   :  { %4061 = vmatpush3.bf16.msra.mxu1 %v4060_v62  ;;  %v2814_v62 = vld [vmem:[%s5670_s15 + $0x3c8] sm:$0xff] }
 0x99a   :  { %4062 = vmatprep.subr.bf16.mxu1 %v4188_v4  ;;  %v4123_v41 = vpack.c.bf16 %v2814_v62, %v2813_v10 }
 0x99c   :  { %3571 = vmatmul.mubr.f32.vlgmr.msra.gmra.mrb[0].mxu1 %v5239_v5  ;;  %v2779_v5 = vld [vmem:[%s5670_s15 + $0x2b0] sm:$0xff] }
 0x99d   :  { %4064 = vmatpush3.bf16.msra.mxu1 %v4063_v56  ;;  %3605 = vmatprep.mubr.msk.f32.mxu1 %vm4189_vm0, %v4190_v29  ;;  %v4072_v32 = vpack.c.bf16 %v2780_v45, %v2779_v5  ;;  %v2816_v56 = vld [vmem:[%s5670_s15 + $0x3d8] sm:$0xff]  ;;  %v2708_v45 = vld [vmem:[%s5671_s16] ss:$0 sm:$0xff] }
 0x99e   :  { %4065 = vmatprep.subr.bf16.mxu1 %v4188_v4  ;;  %v4126_v57 = vpack.c.bf16 %v2816_v56, %v2815_v12 }
 0x9a1   :  { %4067 = vmatpush3.bf16.msra.mxu1 %v4066_v16  ;;  %v2818_v16 = vld [vmem:[%s5670_s15 + $0x3e8] sm:$0xff] }
 0x9a2   :  { %4068 = vmatprep.subr.bf16.mxu1 %v4188_v4  ;;  %v4129_v15 = vpack.c.bf16 %v2818_v16, %v2817_v33 }
 0x9a5   :  { %4070 = vmatpush3.bf16.msra.mxu1 %v4069_v6  ;;  %v2820_v6 = vld [vmem:[%s5670_s15 + $0x3f8] sm:$0xff] }
 0x9a6   :  { %4071 = vmatprep.subr.bf16.mxu1 %v4188_v4  ;;  %v4132_v5 = vpack.c.bf16 %v2820_v6, %v2819_v37 }
 0x9a9   :  { %4073 = vmatpush3.bf16.msra.mxu1 %v4072_v32 }
 0x9aa   :  { %4074 = vmatprep.subr.bf16.mxu1 %v4188_v4 }
 0x9ad   :  { %4076 = vmatpush3.bf16.msra.mxu1 %v4075_v51 }
 0x9ae   :  { %4077 = vmatprep.subr.bf16.mxu1 %v4188_v4 }
 0x9b1   :  { %4079 = vmatpush3.bf16.msra.mxu1 %v4078_v61 }
 0x9b2   :  { %4080 = vmatprep.subr.bf16.mxu1 %v4188_v4 }
 0x9b5   :  { %4082 = vmatpush3.bf16.msra.mxu1 %v4081_v19 }
 0x9b6   :  { %4083 = vmatprep.subr.bf16.mxu1 %v4188_v4 }
 0x9b9   :  { %4085 = vmatpush3.bf16.msra.mxu1 %v4084_v0 }
 0x9ba   :  { %4086 = vmatprep.subr.bf16.mxu1 %v4188_v4 }
 0x9bc   :  { %3606 = vmatmul.mubr.f32.vlgmr.msra.gmra.mrb[0].mxu1 %v5244_v11  ;;  %v2795_v11 = vld [vmem:[%s5670_s15 + $0x330] sm:$0xff] }
 0x9bd   :  { %4088 = vmatpush3.bf16.msra.mxu1 %v4087_v63  ;;  %3640 = vmatprep.mubr.msk.f32.mxu1 %vm4189_vm0, %v4190_v29  ;;  %v4096_v26 = vpack.c.bf16 %v2796_v53, %v2795_v11 }
 0x9be   :  { %4089 = vmatprep.subr.bf16.mxu1 %v4188_v4 }
 0x9c1   :  { %4091 = vmatpush3.bf16.msra.mxu1 %v4090_v39 }
 0x9c2   :  { %4092 = vmatprep.subr.bf16.mxu1 %v4188_v4 }
 0x9c5   :  { %4094 = vmatpush3.bf16.msra.mxu1 %v4093_v60 }
 0x9c6   :  { %4095 = vmatprep.subr.bf16.mxu1 %v4188_v4 }
 0x9c9   :  { %4097 = vmatpush3.bf16.msra.mxu1 %v4096_v26 }
 0x9ca   :  { %4098 = vmatprep.subr.bf16.mxu1 %v4188_v4 }
 0x9cd   :  { %4100 = vmatpush3.bf16.msra.mxu1 %v4099_v28 }
 0x9ce   :  { %4101 = vmatprep.subr.bf16.mxu1 %v4188_v4 }
 0x9d1   :  { %4103 = vmatpush3.bf16.msra.mxu1 %v4102_v40 }
 0x9d2   :  { %4104 = vmatprep.subr.bf16.mxu1 %v4188_v4 }
 0x9d5   :  { %4106 = vmatpush3.bf16.msra.mxu1 %v4105_v50 }
 0x9d6   :  { %4107 = vmatprep.subr.bf16.mxu1 %v4188_v4 }
 0x9d9   :  { %4109 = vmatpush3.bf16.msra.mxu1 %v4108_v59 }
 0x9da   :  { %4110 = vmatprep.subr.bf16.mxu1 %v4188_v4 }
 0x9dc   :  { %3641 = vmatmul.mubr.f32.vlgmr.msra.gmra.mrb[0].mxu1 %v5254_v22  ;;  %v2811_v22 = vld [vmem:[%s5670_s15 + $0x3b0] sm:$0xff] }
 0x9dd   :  { %4112 = vmatpush3.bf16.msra.mxu1 %v4111_v54  ;;  %3675 = vmatprep.mubr.msk.f32.mxu1 %vm4189_vm0, %v4190_v29  ;;  %v2812_v29 = vld [vmem:[%s5670_s15 + $0x3b8] sm:$0xff] }
 0x9de   :  { %4113 = vmatprep.subr.bf16.mxu1 %v4188_v4  ;;  %v4120_v48 = vpack.c.bf16 %v2812_v29, %v2811_v22 }
 0x9e1   :  { %4115 = vmatpush3.bf16.msra.mxu1 %v4114_v46 }
 0x9e2   :  { %4116 = vmatprep.subr.bf16.mxu1 %v4188_v4 }
 0x9e5   :  { %4118 = vmatpush3.bf16.msra.mxu1 %v4117_v9 }
 0x9e6   :  { %4119 = vmatprep.subr.bf16.mxu1 %v4188_v4 }
 0x9e9   :  { %4121 = vmatpush3.bf16.msra.mxu1 %v4120_v48 }
 0x9ea   :  { %4122 = vmatprep.subr.bf16.mxu1 %v4188_v4 }
 0x9ed   :  { %4124 = vmatpush3.bf16.msra.mxu1 %v4123_v41 }
 0x9ee   :  { %4125 = vmatprep.subr.bf16.mxu1 %v4188_v4 }
 0x9f1   :  { %4127 = vmatpush3.bf16.msra.mxu1 %v4126_v57 }
 0x9f2   :  { %4128 = vmatprep.subr.bf16.mxu1 %v4188_v4 }
 0x9f5   :  { %4130 = vmatpush3.bf16.msra.mxu1 %v4129_v15 }
 0x9f6   :  { %4131 = vmatprep.subr.bf16.mxu1 %v4188_v4 }
 0x9f9   :  { %4133 = vmatpush3.bf16.msra.mxu1 %v4132_v5 }
 0x9fc   :  { %3676 = vmatmul.mubr.f32.vlgmr.msra.gmra.mrb[0].mxu1 %v5257_v23 }
 0xacf   :  { %v2607_v32 = vpop.f32.mrb[0].mxu1 }
 0xad0   :  { %v4134_v31 = vadd.f32 %v2708_v45, %v2607_v32  ;;  %v3677_v42 = vpop.f32.mrb[1].mxu1 }
 0xad2   :  { %2613 = vst.msk [vmem:[%s5672_s17] sm:$0x3] %vm2612_vm2, %v4134_v31 }

</bundles_post_ra>
